<compile_context>
chip_gen: v5e
topology: v5e:2x2
jax: 0.10.0
libtpu: 0.0.40
codegen_flags: <defaults>
</compile_context>

<pallas_src>
import jax
import jax.numpy as jnp
from jax import lax
from jax.experimental import pallas as pl
from jax.experimental.pallas import tpu as pltpu

EPS = 1e-5  # custom LayerNorm eps (added to std, not variance)


# ---------------------------------------------------------------------------
# Fused Pallas kernel
# ---------------------------------------------------------------------------
def _make_simple_attn_kernel(N, C, headc, batch_block, use_bf16_matmul,
                             approx_recip):
    unbias = headc / (headc - 1.0)          # torch.std default is unbiased
    cdt = jnp.bfloat16 if use_bf16_matmul else jnp.float32

    def kernel(x_ref, pavg_ref, maskn_ref, klw_ref, klb_ref, vlw_ref, vlb_ref,
               o_ref):
        # Constants / params: DMA'd once (constant index_map), loaded once per step.
        p_avg = pavg_ref[...]       # (C, C) block-diagonal head mask / headc
        mask_n = maskn_ref[...]     # (C, C) block-diagonal head mask / N
        klw = klw_ref[...]          # (1, C) kln affine (flattened per-head params)
        klb = klb_ref[...]
        vlw = vlw_ref[...]
        vlb = vlb_ref[...]

        for b in range(batch_block):            # static, fully unrolled
            x = x_ref[b]                         # (N, C) float32

            # Per-head LayerNorm statistics, shared by k and v.  One merged f32
            # matmul computes both the segment mean of x and of x^2 (each
            # broadcast back to full C width by the block-average matrix).
            xcat = jnp.concatenate([x, x * x], axis=0)                  # (2N, C)
            stats = jnp.dot(xcat, p_avg,
                            preferred_element_type=jnp.float32)         # (2N, C)
            mu = stats[:N]
            ex2 = stats[N:]
            var_u = jnp.maximum(ex2 - mu * mu, 0.0) * unbias    # unbiased variance
            inv_std = pl.reciprocal(jnp.sqrt(var_u) + EPS,
                                    approx=approx_recip)        # eps added to std
            xn = (x - mu) * inv_std                             # shared normalized x

            k = xn * klw + klb                                  # kln affine
            v = xn * vlw + vlb                                  # vln affine

            # Galerkin attention, all heads at once (block-diagonal masking):
            #   M = (K^T V) / N restricted per head; attn = Q @ M, Q = x.
            m = lax.dot_general(k.astype(cdt), v.astype(cdt),
                                dimension_numbers=(((0,), (0,)), ((), ())),
                                preferred_element_type=jnp.float32)     # (C, C)
            m = m * mask_n
            attn = jnp.dot(x.astype(cdt), m.astype(cdt),
                           preferred_element_type=jnp.float32)          # (N, C)

            o_ref[b] = x + attn                  # out = v + bias (= x)

    return kernel


# ---------------------------------------------------------------------------
# Wrapper
# ---------------------------------------------------------------------------
def _device_info():
    try:
        d = jax.devices()[0]
        return d.platform, str(getattr(d, "device_kind", "")).lower()
    except Exception:
        return "", ""


def _default_use_bf16_matmul():
    # bf16 MXU operands (f32 accumulation) are a win on v5e/v6e/v7x; keep f32
    # on non-TPU backends so the reference check stays tight.
    platform, _ = _device_info()
    return platform == "tpu"


def _pick_batch_block(B):
    # v7x has 2 TensorCores: keep 1 batch element per grid step so the
    # "parallel" grid axis shards B across them.  v5e/v6e are single-TC, so
    # amortize the ~0.35us per-step pipeline overhead by blocking 2 per step.
    platform, kind = _device_info()
    if platform != "tpu":
        return 1
    if "v7" in kind:
        return 1
    return 2 if B % 2 == 0 else 1


def simple_attn_forward(x, klw, klb, vlw, vlb, *, heads, batch_block=None,
                        use_bf16_matmul=None):
    """Pallas TPU forward for simple_attn.

    x: (B, N, C) float32 tokens.
    klw/klb/vlw/vlb: (heads, C // heads) affine params of the per-head custom
    LayerNorms (kln / vln); the (heads, 1, headc) PyTorch shape flattens to
    the same row-major channel order.
    """
    B, N, C = x.shape
    assert C % heads == 0, "midc must be divisible by heads"
    headc = C // heads
    assert headc >= 2, "custom LayerNorm uses unbiased std (needs headc >= 2)"
    assert C % 128 == 0, "channel dim must be lane-dense (multiple of 128)"
    assert N % 8 == 0, "token dim must be sublane-aligned (multiple of 8)"

    if use_bf16_matmul is None:
        use_bf16_matmul = _default_use_bf16_matmul()
    if batch_block is None:
        batch_block = _pick_batch_block(B)
    if B % batch_block != 0:
        batch_block = 1
    approx_recip = use_bf16_matmul   # approx reciprocal only on the TPU path

    # Block-diagonal head constants, built ONCE on the host (not per step).
    hid = jnp.arange(C, dtype=jnp.int32) // headc
    head_mask = (hid[:, None] == hid[None, :]).astype(jnp.float32)   # (C, C)
    p_avg = head_mask / float(headc)      # block-average matrix for LN stats
    mask_n = head_mask / float(N)         # pre-scaled mask for M = K^T V / N

    # VMEM guard: whole (batch_block, N, C) token block (in + out, double
    # buffered) + constants + temporaries must fit.  v7x: 64 MiB physical.
    block_bytes = batch_block * N * C * 4
    const_bytes = 2 * C * C * 4 + 4 * C * 4
    temp_bytes = 10 * N * C * 4 + 2 * C * C * 4
    est_vmem = 4 * block_bytes + 2 * const_bytes + temp_bytes
    assert est_vmem < 24 * 1024 * 1024, (
        f"estimated VMEM {est_vmem} too large; add an N-tiling grid axis "
        "(accumulate M=(K^T V)/N in a (C,C) scratch, second pass for x @ M)")
    # TODO(synk): implement the N-tiled two-pass variant for large token counts.

    kernel = _make_simple_attn_kernel(N, C, headc, batch_block,
                                      use_bf16_matmul, approx_recip)

    def flat(p):
        return p.reshape(1, C).astype(jnp.float32)

    tok_spec = pl.BlockSpec((batch_block, N, C), lambda b: (b, 0, 0))
    cc_spec = pl.BlockSpec((C, C), lambda b: (0, 0))     # constant, stays resident
    par_spec = pl.BlockSpec((1, C), lambda b: (0, 0))

    # input_output_aliases={0: 0} would save the output HBM allocation, but is
    # omitted so callers may keep using x after the call (e.g. the reference
    # check below).

    return pl.pallas_call(
        kernel,
        out_shape=jax.ShapeDtypeStruct((B, N, C), jnp.float32),
        grid=(B // batch_block,),
        in_specs=[tok_spec, cc_spec, cc_spec,
                  par_spec, par_spec, par_spec, par_spec],
        out_specs=tok_spec,
        compiler_params=pltpu.CompilerParams(
            dimension_semantics=("parallel",),     # v7x: shard batch across TCs
            vmem_limit_bytes=32 * 1024 * 1024),
    )(x, p_avg, mask_n, flat(klw), flat(klb), flat(vlw), flat(vlb))


# ---------------------------------------------------------------------------
# Pure-JAX reference (mirrors the PyTorch module exactly)
# ---------------------------------------------------------------------------
def simple_attn_reference(x, klw, klb, vlw, vlb, *, heads):
    B, N, C = x.shape
    headc = C // heads
    qkv = x.reshape(B, N, heads, headc).transpose(0, 2, 1, 3)   # (B, H, N, hc)

    def custom_ln(t, w, b):
        mu = jnp.mean(t, axis=-1, keepdims=True)
        var = jnp.sum((t - mu) ** 2, axis=-1, keepdims=True) / (headc - 1)
        std = jnp.sqrt(var)
        out = (t - mu) / (std + EPS)
        return w[None, :, None, :] * out + b[None, :, None, :]

    q = k = v = qkv
    k = custom_ln(k, klw, klb)
    v = custom_ln(v, vlw, vlb)
    m = jnp.einsum("bhnc,bhnd->bhcd", k, v) / N
    o = jnp.einsum("bhnc,bhcd->bhnd", q, m)
    o = o.transpose(0, 2, 1, 3).reshape(B, N, C)
    return o + x


# ---------------------------------------------------------------------------
# Main
# ---------------------------------------------------------------------------
if __name__ == "__main__":
    key = jax.random.PRNGKey(0)
    kx, kw1, kb1, kw2, kb2 = jax.random.split(key, 5)

    # Small config consistent with simple_attn: midc=128, heads=8 -> headc=16.
    B, N, C, heads = 2, 256, 128, 8
    x = jax.random.normal(kx, (B, N, C), dtype=jnp.float32)
    klw = 1.0 + 0.1 * jax.random.normal(kw1, (heads, C // heads), jnp.float32)
    klb = 0.1 * jax.random.normal(kb1, (heads, C // heads), jnp.float32)
    vlw = 1.0 + 0.1 * jax.random.normal(kw2, (heads, C // heads), jnp.float32)
    vlb = 0.1 * jax.random.normal(kb2, (heads, C // heads), jnp.float32)

    out = simple_attn_forward(x, klw, klb, vlw, vlb, heads=heads)
    out = jax.block_until_ready(out)

    ref = simple_attn_reference(x, klw, klb, vlw, vlb, heads=heads)
    tol = 3e-2 if _default_use_bf16_matmul() else 2e-4

    assert out.shape == (B, N, C)
    assert bool(jnp.all(jnp.isfinite(out)))
    max_err = float(jnp.max(jnp.abs(out - ref)))
    assert max_err < tol, f"max abs error {max_err} exceeds tol {tol}"

    print("KERNEL_OK")
</pallas_src>

<mosaic_0001>
module attributes {stable_mosaic.version = 11 : i64} {
  func.func @kernel(%arg0: i32, %arg1: memref<1x256x128xf32, #tpu.memory_space<vmem>>, %arg2: memref<128x128xf32, #tpu.memory_space<vmem>>, %arg3: memref<128x128xf32, #tpu.memory_space<vmem>>, %arg4: memref<1x128xf32, #tpu.memory_space<vmem>>, %arg5: memref<1x128xf32, #tpu.memory_space<vmem>>, %arg6: memref<1x128xf32, #tpu.memory_space<vmem>>, %arg7: memref<1x128xf32, #tpu.memory_space<vmem>>, %arg8: memref<1x256x128xf32, #tpu.memory_space<vmem>>) attributes {dimension_semantics = [#tpu.dimension_semantics<parallel>], iteration_bounds = array<i64: 2>, scalar_prefetch = 0 : i64, scratch_operands = 0 : i64, tpu.core_type = #tpu.core_type<tc>, window_params = [{transform_indices = @transform_0, window_bounds = array<i64: 1, 256, 128>}, {pipeline_mode = #tpu.pipeline_mode<synchronous>, transform_indices = @transform_1, window_bounds = array<i64: 128, 128>}, {pipeline_mode = #tpu.pipeline_mode<synchronous>, transform_indices = @transform_2, window_bounds = array<i64: 128, 128>}, {pipeline_mode = #tpu.pipeline_mode<synchronous>, transform_indices = @transform_3, window_bounds = array<i64: 1, 128>}, {pipeline_mode = #tpu.pipeline_mode<synchronous>, transform_indices = @transform_4, window_bounds = array<i64: 1, 128>}, {pipeline_mode = #tpu.pipeline_mode<synchronous>, transform_indices = @transform_5, window_bounds = array<i64: 1, 128>}, {pipeline_mode = #tpu.pipeline_mode<synchronous>, transform_indices = @transform_6, window_bounds = array<i64: 1, 128>}, {transform_indices = @transform_7, window_bounds = array<i64: 1, 256, 128>}]} {
    %c0 = arith.constant 0 : index
    %c0_0 = arith.constant 0 : index
    %0 = vector.load %arg2[%c0, %c0_0] : memref<128x128xf32, #tpu.memory_space<vmem>>, vector<128x128xf32>
    %c0_1 = arith.constant 0 : index
    %c0_2 = arith.constant 0 : index
    %1 = vector.load %arg3[%c0_1, %c0_2] : memref<128x128xf32, #tpu.memory_space<vmem>>, vector<128x128xf32>
    %c0_3 = arith.constant 0 : index
    %c0_4 = arith.constant 0 : index
    %2 = vector.load %arg4[%c0_3, %c0_4] : memref<1x128xf32, #tpu.memory_space<vmem>>, vector<1x128xf32>
    %c0_5 = arith.constant 0 : index
    %c0_6 = arith.constant 0 : index
    %3 = vector.load %arg5[%c0_5, %c0_6] : memref<1x128xf32, #tpu.memory_space<vmem>>, vector<1x128xf32>
    %c0_7 = arith.constant 0 : index
    %c0_8 = arith.constant 0 : index
    %4 = vector.load %arg6[%c0_7, %c0_8] : memref<1x128xf32, #tpu.memory_space<vmem>>, vector<1x128xf32>
    %c0_9 = arith.constant 0 : index
    %c0_10 = arith.constant 0 : index
    %5 = vector.load %arg7[%c0_9, %c0_10] : memref<1x128xf32, #tpu.memory_space<vmem>>, vector<1x128xf32>
    %c0_11 = arith.constant 0 : index
    %c0_12 = arith.constant 0 : index
    %c0_13 = arith.constant 0 : index
    %6 = vector.load %arg1[%c0_11, %c0_12, %c0_13] : memref<1x256x128xf32, #tpu.memory_space<vmem>>, vector<1x256x128xf32>
    %7 = vector.shape_cast %6 : vector<1x256x128xf32> to vector<256x128xf32>
    %8 = arith.mulf %7, %7 : vector<256x128xf32>
    %9 = tpu.concatenate %7, %8 in 0 : vector<256x128xf32>, vector<256x128xf32> -> vector<512x128xf32>
    %cst = arith.constant dense<0.000000e+00> : vector<512x128xf32>
    %10 = tpu.matmul %9, %0, %cst {dimension_numbers = #tpu.dot_dimension_numbers<[1], [0], [0], [1], [0, 0, 1, 1], [], []>} : vector<512x128xf32>, vector<128x128xf32>, vector<512x128xf32> -> vector<512x128xf32>
    %11 = vector.extract_strided_slice %10 {offsets = [0, 0], sizes = [256, 128], strides = [1, 1]} : vector<512x128xf32> to vector<256x128xf32>
    %12 = vector.extract_strided_slice %10 {offsets = [256, 0], sizes = [256, 128], strides = [1, 1]} : vector<512x128xf32> to vector<256x128xf32>
    %13 = arith.mulf %11, %11 : vector<256x128xf32>
    %14 = arith.subf %12, %13 : vector<256x128xf32>
    %cst_14 = arith.constant 0.000000e+00 : f32
    %15 = vector.broadcast %cst_14 : f32 to vector<256x128xf32>
    %16 = arith.maximumf %14, %15 : vector<256x128xf32>
    %cst_15 = arith.constant 1.06666672 : f32
    %17 = vector.broadcast %cst_15 : f32 to vector<256x128xf32>
    %18 = arith.mulf %16, %17 : vector<256x128xf32>
    %19 = math.sqrt %18 : vector<256x128xf32>
    %cst_16 = arith.constant 9.99999974E-6 : f32
    %20 = vector.broadcast %cst_16 : f32 to vector<256x128xf32>
    %21 = arith.addf %19, %20 : vector<256x128xf32>
    %22 = tpu.reciprocal %21 : vector<256x128xf32> -> vector<256x128xf32>
    %23 = arith.subf %7, %11 : vector<256x128xf32>
    %24 = arith.mulf %23, %22 : vector<256x128xf32>
    %25 = vector.broadcast %2 : vector<1x128xf32> to vector<256x128xf32>
    %26 = arith.mulf %24, %25 : vector<256x128xf32>
    %27 = vector.broadcast %3 : vector<1x128xf32> to vector<256x128xf32>
    %28 = arith.addf %26, %27 : vector<256x128xf32>
    %29 = vector.broadcast %4 : vector<1x128xf32> to vector<256x128xf32>
    %30 = arith.mulf %24, %29 : vector<256x128xf32>
    %31 = vector.broadcast %5 : vector<1x128xf32> to vector<256x128xf32>
    %32 = arith.addf %30, %31 : vector<256x128xf32>
    %cst_17 = arith.constant dense<0.000000e+00> : vector<128x128xf32>
    %33 = tpu.matmul %28, %32, %cst_17 {dimension_numbers = #tpu.dot_dimension_numbers<[0], [0], [1], [1], [0, 1, 1, 1], [], []>} : vector<256x128xf32>, vector<256x128xf32>, vector<128x128xf32> -> vector<128x128xf32>
    %34 = arith.mulf %33, %1 : vector<128x128xf32>
    %cst_18 = arith.constant dense<0.000000e+00> : vector<256x128xf32>
    %35 = tpu.matmul %7, %34, %cst_18 {dimension_numbers = #tpu.dot_dimension_numbers<[1], [0], [0], [1], [0, 0, 1, 1], [], []>} : vector<256x128xf32>, vector<128x128xf32>, vector<256x128xf32> -> vector<256x128xf32>
    %36 = arith.addf %7, %35 : vector<256x128xf32>
    %c0_19 = arith.constant 0 : index
    %c0_20 = arith.constant 0 : index
    %c0_21 = arith.constant 0 : index
    %37 = vector.load %arg8[%c0_19, %c0_20, %c0_21] : memref<1x256x128xf32, #tpu.memory_space<vmem>>, vector<1x256x128xf32>
    %38 = vector.shape_cast %37 : vector<1x256x128xf32> to vector<256x128xf32>
    %39 = vector.shape_cast %36 : vector<256x128xf32> to vector<1x256x128xf32>
    tpu.vector_store %arg8[%c0_19, %c0_20, %c0_21], %39 {strides = array<i32>} : memref<1x256x128xf32, #tpu.memory_space<vmem>>, vector<1x256x128xf32>,
    return
  }
  func.func @transform_0(%arg0: i32) -> (i32, i32, i32) {
    %c0_i32 = arith.constant 0 : i32
    %c0_i32_0 = arith.constant 0 : i32
    %c0_i32_1 = arith.constant 0 : i32
    return %arg0, %c0_i32, %c0_i32_0 : i32, i32, i32
  }
  func.func @transform_1(%arg0: i32) -> (i32, i32) {
    %c0_i32 = arith.constant 0 : i32
    %c0_i32_0 = arith.constant 0 : i32
    %c0_i32_1 = arith.constant 0 : i32
    return %c0_i32, %c0_i32_0 : i32, i32
  }
  func.func @transform_2(%arg0: i32) -> (i32, i32) {
    %c0_i32 = arith.constant 0 : i32
    %c0_i32_0 = arith.constant 0 : i32
    %c0_i32_1 = arith.constant 0 : i32
    return %c0_i32, %c0_i32_0 : i32, i32
  }
  func.func @transform_3(%arg0: i32) -> (i32, i32) {
    %c0_i32 = arith.constant 0 : i32
    %c0_i32_0 = arith.constant 0 : i32
    %c0_i32_1 = arith.constant 0 : i32
    return %c0_i32, %c0_i32_0 : i32, i32
  }
  func.func @transform_4(%arg0: i32) -> (i32, i32) {
    %c0_i32 = arith.constant 0 : i32
    %c0_i32_0 = arith.constant 0 : i32
    %c0_i32_1 = arith.constant 0 : i32
    return %c0_i32, %c0_i32_0 : i32, i32
  }
  func.func @transform_5(%arg0: i32) -> (i32, i32) {
    %c0_i32 = arith.constant 0 : i32
    %c0_i32_0 = arith.constant 0 : i32
    %c0_i32_1 = arith.constant 0 : i32
    return %c0_i32, %c0_i32_0 : i32, i32
  }
  func.func @transform_6(%arg0: i32) -> (i32, i32) {
    %c0_i32 = arith.constant 0 : i32
    %c0_i32_0 = arith.constant 0 : i32
    %c0_i32_1 = arith.constant 0 : i32
    return %c0_i32, %c0_i32_0 : i32, i32
  }
  func.func @transform_7(%arg0: i32) -> (i32, i32, i32) {
    %c0_i32 = arith.constant 0 : i32
    %c0_i32_0 = arith.constant 0 : i32
    %c0_i32_1 = arith.constant 0 : i32
    return %arg0, %c0_i32, %c0_i32_0 : i32, i32, i32
  }
}

</mosaic_0001>

<bundles_post_ra>
// kernel: tpu_custom_call.1
= control target key start
LH: loop header
LB: loop body
LE: loop exit
PB: predicated region body
PF: predicated region fallthrough
CT: control target
= control target key end

     0   :  { %s4877_s0 = inlined_call_operand.hbm [shape: f32[2,256,128], index: 0, kind: input, shape index: {}]   ;;  %s4878_s1 = inlined_call_operand.hbm [shape: f32[128,128], index: 1, kind: input, shape index: {}]   ;;  %s4879_s2 = inlined_call_operand.hbm [shape: f32[128,128], index: 2, kind: input, shape index: {}]   ;;  %s4880_s3 = inlined_call_operand.vmem [shape: f32[1,128], index: 3, kind: input, shape index: {}]   ;;  %s4881_s4 = inlined_call_operand.vmem [shape: f32[1,128], index: 4, kind: input, shape index: {}]   ;;  %s4882_s5 = inlined_call_operand.vmem [shape: f32[1,128], index: 5, kind: input, shape index: {}]   ;;  %s4883_s6 = inlined_call_operand.vmem [shape: f32[1,128], index: 6, kind: input, shape index: {}]   ;;  %s4884_s7 = inlined_call_operand.hbm [shape: f32[2,256,128], index: 7, kind: output, shape index: {}]  }
   0x1   :  { %4927 = sst [smem:[#allocation46_spill]] %s4878_s1 }
   0x2   :  { %12 = vsyncpa [#allocation3], 0 }
   0x3   :  { %14 = vsyncpa [#allocation3 + $0x1], 0 }
   0x4   :  { %15 = vsyncpa [#allocation6], 0 }
   0x5   :  { %16 = vsyncpa [#allocation4], 0 }
   0x6   :  { %18 = vsyncpa [#allocation4 + $0x1], 0  ;;  %s2922_s24 = smov 0   ;;  %s2924_s25 = smov 0  }
   0x7   :  { %s2926_s26 = smov 0   ;;  %s2928_s27 = smov 0  }
   0x8 LB: > { %s2943_s28 = sadd.s32 4294967295, %s2872_s27   ;;  %s2332_s29 = sadd.s32 4294967294, %s2872_s27   ;;  %s2872_s27 = sphi %s2928_s27, %s5092_s27   ;;  %s2868_s26 = sphi %s2926_s26, %s5091_s26   ;;  %s2864_s25 = sphi %s2924_s25, %s5090_s25   ;;  %s2860_s24 = sphi %s2922_s24, %s5089_s24  }
   0x9   : > { %p44_p0 = scmp.ne.s32.totalorder %s2864_s25, %s2860_s24  ;;  %p45_p1 = scmp.eq.s32.totalorder %s2943_s28, 0 }
   0xa   : > { %p194_p2 = scmp.eq.s32.totalorder %s2943_s28, 1  ;;  %p200_p3 = scmp.eq.s32.totalorder %s2332_s29, 1 }
   0xb   : > { %p2952_p4 = por %p45_p1, %p44_p0  ;;  %p2333_p5 = scmp.ge.s32.totalorder %s2872_s27, 1 }
   0xc   : > { %p2957_p6 = por %p200_p3, %p44_p0  ;;  %p207_p7 = scmp.lt.s32.totalorder %s2872_s27, 3 }
   0xd   : > { %s4930_s1 = sld [smem:[#allocation46_spill]]  ;;  %s2874_s13 = smov [#allocation5]  }
   0xe   : > { %p2965_p8 = pnand %p2333_p5, %p207_p7  ;;  %s220_s14 = sshll.u32 %s2874_s13, 4  ;;  %s221_s14 = int_to_ptr.vmem [resolvable:$true] %s220_s14 }
   0xf   : > { %s232_s17 = sshll.u32 %s4879_s2, 4  ;;  %s4885_s18 = smov 128   ;;  %s233_s17 = int_to_ptr.hbm [resolvable:$true] %s232_s17 }
  0x10   : > { %p2468_p9 = pneg %p2965_p8  ;;  %s4886_s19 = smov 8  }
  0x11   : > { %s2877_s20 = smov [#allocation7]   ;;  %s2984_s22 = sadd.s32 1, %s2872_s27  }
  0x12   : > { %p2469_p10 = pnand %p2468_p9, %p45_p1  ;;  %s234_s21 = sshll.u32 %s2877_s20, 4  ;;  %s235_s21 = int_to_ptr.vmem [resolvable:$true] %s234_s21 }
  0x13   : > { %s218_s11 = sshll.u32 %s4930_s1, 4  ;;  %s31_s23 = sadd.s32 1, %s2868_s26  ;;  %s219_s11 = int_to_ptr.hbm [resolvable:$true] %s218_s11 }
  0x14   : > { %2471 = dma.hbm_to_vmem [thread:$0]  (!%p2469_p10), %s219_s11, 2048, %s221_s14, [#allocation6], %s4885_s18, %s4885_s18, %s4886_s19  }
  0x15   : > { %2474 = dma.hbm_to_vmem [thread:$0]  (!%p2469_p10), %s233_s17, 2048, %s235_s21, [#allocation6], %s4885_s18, %s4885_s18, %s4886_s19  }
  0x16   : > { %s28_s29 = ssub.s32 %s2872_s27, %s2984_s22  ;;  %p38_p12 = scmp.ne.s32.totalorder %s2868_s26, %s2864_s25 }
  0x17   : > { %p29_p13 = scmp.eq.s32.totalorder %s28_s29, 0  ;;  %p39_p0 = scmp.eq.s32.totalorder %s2872_s27, 0 }
  0x18   : > { %p2994_p3 = por %p194_p2, %p38_p12  ;;  %p2485_p5 = scmp.lt.s32.totalorder %s2872_s27, 2 }
  0x19   : > { %s3000_s10 = scalar_select %p29_p13, %s2868_s26, %s31_s23  }
  0x1a   : > { %p40_p7 = por %p39_p0, %p38_p12  ;;  %s260_s11 = sand.u32 1, %s2868_s26  }
  0x1b   : > { %s2337_s13 = sshll.u32 %s260_s11, 8  ;;  %s2350_s14 = sshll.u32 %s2872_s27, 8 }
  0x1c   : > { %s269_s17 = scalar_lea.hbm %s4877_s0, %s2350_s14  ;;  %s264_s20 = scalar_lea.vmem [#allocation2], %s2337_s13 }
  0x1d   : > { %s272_s21 = sshll.u32 %s264_s20, 4  ;;  %s270_s29 = sshll.u32 %s269_s17, 4  ;;  %s273_s21 = int_to_ptr.vmem [resolvable:$true] %s272_s21  ;;  %s271_s29 = int_to_ptr.hbm [resolvable:$true] %s270_s29 }
  0x1e   : > { %p3007_p2 = pnand %p2485_p5, %p40_p7  ;;  %s261_s23 = scalar_lea.sflag [#allocation3], %s260_s11 }
  0x1f   : > { %s2772_s19 = sshra.s32 %s271_s29, 4  ;;  %s2779_s15 = scalar_lea.hbm %s4877_s0, 512  ;;  %s2773_s19 = int_to_ptr.hbm [resolvable:$true] %s2772_s19 }
  0x20   : > { %s2774_s1 = scalar_lea.hbm %s2773_s19, 256  ;;  %p2776_p10 = pneg %p3007_p2 }
  0x21   : > { %p2775_p9 = scmp.ne.s32.totalorder %s2773_s19, %s2774_s1  ;;  %p2780_p0 = scmp.lt.s32.totalorder %s2773_s19, %s4877_s0 }
  0x22   : > { %p2781_p5 = scmp.lt.s32.totalorder %s2779_s15, %s2774_s1 }
  0x23   : > { %p2777_p12 = pnand %p2776_p10, %p2775_p9 }
  0x24   : > { %p2782_p7 = por %p2781_p5, %p2780_p0 }
  0x25   : > { %p2778_p13 = pneg %p2777_p12 }
  0x27   : > { %p2783_p11 = pnand %p2782_p7, %p2778_p13 }
  0x29   : > { %2786 = shalt.err (!%p2783_p11)
}
  0x2a   : > { %s4934_s11 = smov 8   ;;  %s4935_s20 = smov 128  }
  0x2b   : > { %2478 = dma.hbm_to_vmem [thread:$0]  (!%p3007_p2), %s271_s29, 4096, %s273_s21, %s261_s23, %s4935_s20, %s4935_s20, %s4934_s11  }
  0x2c   : > { %284 = sbr.rel (%p2965_p8) target bundleno = 1315 (0x523), region = 48 }
  0x31   : > { %s3027_s14 = sand.u32 1, %s2864_s25  }
  0x32   : > { %s2341_s1 = sshll.u32 %s3027_s14, 8  ;;  %s287_s19 = scalar_lea.sflag [#allocation3], %s3027_s14 }
  0x33   : > { %s3033_s13 = scalar_lea.vmem [#allocation2], %s2341_s1 }
  0x34   : > { %2847 = dma.done.wait (%p2952_p4), %s287_s19, 4096  }
  0x35   : > { %2849 = vsyncadd (%p2952_p4), %s287_s19, 4294963200 }
  0x36   : > { %2851 = dma.done.wait (%p45_p1), [#allocation6], 4096  }
  0x37   : > { %2853 = vsyncadd (%p45_p1), [#allocation6], 4294963200  ;;  %v347_v0 = vld [vmem:[#allocation5 + $0x78] sm:$0xff]  ;;  %v346_v1 = vld [vmem:[#allocation5 + $0x70] sm:$0xff]  ;;  %s4767_s29 = scalar_lea.vmem [#allocation8], %s2341_s1  ;;  %s2351_s1 = sshll.u32 %s2943_s28, 8 }
  0x38   : > { %432 = vmatpush.msra.mxu0 %v347_v0  ;;  %2352 = vmatpush.msra.mxu1 %v347_v0  ;;  %v345_v2 = vld [vmem:[#allocation5 + $0x68] sm:$0xff]  ;;  %v344_v3 = vld [vmem:[#allocation5 + $0x60] sm:$0xff]  ;;  %v343_v4 = vld [vmem:[#allocation5 + $0x58] sm:$0xff]  ;;  %s2236_s15 = scalar_lea.hbm %s4884_s7, %s2351_s1  ;;  %s2237_s16 = sshll.u32 %s4767_s29, 4  ;;  %s2238_s16 = int_to_ptr.vmem [resolvable:$true] %s2237_s16 }
  0x39   : > { %2353 = vmatpush.msra.mxu2 %v347_v0  ;;  %v342_v5 = vld [vmem:[#allocation5 + $0x50] sm:$0xff]  ;;  %v341_v6 = vld [vmem:[#allocation5 + $0x48] sm:$0xff]  ;;  %v340_v7 = vld [vmem:[#allocation5 + $0x40] sm:$0xff]  ;;  %s2239_s17 = sshll.u32 %s2236_s15, 4  ;;  %s2225_s11 = scalar_lea.sflag [#allocation4], %s3027_s14  ;;  %s2240_s17 = int_to_ptr.hbm [resolvable:$true] %s2239_s17 }
  0x3a   : > { %433 = vmatpush.msra.mxu0 %v346_v1  ;;  %2354 = vmatpush.msra.mxu1 %v346_v1  ;;  %v339_v8 = vld [vmem:[#allocation5 + $0x38] sm:$0xff]  ;;  %v338_v9 = vld [vmem:[#allocation5 + $0x30] sm:$0xff]  ;;  %v337_v10 = vld [vmem:[#allocation5 + $0x28] sm:$0xff]  ;;  %s2816_s20 = sshra.s32 %s2240_s17, 4  ;;  %s2822_s12 = scalar_lea.hbm %s4884_s7, 512  ;;  %s2817_s20 = int_to_ptr.hbm [resolvable:$true] %s2816_s20 }
  0x3b   : > { %2355 = vmatpush.msra.mxu2 %v346_v1  ;;  %v336_v11 = vld [vmem:[#allocation5 + $0x20] sm:$0xff]  ;;  %v335_v12 = vld [vmem:[#allocation5 + $0x18] sm:$0xff]  ;;  %v334_v13 = vld [vmem:[#allocation5 + $0x10] sm:$0xff]  ;;  %s2818_s19 = scalar_lea.hbm %s2817_s20, 256  ;;  %p2823_p11 = scmp.lt.s32.totalorder %s2817_s20, %s4884_s7 }
  0x3c   : > { %434 = vmatpush.msra.mxu0 %v345_v2  ;;  %2356 = vmatpush.msra.mxu1 %v345_v2  ;;  %v3044_v14 = vld [vmem:[%s3033_s13] sm:$0xff]  ;;  %v333_v15 = vld [vmem:[#allocation5 + $0x8] sm:$0xff]  ;;  %v370_v20 = vld [vmem:[%s3033_s13 + $0x10] sm:$0xff]  ;;  %p2819_p1 = scmp.ne.s32.totalorder %s2817_s20, %s2818_s19  ;;  %p2824_p2 = scmp.lt.s32.totalorder %s2822_s12, %s2818_s19 }
  0x3d   : > { %2357 = vmatpush.msra.mxu2 %v345_v2  ;;  %4936 = vst [vmem:[#allocation12_spill] sm:$0xff] %v3044_v14  ;;  %v332_v16 = vld [vmem:[#allocation5] sm:$0xff]  ;;  %v400_v17 = vmul.f32 %v3044_v14, %v3044_v14  ;;  %v3050_v18 = vld [vmem:[%s3033_s13 + $0x8] sm:$0xff]  ;;  %v402_v21 = vmul.f32 %v370_v20, %v370_v20  ;;  %v371_v22 = vld [vmem:[%s3033_s13 + $0x18] sm:$0xff] }
  0x3e   : > { %435 = vmatpush.msra.mxu0 %v344_v3  ;;  %2358 = vmatpush.msra.mxu1 %v344_v3  ;;  %4937 = vst [vmem:[#allocation13_spill] sm:$0xff] %v3050_v18  ;;  %v401_v19 = vmul.f32 %v3050_v18, %v3050_v18  ;;  %v403_v23 = vmul.f32 %v371_v22, %v371_v22  ;;  %v372_v24 = vld [vmem:[%s3033_s13 + $0x20] sm:$0xff]  ;;  %v373_v26 = vld [vmem:[%s3033_s13 + $0x28] sm:$0xff]  ;;  %v374_v28 = vld [vmem:[%s3033_s13 + $0x30] sm:$0xff]  ;;  %p2820_p4 = pnand %p2819_p1, %p2994_p3  ;;  %p2825_p9 = por %p2824_p2, %p2823_p11 }
  0x3f   : > { %2359 = vmatpush.msra.mxu2 %v344_v3  ;;  %v404_v25 = vmul.f32 %v372_v24, %v372_v24  ;;  %v405_v27 = vmul.f32 %v373_v26, %v373_v26  ;;  %v406_v29 = vmul.f32 %v374_v28, %v374_v28  ;;  %v375_v30 = vld [vmem:[%s3033_s13 + $0x38] sm:$0xff]  ;;  %v376_v32 = vld [vmem:[%s3033_s13 + $0x40] sm:$0xff]  ;;  %v3063_v34 = vld [vmem:[%s3033_s13 + $0x48] sm:$0xff] }
  0x40   : > { %436 = vmatpush.msra.mxu0 %v343_v4  ;;  %2360 = vmatpush.msra.mxu1 %v343_v4  ;;  %v407_v31 = vmul.f32 %v375_v30, %v375_v30  ;;  %v408_v33 = vmul.f32 %v376_v32, %v376_v32  ;;  %v409_v35 = vmul.f32 %v3063_v34, %v3063_v34  ;;  %v3069_v36 = vld [vmem:[%s3033_s13 + $0x50] sm:$0xff]  ;;  %v3075_v38 = vld [vmem:[%s3033_s13 + $0x58] sm:$0xff]  ;;  %v384_v40 = vld [vmem:[%s3033_s13 + $0x80] sm:$0xff]  ;;  %p2821_p8 = pneg %p2820_p4 }
  0x41   : > { %2361 = vmatpush.msra.mxu2 %v343_v4  ;;  %v410_v37 = vmul.f32 %v3069_v36, %v3069_v36  ;;  %v411_v39 = vmul.f32 %v3075_v38, %v3075_v38  ;;  %v3082_v41 = vld [vmem:[%s3033_s13 + $0x60] sm:$0xff]  ;;  %v416_v42 = vmul.f32 %v384_v40, %v384_v40  ;;  %v3088_v44 = vld [vmem:[%s3033_s13 + $0x68] sm:$0xff]  ;;  %v3095_v48 = vld [vmem:[%s3033_s13 + $0x70] sm:$0xff] }
  0x42   : > { %437 = vmatpush.msra.mxu0 %v342_v5  ;;  %2362 = vmatpush.msra.mxu1 %v342_v5  ;;  %v412_v43 = vmul.f32 %v3082_v41, %v3082_v41  ;;  %v385_v45 = vld [vmem:[%s3033_s13 + $0x88] sm:$0xff]  ;;  %v413_v47 = vmul.f32 %v3088_v44, %v3088_v44  ;;  %v386_v49 = vld [vmem:[%s3033_s13 + $0x90] sm:$0xff]  ;;  %v414_v51 = vmul.f32 %v3095_v48, %v3095_v48  ;;  %v3102_v52 = vld [vmem:[%s3033_s13 + $0x78] sm:$0xff]  ;;  %p2826_p10 = pnand %p2825_p9, %p2821_p8 }
  0x43   : > { %2363 = vmatpush.msra.mxu2 %v342_v5  ;;  %v417_v46 = vmul.f32 %v385_v45, %v385_v45  ;;  %v418_v50 = vmul.f32 %v386_v49, %v386_v49  ;;  %v387_v53 = vld [vmem:[%s3033_s13 + $0x98] sm:$0xff]  ;;  %v415_v55 = vmul.f32 %v3102_v52, %v3102_v52  ;;  %v388_v56 = vld [vmem:[%s3033_s13 + $0xa0] sm:$0xff]  ;;  %v389_v60 = vld [vmem:[%s3033_s13 + $0xa8] sm:$0xff] }
  0x44   : > { %438 = vmatpush.msra.mxu0 %v341_v6  ;;  %2364 = vmatpush.msra.mxu1 %v341_v6  ;;  %v419_v54 = vmul.f32 %v387_v53, %v387_v53  ;;  %v420_v57 = vmul.f32 %v388_v56, %v388_v56  ;;  %v421_v61 = vmul.f32 %v389_v60, %v389_v60  ;;  %v390_v0 = vld [vmem:[%s3033_s13 + $0xb0] sm:$0xff]  ;;  %v391_v4 = vld [vmem:[%s3033_s13 + $0xb8] sm:$0xff] }
  0x45   : > { %2365 = vmatpush.msra.mxu2 %v341_v6  ;;  %v422_v1 = vmul.f32 %v390_v0, %v390_v0  ;;  %v423_v5 = vmul.f32 %v391_v4, %v391_v4 }
  0x46   : > { %439 = vmatpush.msra.mxu0 %v340_v7  ;;  %2366 = vmatpush.msra.mxu1 %v340_v7 }
  0x47   : > { %2367 = vmatpush.msra.mxu2 %v340_v7 }
  0x48   : > { %440 = vmatpush.msra.mxu0 %v339_v8  ;;  %2368 = vmatpush.msra.mxu1 %v339_v8 }
  0x49   : > { %2369 = vmatpush.msra.mxu2 %v339_v8  ;;  %v392_v8 = vld [vmem:[%s3033_s13 + $0xc0] sm:$0xff] }
  0x4a   : > { %441 = vmatpush.msra.mxu0 %v338_v9  ;;  %2370 = vmatpush.msra.mxu1 %v338_v9 }
  0x4b   : > { %2371 = vmatpush.msra.mxu2 %v338_v9  ;;  %v424_v9 = vmul.f32 %v392_v8, %v392_v8 }
  0x4c   : > { %442 = vmatpush.msra.mxu0 %v337_v10  ;;  %2372 = vmatpush.msra.mxu1 %v337_v10 }
  0x4d   : > { %2373 = vmatpush.msra.mxu2 %v337_v10 }
  0x4e   : > { %443 = vmatpush.msra.mxu0 %v336_v11  ;;  %2374 = vmatpush.msra.mxu1 %v336_v11 }
  0x4f   : > { %2375 = vmatpush.msra.mxu2 %v336_v11 }
  0x50   : > { %444 = vmatpush.msra.mxu0 %v335_v12  ;;  %2376 = vmatpush.msra.mxu1 %v335_v12 }
  0x51   : > { %2377 = vmatpush.msra.mxu2 %v335_v12  ;;  %v393_v12 = vld [vmem:[%s3033_s13 + $0xc8] sm:$0xff] }
  0x52   : > { %445 = vmatpush.msra.mxu0 %v334_v13  ;;  %2378 = vmatpush.msra.mxu1 %v334_v13 }
  0x53   : > { %2379 = vmatpush.msra.mxu2 %v334_v13  ;;  %v425_v13 = vmul.f32 %v393_v12, %v393_v12 }
  0x54   : > { %446 = vmatpush.msra.mxu0 %v333_v15  ;;  %2380 = vmatpush.msra.mxu1 %v333_v15 }
  0x55   : > { %2381 = vmatpush.msra.mxu2 %v333_v15 }
  0x56   : > { %447 = vmatpush.msra.mxu0 %v332_v16  ;;  %2382 = vmatpush.msra.mxu1 %v332_v16 }
  0x57   : > { %448 = vmatmul.f32.vlgmr.msra.gmra.mxu0 %v3044_v14  ;;  %544 = vmatmul.f32.vlgmr.msra.gmra.mxu1 %v400_v17  ;;  %v394_v17 = vld [vmem:[%s3033_s13 + $0xd0] sm:$0xff] }
  0x58   : > { %2383 = vmatpush.msra.mxu2 %v332_v16 }
  0x59   : > { %592 = vmatmul.f32.vlgmr.msra.gmra.mxu2 %v416_v42 }
  0x5f   : > { %451 = vmatmul.f32.gmra.mxu0 %v3050_v18  ;;  %547 = vmatmul.f32.gmra.mxu1 %v401_v19  ;;  %v426_v19 = vmul.f32 %v394_v17, %v394_v17 }
  0x61   : > { %595 = vmatmul.f32.gmra.mxu2 %v417_v46 }
  0x67   : > { %454 = vmatmul.f32.gmra.mxu0 %v370_v20  ;;  %550 = vmatmul.f32.gmra.mxu1 %v402_v21 }
  0x69   : > { %598 = vmatmul.f32.gmra.mxu2 %v418_v50 }
  0x6f   : > { %457 = vmatmul.f32.gmra.mxu0 %v371_v22  ;;  %553 = vmatmul.f32.gmra.mxu1 %v403_v23  ;;  %v395_v22 = vld [vmem:[%s3033_s13 + $0xd8] sm:$0xff] }
  0x70   : > { %v427_v23 = vmul.f32 %v395_v22, %v395_v22 }
  0x71   : > { %601 = vmatmul.f32.gmra.mxu2 %v419_v54 }
  0x77   : > { %460 = vmatmul.f32.gmra.mxu0 %v372_v24  ;;  %556 = vmatmul.f32.gmra.mxu1 %v404_v25 }
  0x79   : > { %604 = vmatmul.f32.gmra.mxu2 %v420_v57 }
  0x7f   : > { %463 = vmatmul.f32.gmra.mxu0 %v373_v26  ;;  %559 = vmatmul.f32.gmra.mxu1 %v405_v27  ;;  %v396_v26 = vld [vmem:[%s3033_s13 + $0xe0] sm:$0xff] }
  0x80   : > { %v428_v27 = vmul.f32 %v396_v26, %v396_v26 }
  0x81   : > { %607 = vmatmul.f32.gmra.mxu2 %v421_v61 }
  0x87   : > { %466 = vmatmul.f32.gmra.mxu0 %v374_v28  ;;  %562 = vmatmul.f32.gmra.mxu1 %v406_v29 }
  0x89   : > { %610 = vmatmul.f32.gmra.mxu2 %v422_v1 }
  0x8f   : > { %469 = vmatmul.f32.gmra.mxu0 %v375_v30  ;;  %565 = vmatmul.f32.gmra.mxu1 %v407_v31 }
  0x91   : > { %613 = vmatmul.f32.gmra.mxu2 %v423_v5 }
  0x97   : > { %472 = vmatmul.f32.gmra.mxu0 %v376_v32  ;;  %568 = vmatmul.f32.gmra.mxu1 %v408_v33  ;;  %v3154_v32 = vld [vmem:[%s3033_s13 + $0xe8] sm:$0xff] }
  0x98   : > { %v429_v33 = vmul.f32 %v3154_v32, %v3154_v32 }
  0x99   : > { %616 = vmatmul.f32.gmra.mxu2 %v424_v9 }
  0x9f   : > { %475 = vmatmul.f32.gmra.mxu0 %v3063_v34  ;;  %571 = vmatmul.f32.gmra.mxu1 %v409_v35 }
  0xa1   : > { %619 = vmatmul.f32.gmra.mxu2 %v425_v13 }
  0xa7   : > { %478 = vmatmul.f32.gmra.mxu0 %v3069_v36  ;;  %574 = vmatmul.f32.gmra.mxu1 %v410_v37 }
  0xa9   : > { %622 = vmatmul.f32.gmra.mxu2 %v426_v19 }
  0xaf   : > { %481 = vmatmul.f32.gmra.mxu0 %v3075_v38  ;;  %577 = vmatmul.f32.gmra.mxu1 %v411_v39  ;;  %v3161_v39 = vld [vmem:[%s3033_s13 + $0xf0] sm:$0xff] }
  0xb1   : > { %625 = vmatmul.f32.gmra.mxu2 %v427_v23 }
  0xb7   : > { %484 = vmatmul.f32.gmra.mxu0 %v3082_v41  ;;  %580 = vmatmul.f32.gmra.mxu1 %v412_v43 }
  0xb9   : > { %628 = vmatmul.f32.gmra.mxu2 %v428_v27 }
  0xbf   : > { %487 = vmatmul.f32.gmra.mxu0 %v3088_v44  ;;  %583 = vmatmul.f32.gmra.mxu1 %v413_v47 }
  0xc1   : > { %631 = vmatmul.f32.gmra.mxu2 %v429_v33 }
  0xc7   : > { %490 = vmatmul.f32.gmra.mxu0 %v3095_v48  ;;  %586 = vmatmul.f32.gmra.mxu1 %v414_v51 }
  0xcf   : > { %493 = vmatmul.f32.gmra.mxu0 %v3102_v52  ;;  %589 = vmatmul.f32.gmra.mxu1 %v415_v55 }
  0xd4   : > { %v3109_v58 = vpop.f32.mrf.mxu0  ;;  %v3111_v59 = vpop.f32.mrf.mxu1 }
  0xd5   : > { %4938 = vst [vmem:[#allocation14_spill] sm:$0xff] %v3109_v58  ;;  %v641_v61 = vmul.f32 %v3109_v58, %v3109_v58 }
  0xd7   : > { %496 = vmatmul.f32.gmra.mxu0 %v384_v40  ;;  %v430_v40 = vmul.f32 %v3161_v39, %v3161_v39  ;;  %v673_v13 = vsub.f32 %v3111_v59, %v641_v61 }
  0xd9   : > { %634 = vmatmul.f32.gmra.mxu2 %v430_v40  ;;  %v705_v33 = vmax.f32 %v673_v13, 0.0 }
  0xdc   : > { %v3114_v62 = vpop.f32.mrf.mxu0  ;;  %v3116_v63 = vpop.f32.mrf.mxu1 }
  0xdd   : > { %4939 = vst [vmem:[#allocation15_spill] sm:$0xff] %v3114_v62 }
  0xdf   : > { %499 = vmatmul.f32.gmra.mxu0 %v385_v45 }
  0xe4   : > { %v3119_v2 = vpop.f32.mrf.mxu0  ;;  %v3121_v3 = vpop.f32.mrf.mxu1 }
  0xe5   : > { %4940 = vst [vmem:[#allocation16_spill] sm:$0xff] %v3119_v2 }
  0xe7   : > { %502 = vmatmul.f32.gmra.mxu0 %v386_v49  ;;  %v3172_v49 = vld [vmem:[%s3033_s13 + $0xf8] sm:$0xff] }
  0xe8   : > { %v431_v50 = vmul.f32 %v3172_v49, %v3172_v49 }
  0xea   : > { %637 = vmatmul.f32.gmra.mxu2 %v431_v50 }
  0xec   : > { %v3124_v6 = vpop.f32.mrf.mxu0  ;;  %v3126_v7 = vpop.f32.mrf.mxu1 }
  0xed   : > { %4941 = vst [vmem:[#allocation17_spill] sm:$0xff] %v3124_v6 }
  0xef   : > { %505 = vmatmul.f32.gmra.mxu0 %v387_v53 }
  0xf4   : > { %v3129_v10 = vpop.f32.mrf.mxu0  ;;  %v3131_v11 = vpop.f32.mrf.mxu1 }
  0xf5   : > { %4942 = vst [vmem:[#allocation18_spill] sm:$0xff] %v3129_v10 }
  0xf7   : > { %508 = vmatmul.f32.gmra.mxu0 %v388_v56 }
  0xfc   : > { %v3134_v15 = vpop.f32.mrf.mxu0  ;;  %v3136_v16 = vpop.f32.mrf.mxu1 }
  0xfd   : > { %4943 = vst [vmem:[#allocation19_spill] sm:$0xff] %v3134_v15 }
  0xff   : > { %511 = vmatmul.f32.gmra.mxu0 %v389_v60 }
 0x104   : > { %v3139_v20 = vpop.f32.mrf.mxu0  ;;  %v3141_v21 = vpop.f32.mrf.mxu1 }
 0x105   : > { %4944 = vst [vmem:[#allocation20_spill] sm:$0xff] %v3139_v20  ;;  %v647_v27 = vmul.f32 %v3139_v20, %v3139_v20 }
 0x107   : > { %514 = vmatmul.f32.gmra.mxu0 %v390_v0 }
 0x10c   : > { %v3144_v24 = vpop.f32.mrf.mxu0  ;;  %v3146_v25 = vpop.f32.mrf.mxu1 }
 0x10d   : > { %4945 = vst [vmem:[#allocation21_spill] sm:$0xff] %v3144_v24 }
 0x10f   : > { %517 = vmatmul.f32.gmra.mxu0 %v391_v4  ;;  %v643_v4 = vmul.f32 %v3119_v2, %v3119_v2 }
 0x111   : > { %v675_v19 = vsub.f32 %v3121_v3, %v643_v4 }
 0x113   : > { %v707_v3 = vmax.f32 %v675_v19, 0.0 }
 0x114   : > { %v3149_v28 = vpop.f32.mrf.mxu0  ;;  %v569_v29 = vpop.f32.mrf.mxu1 }
 0x115   : > { %4946 = vst [vmem:[#allocation22_spill] sm:$0xff] %v3149_v28  ;;  %v649_v30 = vmul.f32 %v3149_v28, %v3149_v28 }
 0x117   : > { %v681_v31 = vsub.f32 %v569_v29, %v649_v30  ;;  %520 = vmatmul.f32.gmra.mxu0 %v392_v8  ;;  %v648_v29 = vmul.f32 %v3144_v24, %v3144_v24 }
 0x119   : > { %v713_v50 = vmax.f32 %v681_v31, 0.0 }
 0x11c   : > { %v3158_v35 = vpop.f32.mrf.mxu0  ;;  %v572_v37 = vpop.f32.mrf.mxu1 }
 0x11d   : > { %v650_v47 = vmul.f32 %v3158_v35, %v3158_v35 }
 0x11f   : > { %523 = vmatmul.f32.gmra.mxu0 %v393_v12  ;;  %v682_v55 = vsub.f32 %v572_v37, %v650_v47  ;;  %v680_v47 = vsub.f32 %v3146_v25, %v648_v29  ;;  %v645_v25 = vmul.f32 %v3129_v10, %v3129_v10 }
 0x121   : > { %v714_v0 = vmax.f32 %v682_v55, 0.0  ;;  %v3225_v55 = vmul.f32 1.0666667, %v707_v3  ;;  %v712_v4 = vmax.f32 %v680_v47, 0.0 }
 0x123   : > { %4948 = vst [vmem:[#allocation24_spill] sm:$0xff] %v3225_v55 }
 0x124   : > { %v3165_v42 = vpop.f32.mrf.mxu0  ;;  %v575_v43 = vpop.f32.mrf.mxu1 }
 0x125   : > { %v651_v45 = vmul.f32 %v3165_v42, %v3165_v42 }
 0x127   : > { %526 = vmatmul.f32.gmra.mxu0 %v394_v17  ;;  %v683_v46 = vsub.f32 %v575_v43, %v651_v45  ;;  %v3194_v17 = vmul.f32 1.0666667, %v714_v0  ;;  %v679_v43 = vsub.f32 %v3141_v21, %v647_v27 }
 0x129   : > { %v715_v54 = vmax.f32 %v683_v46, 0.0  ;;  %vm884_vm0 = vcmp.eq.f32.partialorder %v3194_v17, inf  ;;  %vm886_vm9 = vcmp.eq.f32.partialorder %v3194_v17, 0.0 }
 0x12b   : > { %v3180_v60 = vmul.f32 1.0666667, %v715_v54  ;;  %v642_v54 = vmul.f32 %v3114_v62, %v3114_v62 }
 0x12c   : > { %v3176_v51 = vpop.f32.mrf.mxu0  ;;  %v578_v53 = vpop.f32.mrf.mxu1 }
 0x12d   : > { %v652_v56 = vmul.f32 %v3176_v51, %v3176_v51  ;;  %2531 = vrsqrt.f32 %v3180_v60  ;;  %vm896_vm1 = vcmp.eq.f32.partialorder %v3180_v60, inf  ;;  %vm898_vm2 = vcmp.eq.f32.partialorder %v3180_v60, 0.0 }
 0x12f   : > { %529 = vmatmul.f32.gmra.mxu0 %v395_v22  ;;  %v684_v57 = vsub.f32 %v578_v53, %v652_v56  ;;  %v644_v22 = vmul.f32 %v3124_v6, %v3124_v6  ;;  %v3217_v53 = vmul.f32 1.0666667, %v705_v33 }
 0x131   : > { %v716_v1 = vmax.f32 %v684_v57, 0.0  ;;  %v676_v37 = vsub.f32 %v3126_v7, %v644_v22  ;;  %4947 = vst [vmem:[#allocation23_spill] sm:$0xff] %v3217_v53  ;;  %v711_v57 = vmax.f32 %v679_v43, 0.0 }
 0x133   : > { %v3186_v5 = vmul.f32 1.0666667, %v716_v1  ;;  %v3205_v59 = vpop.eup %2531  ;;  %v708_v56 = vmax.f32 %v676_v37, 0.0  ;;  %v646_v1 = vmul.f32 %v3134_v15, %v3134_v15  ;;  %v3249_v29 = vmul.f32 1.0666667, %v711_v57 }
 0x134   : > { %v3188_v8 = vpop.f32.mrf.mxu0  ;;  %v581_v9 = vpop.f32.mrf.mxu1  ;;  %v890_v7 = vmul.f32 %v3205_v59, %v3180_v60 }
 0x135   : > { %v653_v12 = vmul.f32 %v3188_v8, %v3188_v8  ;;  %2533 = vrsqrt.f32 %v3186_v5  ;;  %v3244_v22 = vmul.f32 1.0666667, %v708_v56  ;;  %v678_v43 = vsub.f32 %v3136_v16, %v646_v1  ;;  %v3269_v16 = vpop.f32.mrf.mxu2 }
 0x136   : > { %2535 = vrsqrt.f32 %v3194_v17  ;;  %v891_v13 = vmul.f32 %v3205_v59, %v890_v7  ;;  %4950 = vst [vmem:[#allocation26_spill] sm:$0xff] %v3269_v16  ;;  %vm908_vm3 = vcmp.eq.f32.partialorder %v3186_v5, inf  ;;  %v911_v28 = vand.u32 2147483648, %v3186_v5 }
 0x137   : > { %v685_v23 = vsub.f32 %v581_v9, %v653_v12  ;;  %532 = vmatmul.f32.gmra.mxu0 %v396_v26  ;;  %v3236_v9 = vmul.f32 1.0666667, %v713_v50  ;;  %v674_v12 = vsub.f32 %v3116_v63, %v642_v54  ;;  %4949 = vst [vmem:[#allocation25_spill] sm:$0xff] %v3244_v22  ;;  %vm910_vm7 = vcmp.eq.f32.partialorder %v3186_v5, 0.0 }
 0x138   : > { %v892_v50 = vmul.f32 0.5, %v891_v13 }
 0x139   : > { %v717_v30 = vmax.f32 %v685_v23, 0.0  ;;  %v677_v23 = vsub.f32 %v3131_v11, %v645_v25  ;;  %v706_v47 = vmax.f32 %v674_v12, 0.0  ;;  %vm872_vm14 = vcmp.eq.f32.partialorder %v3236_v9, inf }
 0x13a   : > { %v893_v13 = vsub.f32 1.5, %v892_v50 }
 0x13b   : > { %v3208_v40 = vmul.f32 1.0666667, %v717_v30  ;;  %v3213_v46 = vpop.eup %2533  ;;  %v709_v25 = vmax.f32 %v677_v23, 0.0  ;;  %v3277_v12 = vmul.f32 1.0666667, %v706_v47 }
 0x13c   : > { %v3211_v26 = vpop.f32.mrf.mxu0  ;;  %v584_v45 = vpop.f32.mrf.mxu1  ;;  %v902_v61 = vmul.f32 %v3213_v46, %v3186_v5 }
 0x13d   : > { %2537 = vrsqrt.f32 %v3208_v40  ;;  %v654_v21 = vmul.f32 %v3211_v26, %v3211_v26  ;;  %v3230_v31 = vpop.eup %2535  ;;  %v3321_v20 = vpop.f32.mrf.mxu2  ;;  %vm920_vm4 = vcmp.eq.f32.partialorder %v3208_v40, inf  ;;  %vm922_vm8 = vcmp.eq.f32.partialorder %v3208_v40, 0.0 }
 0x13e   : > { %2539 = vrsqrt.f32 %v3217_v53  ;;  %v878_v27 = vmul.f32 %v3230_v31, %v3194_v17  ;;  %v903_v30 = vmul.f32 %v3213_v46, %v902_v61  ;;  %4956 = vst [vmem:[#allocation32_spill] sm:$0xff] %v3321_v20 }
 0x13f   : > { %535 = vmatmul.f32.gmra.mxu0 %v3154_v32  ;;  %v686_v0 = vsub.f32 %v584_v45, %v654_v21  ;;  %2541 = vrsqrt.f32 %v3225_v55  ;;  %v3259_v45 = vmul.f32 1.0666667, %v712_v4 }
 0x140   : > { %2543 = vrsqrt.f32 %v3236_v9  ;;  %v879_v7 = vmul.f32 %v3230_v31, %v878_v27  ;;  %v904_v57 = vmul.f32 0.5, %v903_v30  ;;  %v3285_v30 = vmul.f32 1.0666667, %v709_v25 }
 0x141   : > { %v718_v32 = vmax.f32 %v686_v0, 0.0  ;;  %v710_v0 = vmax.f32 %v678_v43, 0.0 }
 0x142   : > { %v880_v27 = vmul.f32 0.5, %v879_v7  ;;  %4953 = vst [vmem:[#allocation29_spill] sm:$0xff] %v3285_v30  ;;  %v894_v7 = vmul.f32 %v3205_v59, %v893_v13 }
 0x143   : > { %v3241_v19 = vpop.eup %2537  ;;  %v3254_v33 = vmul.f32 1.0666667, %v718_v32 }
 0x144   : > { %v914_v63 = vmul.f32 %v3241_v19, %v3208_v40  ;;  %v3256_v3 = vpop.f32.mrf.mxu0  ;;  %v587_v37 = vpop.f32.mrf.mxu1 }
 0x145   : > { %v655_v11 = vmul.f32 %v3256_v3, %v3256_v3  ;;  %2545 = vrsqrt.f32 %v3254_v33  ;;  %v3271_v56 = vpop.eup %2539  ;;  %vm932_vm5 = vcmp.eq.f32.partialorder %v3254_v33, inf  ;;  %vm934_vm6 = vcmp.eq.f32.partialorder %v3254_v33, 0.0 }
 0x146   : > { %v915_v54 = vmul.f32 %v3241_v19, %v914_v63  ;;  %2547 = vrsqrt.f32 %v3244_v22  ;;  %4951 = vst [vmem:[#allocation27_spill] sm:$0xff] %v3271_v56  ;;  %v3274_v61 = vpop.eup %2541 }
 0x147   : > { %v687_v21 = vsub.f32 %v587_v37, %v655_v11  ;;  %538 = vmatmul.f32.gmra.mxu0 %v3161_v39  ;;  %2549 = vrsqrt.f32 %v3249_v29  ;;  %4952 = vst [vmem:[#allocation28_spill] sm:$0xff] %v3274_v61  ;;  %v3279_v32 = vpop.eup %2543  ;;  %v770_v39 = vmul.f32 %v3271_v56, %v3217_v53  ;;  %v905_v37 = vsub.f32 1.5, %v904_v57 }
 0x148   : > { %2551 = vrsqrt.f32 %v3259_v45  ;;  %v916_v1 = vmul.f32 0.5, %v915_v54  ;;  %v3291_v54 = vmul.f32 1.0666667, %v710_v0  ;;  %v3311_v15 = vmul.f32 %v3274_v61, %v3225_v55 }
 0x149   : > { %v719_v4 = vmax.f32 %v687_v21, 0.0  ;;  %v3304_v0 = vmul.f32 %v3271_v56, %v770_v39  ;;  %v906_v59 = vmul.f32 %v3213_v46, %v905_v37  ;;  %v895_v46 = vmul.f32 %v894_v7, %v3180_v60 }
 0x14a   : > { %4955 = vst [vmem:[#allocation31_spill] sm:$0xff] %v3291_v54  ;;  %v917_v47 = vsub.f32 1.5, %v916_v1  ;;  %v866_v1 = vmul.f32 %v3279_v32, %v3236_v9 }
 0x14b   : > { %v3283_v23 = vmul.f32 1.0666667, %v719_v4  ;;  %v2546_v63 = vpop.eup %2545  ;;  %v881_v4 = vsub.f32 1.5, %v880_v27 }
 0x14c   : > { %v3287_v43 = vpop.f32.mrf.mxu0  ;;  %v3289_v11 = vpop.eup %2547  ;;  %v926_v50 = vmul.f32 %v2546_v63, %v3254_v33  ;;  %v918_v27 = vmul.f32 %v3241_v19, %v917_v47  ;;  %v907_v47 = vmul.f32 %v906_v59, %v3186_v5 }
 0x14d   : > { %4954 = vst [vmem:[#allocation30_spill] sm:$0xff] %v3289_v11  ;;  %2553 = vrsqrt.f32 %v3283_v23  ;;  %v590_v21 = vpop.f32.mrf.mxu1  ;;  %v3295_v10 = vpop.eup %2549  ;;  %v656_v25 = vmul.f32 %v3287_v43, %v3287_v43  ;;  %v3317_v39 = vmul.f32 %v3289_v11, %v3244_v22  ;;  %v882_v16 = vmul.f32 %v3230_v31, %v881_v4 }
 0x14e   : > { %2555 = vrsqrt.f32 %v3277_v12  ;;  %v3301_v57 = vpop.eup %2551  ;;  %v927_v6 = vmul.f32 %v2546_v63, %v926_v50  ;;  %v919_v31 = vmul.f32 %v918_v27, %v3208_v40  ;;  %vm944_vm10 = vcmp.eq.f32.partialorder %v3283_v23, inf }
 0x14f   : > { %541 = vmatmul.f32.gmra.mxu0 %v3172_v49  ;;  %2557 = vrsqrt.f32 %v3285_v30  ;;  %v688_v13 = vsub.f32 %v590_v21, %v656_v25  ;;  %v842_v49 = vmul.f32 %v3295_v10, %v3249_v29  ;;  %v854_v55 = vmul.f32 %v3301_v57, %v3259_v45 }
 0x150   : > { %2559 = vrsqrt.f32 %v3291_v54  ;;  %v928_v50 = vmul.f32 0.5, %v927_v6  ;;  %v867_v25 = vmul.f32 %v3279_v32, %v866_v1  ;;  %v899_v1 = vand.u32 2147483648, %v3180_v60 }
 0x151   : > { %v720_v37 = vmax.f32 %v688_v13, 0.0  ;;  %v843_v56 = vmul.f32 %v3295_v10, %v842_v49  ;;  %vm946_vm11 = vcmp.eq.f32.partialorder %v3283_v23, 0.0 }
 0x152   : > { %v929_v19 = vsub.f32 1.5, %v928_v50  ;;  %v897_v50 = vsel %vm896_vm1, %v3180_v60, %v895_v46  ;;  %v935_v46 = vand.u32 2147483648, %v3254_v33  ;;  %v887_v60 = vand.u32 2147483648, %v3194_v17 }
 0x153   : > { %v2554_v21 = vpop.eup %2553  ;;  %v3336_v24 = vmul.f32 1.0666667, %v720_v37 }
 0x154   : > { %v3331_v6 = vpop.eup %2555  ;;  %v938_v20 = vmul.f32 %v2554_v21, %v3283_v23  ;;  %v3338_v7 = vpop.f32.mrf.mxu0  ;;  %v930_v4 = vmul.f32 %v2546_v63, %v929_v19  ;;  %v909_v63 = vsel %vm908_vm3, %v3186_v5, %v907_v47 }
 0x155   : > { %4957 = vst [vmem:[#allocation33_spill] sm:$0xff] %v3331_v6  ;;  %v3343_v13 = vpop.eup %2557  ;;  %2561 = vrsqrt.f32 %v3336_v24  ;;  %vm956_vm12 = vcmp.eq.f32.partialorder %v3336_v24, inf  ;;  %vm958_vm13 = vcmp.eq.f32.partialorder %v3336_v24, 0.0 }
 0x156   : > { %4958 = vst [vmem:[#allocation34_spill] sm:$0xff] %v3338_v7  ;;  %v939_v59 = vmul.f32 %v2554_v21, %v938_v20  ;;  %v3348_v37 = vpop.eup %2559  ;;  %v883_v7 = vmul.f32 %v882_v16, %v3194_v17  ;;  %v931_v27 = vmul.f32 %v930_v4, %v3254_v33  ;;  %v921_v20 = vsel %vm920_vm4, %v3208_v40, %v919_v31  ;;  %v3369_v31 = vpop.f32.mrf.mxu2 }
 0x157   : > { %4959 = vst [vmem:[#allocation35_spill] sm:$0xff] %v3343_v13  ;;  %v900_v16 = vsel %vm898_vm2, %v899_v1, %v897_v50  ;;  %v923_v4 = vand.u32 2147483648, %v3208_v40  ;;  %v868_v40 = vmul.f32 0.5, %v867_v25 }
 0x158   : > { %v940_v19 = vmul.f32 0.5, %v939_v59  ;;  %v933_v22 = vsel %vm932_vm5, %v3254_v33, %v931_v27  ;;  %v885_v59 = vsel %vm884_vm0, %v3194_v17, %v883_v7  ;;  %4960 = vst [vmem:[#allocation36_spill] sm:$0xff] %v3369_v31  ;;  %v912_v33 = vsel %vm910_vm7, %v911_v28, %v909_v63 }
 0x159   : > { %v936_v47 = vsel %vm934_vm6, %v935_v46, %v933_v22  ;;  %v924_v50 = vsel %vm922_vm8, %v923_v4, %v921_v20  ;;  %v855_v22 = vmul.f32 %v3301_v57, %v854_v55  ;;  %v3382_v63 = vadd.f32 1e-05, %v912_v33 }
 0x15a   : > { %v941_v2 = vsub.f32 1.5, %v940_v19  ;;  %v3374_v19 = vadd.f32 1e-05, %v900_v16  ;;  %v3379_v7 = vadd.f32 1e-05, %v936_v47  ;;  %v888_v46 = vsel %vm886_vm9, %v887_v60, %v885_v59 }
 0x15b   : > { %v2562_v27 = vpop.eup %2561  ;;  %v3386_v20 = vadd.f32 1e-05, %v924_v50  ;;  %v818_v17 = vmul.f32 %v3343_v13, %v3285_v30  ;;  %v856_v25 = vmul.f32 0.5, %v855_v22  ;;  %v869_v47 = vsub.f32 1.5, %v868_v40 }
 0x15c   : > { %v942_v1 = vmul.f32 %v2554_v21, %v941_v2  ;;  %v3372_v5 = vpop.f32.mrf.mxu0  ;;  %v950_v49 = vmul.f32 %v2562_v27, %v3336_v24  ;;  %v947_v2 = vand.u32 2147483648, %v3283_v23  ;;  %2563 = vrcp.f32 %v3374_v19 }
 0x15d   : > { %4961 = vst [vmem:[#allocation37_spill] sm:$0xff] %v3372_v5  ;;  %2565 = vrcp.f32 %v3379_v7  ;;  %v3397_v33 = vadd.f32 1e-05, %v888_v46  ;;  %v830_v60 = vmul.f32 %v3348_v37, %v3291_v54  ;;  %v782_v22 = vmul.f32 %v3331_v6, %v3277_v12 }
 0x15e   : > { %v943_v28 = vmul.f32 %v942_v1, %v3283_v23  ;;  %v951_v21 = vmul.f32 %v2562_v27, %v950_v49  ;;  %2567 = vrcp.f32 %v3382_v63  ;;  %v844_v1 = vmul.f32 0.5, %v843_v56 }
 0x15f   : > { %2569 = vrcp.f32 %v3386_v20  ;;  %v795_v49 = vmul.f32 %v3274_v61, %v3311_v15  ;;  %v807_v56 = vmul.f32 %v3289_v11, %v3317_v39  ;;  %v857_v46 = vsub.f32 1.5, %v856_v25 }
 0x160   : > { %v945_v55 = vsel %vm944_vm10, %v3283_v23, %v943_v28  ;;  %v952_v16 = vmul.f32 0.5, %v951_v21  ;;  %v3414_v21 = vpop.f32.mrf.mxu2  ;;  %v819_v15 = vmul.f32 %v3343_v13, %v818_v17  ;;  %v3426_v28 = vmul.f32 0.5, %v3304_v0 }
 0x161   : > { %v948_v4 = vsel %vm946_vm11, %v947_v2, %v945_v55  ;;  %4963 = vst [vmem:[#allocation39_spill] sm:$0xff] %v3414_v21  ;;  %v831_v39 = vmul.f32 %v3348_v37, %v830_v60  ;;  %v3435_v17 = vmul.f32 0.5, %v795_v49  ;;  %v3441_v0 = vmul.f32 0.5, %v807_v56 }
 0x162   : > { %v3394_v59 = vadd.f32 1e-05, %v948_v4  ;;  %v953_v50 = vsub.f32 1.5, %v952_v16  ;;  %v3416_v55 = vpop.eup %2563  ;;  %v870_v4 = vmul.f32 %v3279_v32, %v869_v47  ;;  %v3433_v16 = vmul.f32 %v3331_v6, %v782_v22 }
 0x163   : > { %v3423_v23 = vpop.eup %2565  ;;  %v959_v32 = vand.u32 2147483648, %v3336_v24  ;;  %v858_v60 = vmul.f32 %v3301_v57, %v857_v46  ;;  %v3448_v22 = vmul.f32 0.5, %v819_v15  ;;  %v3453_v62 = vmul.f32 0.5, %v831_v39 }
 0x164   : > { %v3408_v40 = vpop.f32.mrf.mxu0  ;;  %2571 = vrcp.f32 %v3394_v59  ;;  %v954_v2 = vmul.f32 %v2562_v27, %v953_v50  ;;  %v845_v27 = vsub.f32 1.5, %v844_v1  ;;  %v3430_v50 = vpop.eup %2567  ;;  %v871_v49 = vmul.f32 %v870_v4, %v3236_v9 }
 0x165   : > { %4962 = vst [vmem:[#allocation38_spill] sm:$0xff] %v3408_v40  ;;  %2573 = vrcp.f32 %v3397_v33  ;;  %v3439_v47 = vpop.eup %2569  ;;  %v1368_v14 = vmul.f32 %v3423_v23, %v3379_v7  ;;  %v1350_v18 = vand.u32 2147483648, %v3382_v63  ;;  %vm1358_vm15 = vweird.f32 %v3386_v20 }
 0x166   : > { %v955_v25 = vmul.f32 %v954_v2, %v3336_v24  ;;  %v3456_v56 = vmul.f32 %v3295_v10, %v845_v27  ;;  %v1354_v10 = vmul.f32 %v3439_v47, %v3386_v20  ;;  %vm1344_vm0 = vweird.f32 %v3382_v63 }
 0x167   : > { %v1369_v15 = vsub.f32 1.0, %v1368_v14  ;;  %v1334_v14 = vand.u32 2147483647, %v3374_v19  ;;  %v3504_v30 = vor.u32 1.1754944e-38, %v1350_v18  ;;  %v1364_v18 = vand.u32 2147483648, %v3386_v20 }
 0x168   : > { %v957_v1 = vsel %vm956_vm12, %v3336_v24, %v955_v25  ;;  %v1326_v24 = vmul.f32 %v3416_v55, %v3374_v19  ;;  %v3490_v21 = vpop.f32.mrf.mxu2  ;;  %vm1331_vm2 = vweird.f32 %v3416_v55  ;;  %v1392_v5 = vand.u32 2147483648, %v3394_v59 }
 0x169   : > { %v960_v58 = vsel %vm958_vm13, %v959_v32, %v957_v1  ;;  %v1340_v32 = vmul.f32 %v3430_v50, %v3382_v63  ;;  %v3482_v1 = vsel %vm872_vm14, %v3236_v9, %v871_v49  ;;  %4965 = vst [vmem:[#allocation41_spill] sm:$0xff] %v3490_v21  ;;  %v1370_v21 = vmul.f32 %v3423_v23, %v1369_v15 }
 0x16a   : > { %v3446_v2 = vpop.eup %2571  ;;  %v3458_v57 = vadd.f32 1e-05, %v960_v58  ;;  %v3473_v58 = vmul.f32 %v858_v60, %v3259_v45  ;;  %v1327_v25 = vsub.f32 1.0, %v1326_v24  ;;  %vm1345_vm3 = vweird.f32 %v3430_v50 }
 0x16b   : > { %v3462_v46 = vpop.eup %2573  ;;  %v1382_v39 = vmul.f32 %v3446_v2, %v3394_v59  ;;  %v1341_v60 = vsub.f32 1.0, %v1340_v32  ;;  %vm1387_vm1 = vweird.f32 %v3446_v2  ;;  %vm1386_vm5 = vweird.f32 %v3394_v59 }
 0x16c   : > { %v3466_v4 = vpop.f32.mrf.mxu0  ;;  %2575 = vrcp.f32 %v3458_v57  ;;  %v1312_v31 = vmul.f32 %v3462_v46, %v3397_v33  ;;  %vm1317_vm4 = vweird.f32 %v3462_v46  ;;  %vm1373_vm6 = vweird.f32 %v3423_v23  ;;  %vm3529_vm8 = vmor %vm1386_vm5, %vm1387_vm1 }
 0x16d   : > { %4964 = vst [vmem:[#allocation40_spill] sm:$0xff] %v3466_v4  ;;  %v1383_v53 = vsub.f32 1.0, %v1382_v39  ;;  %v1355_v4 = vsub.f32 1.0, %v1354_v10  ;;  %v1362_v39 = vand.u32 2147483647, %v3386_v20  ;;  %v1328_v10 = vmul.f32 %v3416_v55, %v1327_v25 }
 0x16e   : > { %v1313_v32 = vsub.f32 1.0, %v1312_v31  ;;  %v1342_v25 = vmul.f32 %v3430_v50, %v1341_v60  ;;  %v1390_v31 = vand.u32 2147483647, %v3394_v59  ;;  %vm1330_vm7 = vweird.f32 %v3374_v19 }
 0x16f   : > { %v1384_v24 = vmul.f32 %v3446_v2, %v1383_v53  ;;  %v1356_v15 = vmul.f32 %v3439_v47, %v1355_v4  ;;  %v1371_v4 = vadd.f32 %v3423_v23, %v1370_v21  ;;  %v1378_v60 = vand.u32 2147483648, %v3379_v7 }
 0x170   : > { %vm1359_vm9 = vweird.f32 %v3439_v47  ;;  %vm1316_vm10 = vweird.f32 %v3397_v33  ;;  %vm874_vm11 = vcmp.eq.f32.partialorder %v3236_v9, 0.0  ;;  %vm1372_vm12 = vweird.f32 %v3379_v7  ;;  %v3544_v13 = vpop.f32.mrf.mxu2 }
 0x171   : > { %v1385_v53 = vadd.f32 %v3446_v2, %v1384_v24  ;;  %v1376_v21 = vand.u32 2147483647, %v3379_v7  ;;  %4969 = vst [vmem:[#allocation43_spill] sm:$0xff] %v3544_v13  ;;  %v1406_v61 = vand.u32 2147483648, %v3458_v57  ;;  %vm3549_vm13 = vmor %vm1372_vm12, %vm1373_vm6  ;;  %v1404_v49 = vand.u32 2147483647, %v3458_v57 }
 0x172   : > { %v2576_v6 = vpop.eup %2575  ;;  %vm1391_vm1 = vcmp.eq.f32.partialorder %v1390_v31, 8.507059e+37  ;;  %v1375_v7 = vsel %vm3549_vm13, %v3423_v23, %v1371_v4  ;;  %vm3558_vm5 = vcmp.eq.f32.partialorder %v1334_v14, 8.507059e+37  ;;  %vm3566_vm6 = vmor %vm1358_vm15, %vm1359_vm9  ;;  %v1329_v31 = vadd.f32 %v3416_v55, %v1328_v10 }
 0x173   : > { %v1396_v27 = vmul.f32 %v2576_v6, %v3458_v57  ;;  %v1389_v59 = vsel %vm3529_vm8, %v3446_v2, %v1385_v53  ;;  %v1343_v2 = vadd.f32 %v3430_v50, %v1342_v25  ;;  %vm1401_vm14 = vweird.f32 %v2576_v6  ;;  %vm3581_vm15 = vmor %vm1344_vm0, %vm1345_vm3 }
 0x174   : > { %v3510_v40 = vpop.f32.mrf.mxu0  ;;  %vm1400_vm8 = vweird.f32 %v3458_v57  ;;  %vm1377_vm12 = vcmp.eq.f32.partialorder %v1376_v21, 8.507059e+37  ;;  %v1365_v54 = vor.u32 1.1754944e-38, %v1364_v18  ;;  %v1407_v23 = vor.u32 1.1754944e-38, %v1406_v61 }
 0x175   : > { %4966 = vst [vmem:[#allocation42_spill] sm:$0xff] %v3510_v40  ;;  %v1397_v24 = vsub.f32 1.0, %v1396_v27  ;;  %v1314_v40 = vmul.f32 %v3462_v46, %v1313_v32  ;;  %v1357_v27 = vadd.f32 %v3439_v47, %v1356_v15  ;;  %v1393_v32 = vor.u32 1.1754944e-38, %v1392_v5  ;;  %vm1402_vm9 = vmor %vm1400_vm8, %vm1401_vm14 }
 0x176   : > { %v1347_v57 = vsel %vm3581_vm15, %v3430_v50, %v1343_v2  ;;  %vm1405_vm13 = vcmp.eq.f32.partialorder %v1404_v49, 8.507059e+37  ;;  %v4979_v18 = vsub.f32 %v3095_v48, %v3256_v3  ;;  %vm1363_vm0 = vcmp.eq.f32.partialorder %v1362_v39, 8.507059e+37  ;;  %vm3599_vm14 = vmor %vm1330_vm7, %vm1331_vm2 }
 0x177   : > { %v1398_v11 = vmul.f32 %v2576_v6, %v1397_v24  ;;  %v1394_v15 = vsel %vm1391_vm1, %v1393_v32, %v1389_v59  ;;  %v1379_v24 = vor.u32 1.1754944e-38, %v1378_v60  ;;  %v1315_v10 = vadd.f32 %v3462_v46, %v1314_v40  ;;  %v3610_v40 = vld [vmem:[%s4882_s5] ss:$0 sm:$0xff]  ;;  %vm3628_vm2 = vmor %vm1316_vm10, %vm1317_vm4 }
 0x178   : > { %v1679_v4 = vmul.f32 %v4979_v18, %v1394_v15  ;;  %v4980_v21 = vand.u32 2147483647, %v3382_v63  ;;  %v4983_v48 = vsub.f32 %v3102_v52, %v3287_v43  ;;  %v3615_v63 = vld [vmem:[%s4880_s3] ss:$0 sm:$0xff]  ;;  %v4984_v50 = vsub.f32 %v3088_v44, %v3211_v26 }
 0x179   : > { %v1399_v5 = vadd.f32 %v2576_v6, %v1398_v11  ;;  %v1361_v11 = vsel %vm3566_vm6, %v3439_v47, %v1357_v27  ;;  %v1380_v14 = vsel %vm1377_vm12, %v1379_v24, %v1375_v7  ;;  %v1333_v52 = vsel %vm3599_vm14, %v3416_v55, %v1329_v31  ;;  %v3666_v24 = vpop.f32.mrf.mxu2 }
 0x17a   : > { %v1366_v59 = vsel %vm1363_vm0, %v1365_v54, %v1361_v11  ;;  %vm1349_vm3 = vcmp.eq.f32.partialorder %v4980_v21, 8.507059e+37  ;;  %v1678_v39 = vmul.f32 %v4984_v50, %v1380_v14  ;;  %vm848_vm7 = vcmp.eq.f32.partialorder %v3249_v29, inf }
 0x17b   : > { %v1403_v47 = vsel %vm1402_vm9, %v2576_v6, %v1399_v5  ;;  %v1322_v6 = vand.u32 2147483648, %v3397_v33  ;;  %v1352_v27 = vsel %vm1349_vm3, %v3504_v30, %v1347_v57  ;;  %v4987_v32 = vand.u32 2147483648, %v3374_v19  ;;  %v3653_v19 = vld [vmem:[%s4883_s6] ss:$0 sm:$0xff] }
 0x17c   : > { %v3571_v13 = vpop.f32.mrf.mxu0  ;;  %v1408_v60 = vsel %vm1405_vm13, %v1407_v23, %v1403_v47  ;;  %v1319_v26 = vsel %vm3628_vm2, %v3462_v46, %v1315_v10  ;;  %v4988_v30 = vand.u32 2147483647, %v3397_v33  ;;  %v4991_v2 = vand.u32 2147483648, %v3236_v9  ;;  %v3659_v33 = vld [vmem:[%s4881_s4] ss:$0 sm:$0xff] }
 0x17d   : > { %4976 = vst [vmem:[#allocation44_spill] sm:$0xff] %v3571_v13  ;;  %v1680_v3 = vmul.f32 %v4983_v48, %v1408_v60  ;;  %v1337_v44 = vor.u32 1.1754944e-38, %v4987_v32  ;;  %v1784_v5 = vmul.f32 %v3610_v40, %v1679_v4  ;;  %v4992_v9 = vsub.f32 %v3082_v41, %v3188_v8 }
 0x17e   : > { %vm3640_vm1 = vcmp.eq.f32.partialorder %v4988_v30, 8.507059e+37  ;;  %v876_v49 = vsel %vm874_vm11, %v4991_v2, %v3482_v1  ;;  %v1714_v15 = vmul.f32 %v3615_v63, %v1679_v4  ;;  %v4993_v25 = vsub.f32 %v3075_v38, %v3176_v51 }
 0x17f   : > { %v1785_v7 = vmul.f32 %v3610_v40, %v1680_v3  ;;  %v1715_v46 = vmul.f32 %v3615_v63, %v1680_v3  ;;  %v1677_v1 = vmul.f32 %v4992_v9, %v1366_v59  ;;  %v1338_v11 = vsel %vm3558_vm5, %v1337_v44, %v1333_v52 }
 0x180   : > { %v1676_v31 = vmul.f32 %v4993_v25, %v1352_v27  ;;  %v1323_v54 = vor.u32 1.1754944e-38, %v1322_v6  ;;  %v1783_v41 = vmul.f32 %v3610_v40, %v1678_v39  ;;  %v3678_v8 = vadd.f32 1e-05, %v876_v49 }
 0x181   : > { %v1820_v20 = vadd.f32 %v3653_v19, %v1785_v7  ;;  %v1750_v23 = vadd.f32 %v3659_v33, %v1715_v46  ;;  %v833_v57 = vsub.f32 1.5, %v3453_v62  ;;  %v847_v38 = vmul.f32 %v3456_v56, %v3249_v29  ;;  %v3723_v30 = vpop.f32.mrf.mxu2 }
 0x182   : > { %v1713_v51 = vmul.f32 %v3615_v63, %v1678_v39  ;;  %v1324_v53 = vsel %vm3640_vm1, %v1323_v54, %v1319_v26  ;;  %v1642_v10 = vsub.f32 %v3063_v34, %v3158_v35  ;;  %v1819_v47 = vadd.f32 %v3653_v19, %v1784_v5  ;;  %v4997_v54 = vld [vmem:[#allocation27_spill] sm:$0xff] }
 0x183   : > { %1901 = vmatpush.msra.mxu1 %v1820_v20  ;;  %v1782_v18 = vmul.f32 %v3610_v40, %v1677_v1  ;;  %v4995_v4 = vsub.f32 %v3069_v36, %v3165_v42  ;;  %vm860_vm4 = vcmp.eq.f32.partialorder %v3259_v45, inf  ;;  %v1749_v56 = vadd.f32 %v3659_v33, %v1714_v15  ;;  %v4996_v15 = vld [vmem:[#allocation31_spill] sm:$0xff] }
 0x184   : > { %v3675_v14 = vpop.f32.mrf.mxu0  ;;  %v1712_v60 = vmul.f32 %v3615_v63, %v1677_v1  ;;  %v1781_v59 = vmul.f32 %v3610_v40, %v1676_v31  ;;  %v1818_v34 = vadd.f32 %v3653_v19, %v1783_v41  ;;  %v1674_v35 = vmul.f32 %v1642_v10, %v1324_v53  ;;  %v4999_v53 = vld [vmem:[#allocation25_spill] sm:$0xff] }
 0x185   : > { %4994 = vst [vmem:[#allocation45_spill] sm:$0xff] %v3675_v14  ;;  %v1675_v62 = vmul.f32 %v4995_v4, %v1338_v11  ;;  %2387 = vmatpush.lsf.msrb.mxu1 %v1750_v23  ;;  %2577 = vrcp.f32 %v3678_v8  ;;  %v861_v21 = vsel %vm860_vm4, %v3259_v45, %v3473_v58  ;;  %v851_v36 = vand.u32 2147483648, %v3249_v29  ;;  %v5000_v4 = vld [vmem:[#allocation28_spill] sm:$0xff] }
 0x186   : > { %v863_v42 = vand.u32 2147483648, %v3259_v45  ;;  %v1748_v61 = vadd.f32 %v3659_v33, %v1713_v51  ;;  %v1711_v6 = vmul.f32 %v3615_v63, %v1676_v31  ;;  %v1817_v48 = vadd.f32 %v3653_v19, %v1782_v18 }
 0x187   : > { %1902 = vmatpush.msra.mxu1 %v1819_v47  ;;  %v1780_v3 = vmul.f32 %v3610_v40, %v1675_v62  ;;  %vm862_vm10 = vcmp.eq.f32.partialorder %v3259_v45, 0.0  ;;  %v849_v58 = vsel %vm848_vm7, %v3249_v29, %v847_v38  ;;  %v834_v50 = vmul.f32 %v3348_v37, %v833_v57 }
 0x188   : > { %v1747_v39 = vadd.f32 %v3659_v33, %v1712_v60  ;;  %v1710_v27 = vmul.f32 %v3615_v63, %v1675_v62  ;;  %v864_v52 = vsel %vm862_vm10, %v863_v42, %v861_v21  ;;  %v1816_v43 = vadd.f32 %v3653_v19, %v1781_v59  ;;  %v5002_v59 = vld [vmem:[#allocation35_spill] sm:$0xff] }
 0x189   : > { %2388 = vmatpush.lsf.msrb.mxu1 %v1749_v56  ;;  %v1779_v44 = vmul.f32 %v3610_v40, %v1674_v35  ;;  %v3718_v45 = vadd.f32 1e-05, %v864_v52  ;;  %vm850_vm11 = vcmp.eq.f32.partialorder %v3249_v29, 0.0  ;;  %v773_v26 = vsub.f32 1.5, %v3426_v28  ;;  %v5001_v56 = vld [vmem:[#allocation30_spill] sm:$0xff]  ;;  %v3774_v52 = vpop.f32.mrf.mxu2 }
 0x18a   : > { %v1746_v37 = vadd.f32 %v3659_v33, %v1711_v6  ;;  %v1709_v55 = vmul.f32 %v3615_v63, %v1674_v35  ;;  %v852_v2 = vsel %vm850_vm11, %v851_v36, %v849_v58  ;;  %v3727_v7 = vmul.f32 0.5, %v3433_v16  ;;  %v2660_v6 = vld [vmem:[%s3033_s13 + $0x40] sm:$0xff] }
 0x18b   : > { %1903 = vmatpush.msra.mxu1 %v1818_v34  ;;  %v2578_v49 = vpop.eup %2577  ;;  %v791_v46 = vand.u32 2147483648, %v3277_v12  ;;  %v1815_v29 = vadd.f32 %v3653_v19, %v1780_v3  ;;  %2579 = vrcp.f32 %v3718_v45  ;;  %v797_v28 = vsub.f32 1.5, %v3435_v17  ;;  %v3745_v17 = vld [vmem:[%s3033_s13 + $0x10] sm:$0xff] }
 0x18c   : > { %v3715_v32 = vpop.f32.mrf.mxu0  ;;  %v809_v5 = vsub.f32 1.5, %v3441_v0  ;;  %v1745_v9 = vadd.f32 %v3659_v33, %v1710_v27  ;;  %v1298_v1 = vmul.f32 %v2578_v49, %v3678_v8  ;;  %v821_v16 = vsub.f32 1.5, %v3448_v22  ;;  %v4998_v0 = vld [vmem:[#allocation16_spill] sm:$0xff] }
 0x18d   : > { %2389 = vmatpush.lsf.msrb.mxu1 %v1748_v61  ;;  %v835_v25 = vmul.f32 %v834_v50, %v4996_v15  ;;  %v1814_v31 = vadd.f32 %v3653_v19, %v1779_v44  ;;  %v3739_v11 = vadd.f32 1e-05, %v852_v2  ;;  %v3742_v20 = vmul.f32 %v4997_v54, %v773_v26  ;;  %v5004_v44 = vld [vmem:[#allocation29_spill] sm:$0xff] }
 0x18e   : > { %v1635_v23 = vsub.f32 %v3745_v17, %v4998_v0  ;;  %v1744_v41 = vadd.f32 %v3659_v33, %v1709_v55  ;;  %v1299_v57 = vsub.f32 1.0, %v1298_v1  ;;  %v785_v22 = vsub.f32 1.5, %v3727_v7 }
 0x18f   : > { %1904 = vmatpush.msra.mxu1 %v1817_v48  ;;  %v1306_v38 = vand.u32 2147483647, %v3678_v8  ;;  %v1308_v51 = vand.u32 2147483648, %v3678_v8  ;;  %2581 = vrcp.f32 %v3739_v11  ;;  %v815_v10 = vand.u32 2147483648, %v4999_v53  ;;  %v5003_v48 = vld [vmem:[#allocation22_spill] sm:$0xff] }
 0x190   : > { %vm836_vm5 = vcmp.eq.f32.partialorder %v4996_v15, inf  ;;  %v1300_v47 = vmul.f32 %v2578_v49, %v1299_v57  ;;  %vm1303_vm6 = vweird.f32 %v2578_v49  ;;  %v3757_v62 = vmul.f32 %v5000_v4, %v797_v28  ;;  %v5006_v57 = vld [vmem:[#allocation34_spill] sm:$0xff] }
 0x191   : > { %2390 = vmatpush.lsf.msrb.mxu1 %v1747_v39  ;;  %v2580_v18 = vpop.eup %2579  ;;  %v810_v60 = vmul.f32 %v5001_v56, %v809_v5  ;;  %v822_v34 = vmul.f32 %v5002_v59, %v821_v16  ;;  %v837_v21 = vsel %vm836_vm5, %v4996_v15, %v835_v25  ;;  %v839_v36 = vand.u32 2147483648, %v4996_v15  ;;  %v2661_v5 = vld [vmem:[%s3033_s13 + $0x38] sm:$0xff] }
 0x192   : > { %v1301_v42 = vadd.f32 %v2578_v49, %v1300_v47  ;;  %vm1302_vm8 = vweird.f32 %v3678_v8  ;;  %v1284_v61 = vmul.f32 %v2580_v18, %v3718_v45  ;;  %v1641_v3 = vsub.f32 %v2660_v6, %v5003_v48  ;;  %v5008_v48 = vld [vmem:[#allocation26_spill] sm:$0xff] }
 0x193   : > { %1905 = vmatpush.msra.mxu1 %v1816_v43  ;;  %vm1304_vm12 = vmor %vm1302_vm8, %vm1303_vm6  ;;  %vm1307_vm15 = vcmp.eq.f32.partialorder %v1306_v38, 8.507059e+37  ;;  %v1309_v58 = vor.u32 1.1754944e-38, %v1308_v51  ;;  %vm838_vm9 = vcmp.eq.f32.partialorder %v4996_v15, 0.0  ;;  %v823_v26 = vmul.f32 %v822_v34, %v5004_v44 }
 0x194   : > { %v3761_v35 = vpop.f32.mrf.mxu0  ;;  %v1305_v50 = vsel %vm1304_vm12, %v2578_v49, %v1301_v42  ;;  %v1285_v39 = vsub.f32 1.0, %v1284_v61  ;;  %v840_v8 = vsel %vm838_vm9, %v839_v36, %v837_v21  ;;  %v1292_v55 = vand.u32 2147483647, %v3718_v45  ;;  %v5007_v42 = vld [vmem:[#allocation37_spill] sm:$0xff] }
 0x195   : > { %2391 = vmatpush.lsf.msrb.mxu1 %v1746_v37  ;;  %v3772_v27 = vmul.f32 %v3761_v35, %v3761_v35  ;;  %v2582_v43 = vpop.eup %2581  ;;  %v1310_v37 = vsel %vm1307_vm15, %v1309_v58, %v1305_v50  ;;  %v1294_v2 = vand.u32 2147483648, %v3718_v45  ;;  %vm1289_vm13 = vweird.f32 %v2580_v18  ;;  %v5009_v50 = vld [vmem:[#allocation24_spill] sm:$0xff] }
 0x196   : > { %v1286_v28 = vmul.f32 %v2580_v18, %v1285_v39  ;;  %v1270_v49 = vmul.f32 %v2582_v43, %v3739_v11  ;;  %vm1288_vm0 = vweird.f32 %v3718_v45  ;;  %v3785_v15 = vadd.f32 1e-05, %v840_v8 }
 0x197   : > { %1906 = vmatpush.msra.mxu1 %v1815_v29  ;;  %v1673_v29 = vmul.f32 %v1641_v3, %v1310_v37  ;;  %v697_v16 = vsub.f32 %v3774_v52, %v3772_v27  ;;  %vm812_vm3 = vcmp.eq.f32.partialorder %v4999_v53, inf  ;;  %v657_v38 = vmul.f32 %v5006_v57, %v5006_v57  ;;  %vm1290_vm14 = vmor %vm1288_vm0, %vm1289_vm13 }
 0x198   : > { %v1287_v54 = vadd.f32 %v2580_v18, %v1286_v28  ;;  %vm1293_vm2 = vcmp.eq.f32.partialorder %v1292_v55, 8.507059e+37  ;;  %v1295_v51 = vor.u32 1.1754944e-38, %v1294_v2  ;;  %2583 = vrcp.f32 %v3785_v15  ;;  %v5010_v28 = vld [vmem:[#allocation20_spill] sm:$0xff] }
 0x199   : > { %2392 = vmatpush.lsf.msrb.mxu1 %v1745_v9  ;;  %v5005_v9 = vld [vmem:[#allocation21_spill] sm:$0xff]  ;;  %v1778_v25 = vmul.f32 %v3610_v40, %v1673_v29  ;;  %v1278_v4 = vand.u32 2147483647, %v3739_v11  ;;  %v1280_v56 = vand.u32 2147483648, %v3739_v11  ;;  %vm1275_vm7 = vweird.f32 %v2582_v43 }
 0x19a   : > { %v1640_v1 = vsub.f32 %v2661_v5, %v5005_v9  ;;  %v1291_v47 = vsel %vm1290_vm14, %v2580_v18, %v1287_v54  ;;  %vm824_vm1 = vcmp.eq.f32.partialorder %v5004_v44, inf  ;;  %v827_v36 = vand.u32 2147483648, %v5004_v44 }
 0x19b   : > { %1907 = vmatpush.msra.mxu1 %v1814_v31  ;;  %v1708_v31 = vmul.f32 %v3615_v63, %v1673_v29  ;;  %v1813_v45 = vadd.f32 %v3653_v19, %v1778_v25  ;;  %v1296_v34 = vsel %vm1293_vm2, %v1295_v51, %v1291_v47  ;;  %v658_v61 = vmul.f32 %v5007_v42, %v5007_v42  ;;  %v2662_v29 = vld [vmem:[%s3033_s13 + $0x30] sm:$0xff] }
 0x19c   : > { %v1672_v6 = vmul.f32 %v1640_v1, %v1296_v34  ;;  %v811_v18 = vmul.f32 %v810_v60, %v4999_v53  ;;  %v689_v3 = vsub.f32 %v5008_v48, %v657_v38  ;;  %vm1274_vm4 = vweird.f32 %v3739_v11  ;;  %v5011_v11 = vld [vmem:[#allocation32_spill] sm:$0xff] }
 0x19d   : > { %2393 = vmatpush.lsf.msrb.mxu1 %v1744_v41  ;;  %v1271_v41 = vsub.f32 1.0, %v1270_v49  ;;  %v1743_v59 = vadd.f32 %v3659_v33, %v1708_v31  ;;  %vm800_vm10 = vcmp.eq.f32.partialorder %v5009_v50, inf  ;;  %vm1276_vm11 = vmor %vm1274_vm4, %vm1275_vm7  ;;  %v1281_v37 = vor.u32 1.1754944e-38, %v1280_v56 }
 0x19e   : > { %v1777_v39 = vmul.f32 %v3610_v40, %v1672_v6  ;;  %v1707_v8 = vmul.f32 %v3615_v63, %v1672_v6  ;;  %v825_v55 = vsel %vm824_vm1, %v5004_v44, %v823_v26  ;;  %v2584_v2 = vpop.eup %2583  ;;  %v799_v60 = vmul.f32 %v3757_v62, %v5009_v50 }
 0x19f   : > { %v1272_v21 = vmul.f32 %v2582_v43, %v1271_v41  ;;  %1908 = vmatpush.msra.mxu1 %v1813_v45  ;;  %v1639_v49 = vsub.f32 %v2662_v29, %v5010_v28  ;;  %vm1279_vm5 = vcmp.eq.f32.partialorder %v1278_v4, 8.507059e+37  ;;  %v690_v9 = vsub.f32 %v5011_v11, %v658_v61  ;;  %v5012_v61 = vld [vmem:[#allocation33_spill] sm:$0xff]  ;;  %v3859_v11 = vld [vmem:[%s3033_s13 + $0x18] sm:$0xff] }
 0x1a0   : > { %v1812_v1 = vadd.f32 %v3653_v19, %v1777_v39  ;;  %vm826_vm6 = vcmp.eq.f32.partialorder %v5004_v44, 0.0  ;;  %v1742_v31 = vadd.f32 %v3659_v33, %v1707_v8  ;;  %v1256_v26 = vmul.f32 %v2584_v2, %v3785_v15 }
 0x1a1   : > { %2394 = vmatpush.lsf.msrb.mxu1 %v1743_v59  ;;  %v1273_v58 = vadd.f32 %v2582_v43, %v1272_v21  ;;  %v828_v41 = vsel %vm826_vm6, %v827_v36, %v825_v55  ;;  %v721_v38 = vmax.f32 %v689_v3, 0.0  ;;  %vm814_vm8 = vcmp.eq.f32.partialorder %v4999_v53, 0.0 }
 0x1a2   : > { %v3817_v62 = vadd.f32 1e-05, %v828_v41  ;;  %v1257_v45 = vsub.f32 1.0, %v1256_v26  ;;  %v803_v4 = vand.u32 2147483648, %v5009_v50  ;;  %v722_v56 = vmax.f32 %v690_v9, 0.0  ;;  %v5018_v9 = vld [vmem:[#allocation17_spill] sm:$0xff]  ;;  %v3865_v26 = vpop.f32.mrf.mxu2 }
 0x1a3   : > { %v1277_v5 = vsel %vm1276_vm11, %v2582_v43, %v1273_v58  ;;  %1909 = vmatpush.msra.mxu1 %v1812_v1  ;;  %v813_v43 = vsel %vm812_vm3, %v4999_v53, %v811_v18  ;;  %v1266_v59 = vand.u32 2147483648, %v3785_v15  ;;  %vm1261_vm12 = vweird.f32 %v2584_v2  ;;  %v2663_v53 = vld [vmem:[%s3033_s13 + $0x28] sm:$0xff]  ;;  %v2665_v41 = vld [vmem:[%s3033_s13 + $0x20] sm:$0xff] }
 0x1a4   : > { %v1282_v25 = vsel %vm1279_vm5, %v1281_v37, %v1277_v5  ;;  %v816_v47 = vsel %vm814_vm8, %v815_v10, %v813_v43  ;;  %2585 = vrcp.f32 %v3817_v62  ;;  %v1258_v21 = vmul.f32 %v2584_v2, %v1257_v45  ;;  %v5013_v10 = vld [vmem:[#allocation19_spill] sm:$0xff]  ;;  %v5016_v37 = vld [vmem:[#allocation40_spill] sm:$0xff] }
 0x1a5   : > { %v1671_v54 = vmul.f32 %v1639_v49, %v1282_v25  ;;  %2395 = vmatpush.lsf.msrb.mxu1 %v1742_v31  ;;  %v1264_v36 = vand.u32 2147483647, %v3785_v15  ;;  %v786_v6 = vmul.f32 %v5012_v61, %v785_v22  ;;  %vm788_vm15 = vcmp.eq.f32.partialorder %v3277_v12, inf  ;;  %v5015_v22 = vld [vmem:[#allocation38_spill] sm:$0xff]  ;;  %v5017_v49 = vld [vmem:[#allocation23_spill] sm:$0xff]  ;;  %v3863_v31 = vpop.f32.mrf.mxu0 }
 0x1a6   : > { %v1638_v18 = vsub.f32 %v2663_v53, %v5013_v10  ;;  %v3839_v3 = vadd.f32 1e-05, %v816_v47  ;;  %v3841_v58 = vmul.f32 1.0666667, %v721_v38  ;;  %v1259_v39 = vadd.f32 %v2584_v2, %v1258_v21  ;;  %v5019_v38 = vld [vmem:[#allocation18_spill] sm:$0xff]  ;;  %v5021_v45 = vld [vmem:[#allocation39_spill] sm:$0xff] }
 0x1a7   : > { %v1776_v44 = vmul.f32 %v3610_v40, %v1671_v54  ;;  %v1706_v51 = vmul.f32 %v3615_v63, %v1671_v54  ;;  %vm1260_vm9 = vweird.f32 %v3785_v15  ;;  %v801_v7 = vsel %vm800_vm10, %v5009_v50, %v799_v60 }
 0x1a8   : > { %5014 = vst [vmem:[#allocation31_spill] sm:$0xff] %v3841_v58  ;;  %v659_v8 = vmul.f32 %v5015_v22, %v5015_v22  ;;  %v660_v55 = vmul.f32 %v5016_v37, %v5016_v37  ;;  %vm1262_vm13 = vmor %vm1260_vm9, %vm1261_vm12  ;;  %v1267_v29 = vor.u32 1.1754944e-38, %v1266_v59  ;;  %2587 = vrcp.f32 %v3839_v3 }
 0x1a9   : > { %v1811_v34 = vadd.f32 %v3653_v19, %v1776_v44  ;;  %v1741_v48 = vadd.f32 %v3659_v33, %v1706_v51  ;;  %v3853_v28 = vmul.f32 1.0666667, %v722_v56  ;;  %v1263_v15 = vsel %vm1262_vm13, %v2584_v2, %v1259_v39 }
 0x1aa   : > { %vm1265_vm0 = vcmp.eq.f32.partialorder %v1264_v36, 8.507059e+37  ;;  %vm802_vm3 = vcmp.eq.f32.partialorder %v5009_v50, 0.0  ;;  %v2586_v60 = vpop.eup %2585  ;;  %v775_v5 = vmul.f32 %v3742_v20, %v5017_v49  ;;  %v1636_v1 = vsub.f32 %v3859_v11, %v5018_v9  ;;  %v5020_v20 = vld [vmem:[#allocation36_spill] sm:$0xff] }
 0x1ab   : > { %1910 = vmatpush.msra.mxu1 %v1811_v34  ;;  %v1268_v25 = vsel %vm1265_vm0, %v1267_v29, %v1263_v15  ;;  %v804_v54 = vsel %vm802_vm3, %v803_v4, %v801_v7  ;;  %v787_v2 = vmul.f32 %v786_v6, %v3277_v12  ;;  %v1637_v50 = vsub.f32 %v2665_v41, %v5019_v38  ;;  %v5022_v7 = vld [vmem:[#allocation42_spill] sm:$0xff] }
 0x1ac   : > { %v1670_v43 = vmul.f32 %v1638_v18, %v1268_v25  ;;  %v1242_v44 = vmul.f32 %v2586_v60, %v3817_v62  ;;  %vm776_vm14 = vcmp.eq.f32.partialorder %v5017_v49, inf  ;;  %2589 = vrsqrt.f32 %v3841_v58 }
 0x1ad   : > { %2396 = vmatpush.lsf.msrb.mxu1 %v1741_v48  ;;  %v691_v51 = vsub.f32 %v5020_v20, %v659_v8  ;;  %v692_v47 = vsub.f32 %v5021_v45, %v660_v55  ;;  %v3875_v56 = vadd.f32 1e-05, %v804_v54  ;;  %2591 = vrsqrt.f32 %v3853_v28 }
 0x1ae   : > { %v1775_v4 = vmul.f32 %v3610_v40, %v1670_v43  ;;  %v1705_v59 = vmul.f32 %v3615_v63, %v1670_v43  ;;  %v1243_v34 = vsub.f32 1.0, %v1242_v44  ;;  %v2588_v21 = vpop.eup %2587  ;;  %vm1247_vm2 = vweird.f32 %v2586_v60 }
 0x1af   : > { %v1250_v36 = vand.u32 2147483647, %v3817_v62  ;;  %v1252_v61 = vand.u32 2147483648, %v3817_v62  ;;  %2593 = vrcp.f32 %v3875_v56  ;;  %v1228_v10 = vmul.f32 %v2588_v21, %v3839_v3 }
 0x1b0   : > { %v1810_v6 = vadd.f32 %v3653_v19, %v1775_v4  ;;  %v1244_v53 = vmul.f32 %v2586_v60, %v1243_v34  ;;  %v789_v18 = vsel %vm788_vm15, %v3277_v12, %v787_v2  ;;  %v723_v48 = vmax.f32 %v691_v51, 0.0  ;;  %v5023_v51 = vld [vmem:[#allocation41_spill] sm:$0xff]  ;;  %v3908_v34 = vpop.f32.mrf.mxu2 }
 0x1b1   : > { %v724_v39 = vmax.f32 %v692_v47, 0.0  ;;  %v661_v8 = vmul.f32 %v5022_v7, %v5022_v7  ;;  %v1740_v55 = vadd.f32 %v3659_v33, %v1705_v59  ;;  %vm1246_vm7 = vweird.f32 %v3817_v62  ;;  %v3906_v59 = vpop.f32.mrf.mxu0 }
 0x1b2   : > { %1911 = vmatpush.msra.mxu1 %v1810_v6  ;;  %v1245_v29 = vadd.f32 %v2586_v60, %v1244_v53  ;;  %v1229_v15 = vsub.f32 1.0, %v1228_v10  ;;  %vm790_vm1 = vcmp.eq.f32.partialorder %v3277_v12, 0.0  ;;  %v3893_v25 = vpop.eup %2589  ;;  %vm1248_vm4 = vmor %vm1246_vm7, %vm1247_vm2  ;;  %v1253_v54 = vor.u32 1.1754944e-38, %v1252_v61 }
 0x1b3   : > { %v1236_v2 = vand.u32 2147483647, %v3839_v3  ;;  %v1238_v41 = vand.u32 2147483648, %v3839_v3  ;;  %v792_v38 = vsel %vm790_vm1, %v791_v46, %v789_v18  ;;  %v3900_v43 = vpop.eup %2591  ;;  %vm1251_vm10 = vcmp.eq.f32.partialorder %v1250_v36, 8.507059e+37 }
 0x1b4   : > { %2397 = vmatpush.lsf.msrb.mxu1 %v1740_v55  ;;  %v1249_v44 = vsel %vm1248_vm4, %v2586_v60, %v1245_v29  ;;  %v1230_v62 = vmul.f32 %v2588_v21, %v1229_v15  ;;  %vm1233_vm11 = vweird.f32 %v2588_v21  ;;  %v693_v45 = vsub.f32 %v5023_v51, %v661_v8 }
 0x1b5   : > { %v2594_v20 = vpop.eup %2593  ;;  %v1254_v47 = vsel %vm1251_vm10, %v1253_v54, %v1249_v44  ;;  %vm1232_vm5 = vweird.f32 %v3839_v3  ;;  %v3904_v4 = vadd.f32 1e-05, %v792_v38  ;;  %v777_v60 = vsel %vm776_vm14, %v5017_v49, %v775_v5 }
 0x1b6   : > { %v1669_v12 = vmul.f32 %v1637_v50, %v1254_v47  ;;  %v1231_v46 = vadd.f32 %v2588_v21, %v1230_v62  ;;  %v1214_v61 = vmul.f32 %v2594_v20, %v3875_v56  ;;  %vm1234_vm6 = vmor %vm1232_vm5, %vm1233_vm11  ;;  %vm1237_vm8 = vcmp.eq.f32.partialorder %v1236_v2, 8.507059e+37 }
 0x1b7   : > { %v1239_v36 = vor.u32 1.1754944e-38, %v1238_v41  ;;  %2595 = vrcp.f32 %v3904_v4  ;;  %vm778_vm12 = vcmp.eq.f32.partialorder %v5017_v49, 0.0  ;;  %v1222_v18 = vand.u32 2147483647, %v3875_v56 }
 0x1b8   : > { %v1774_v3 = vmul.f32 %v3610_v40, %v1669_v12  ;;  %v1704_v6 = vmul.f32 %v3615_v63, %v1669_v12  ;;  %v1235_v53 = vsel %vm1234_vm6, %v2588_v21, %v1231_v46  ;;  %v1215_v50 = vsub.f32 1.0, %v1214_v61  ;;  %v3943_v47 = vpop.f32.mrf.mxu2 }
 0x1b9   : > { %v1240_v10 = vsel %vm1237_vm8, %v1239_v36, %v1235_v53  ;;  %v1224_v8 = vand.u32 2147483648, %v3875_v56  ;;  %v5024_v5 = vand.u32 2147483648, %v5017_v49  ;;  %vm1219_vm15 = vweird.f32 %v2594_v20  ;;  %v3941_v51 = vpop.f32.mrf.mxu0 }
 0x1ba   : > { %v1809_v29 = vadd.f32 %v3653_v19, %v1774_v3  ;;  %v1668_v15 = vmul.f32 %v1636_v1, %v1240_v10  ;;  %v1216_v54 = vmul.f32 %v2594_v20, %v1215_v50  ;;  %v3928_v21 = vmul.f32 %v3893_v25, %v3841_v58 }
 0x1bb   : > { %v780_v55 = vsel %vm778_vm12, %v5024_v5, %v777_v60  ;;  %v3930_v2 = vmul.f32 1.0666667, %v723_v48  ;;  %v1739_v41 = vadd.f32 %v3659_v33, %v1704_v6  ;;  %vm1218_vm9 = vweird.f32 %v3875_v56 }
 0x1bc   : > { %v3933_v38 = vadd.f32 1e-05, %v780_v55  ;;  %1912 = vmatpush.msra.mxu1 %v1809_v29  ;;  %v1773_v49 = vmul.f32 %v3610_v40, %v1668_v15  ;;  %v1703_v44 = vmul.f32 %v3615_v63, %v1668_v15  ;;  %v1217_v62 = vadd.f32 %v2594_v20, %v1216_v54  ;;  %vm1220_vm13 = vmor %vm1218_vm9, %vm1219_vm15 }
 0x1bd   : > { %v2596_v11 = vpop.eup %2595  ;;  %v3938_v9 = vmul.f32 1.0666667, %v724_v39  ;;  %v725_v1 = vmax.f32 %v693_v45, 0.0  ;;  %v1225_v48 = vor.u32 1.1754944e-38, %v1224_v8  ;;  %vm1223_vm0 = vcmp.eq.f32.partialorder %v1222_v18, 8.507059e+37 }
 0x1be   : > { %2398 = vmatpush.lsf.msrb.mxu1 %v1739_v41  ;;  %2597 = vrcp.f32 %v3933_v38  ;;  %v1808_v12 = vadd.f32 %v3653_v19, %v1773_v49  ;;  %v1221_v46 = vsel %vm1220_vm13, %v2594_v20, %v1217_v62  ;;  %v1200_v61 = vmul.f32 %v2596_v11, %v3904_v4 }
 0x1bf   : > { %v662_v56 = vmul.f32 %v3571_v13, %v3571_v13  ;;  %v663_v39 = vmul.f32 %v3675_v14, %v3675_v14  ;;  %v1738_v45 = vadd.f32 %v3659_v33, %v1703_v44  ;;  %v1226_v60 = vsel %vm1223_vm0, %v1225_v48, %v1221_v46 }
 0x1c0   : > { %v3954_v36 = vmul.f32 %v3900_v43, %v3853_v28  ;;  %2599 = vrsqrt.f32 %v3930_v2  ;;  %1913 = vmatpush.msra.mxu1 %v1808_v12  ;;  %v1667_v20 = vmul.f32 %v1635_v23, %v1226_v60  ;;  %v1201_v3 = vsub.f32 1.0, %v1200_v61  ;;  %v5025_v23 = vld [vmem:[#allocation43_spill] sm:$0xff]  ;;  %v629_v12 = vpop.f32.mrf.mxu2 }
 0x1c1   : > { %v664_v6 = vmul.f32 %v3715_v32, %v3715_v32  ;;  %v666_v53 = vmul.f32 %v3863_v31, %v3863_v31  ;;  %v1208_v50 = vand.u32 2147483647, %v3904_v4  ;;  %v1210_v10 = vand.u32 2147483648, %v3904_v4  ;;  %v3979_v48 = vpop.f32.mrf.mxu0  ;;  %v5027_v60 = vld [vmem:[#allocation15_spill] sm:$0xff] }
 0x1c2   : > { %2399 = vmatpush.lsf.msrb.mxu1 %v1738_v45  ;;  %v1772_v18 = vmul.f32 %v3610_v40, %v1667_v20  ;;  %v1702_v8 = vmul.f32 %v3615_v63, %v1667_v20  ;;  %v1202_v5 = vmul.f32 %v2596_v11, %v1201_v3  ;;  %vm1205_vm3 = vweird.f32 %v2596_v11  ;;  %v5026_v45 = vld [vmem:[#allocation13_spill] sm:$0xff] }
 0x1c3   : > { %2601 = vrsqrt.f32 %v3938_v9  ;;  %v3969_v0 = vmul.f32 1.0666667, %v725_v1  ;;  %v694_v55 = vsub.f32 %v5025_v23, %v662_v56  ;;  %v695_v29 = vsub.f32 %v3666_v24, %v663_v39 }
 0x1c4   : > { %v2598_v17 = vpop.eup %2597  ;;  %v1807_v15 = vadd.f32 %v3653_v19, %v1772_v18  ;;  %v1203_v54 = vadd.f32 %v2596_v11, %v1202_v5  ;;  %vm1204_vm14 = vweird.f32 %v3904_v4  ;;  %v696_v49 = vsub.f32 %v3723_v30, %v664_v6 }
 0x1c5   : > { %v1186_v41 = vmul.f32 %v2598_v17, %v3933_v38  ;;  %v1737_v44 = vadd.f32 %v3659_v33, %v1702_v8  ;;  %v698_v62 = vsub.f32 %v3865_v26, %v666_v53  ;;  %vm1206_vm2 = vmor %vm1204_vm14, %vm1205_vm3  ;;  %v1211_v1 = vor.u32 1.1754944e-38, %v1210_v10 }
 0x1c6   : > { %v3981_v46 = vpop.eup %2599  ;;  %1914 = vmatpush.msra.mxu1 %v1807_v15  ;;  %v1207_v24 = vsel %vm1206_vm2, %v2596_v11, %v1203_v54  ;;  %vm1209_vm7 = vcmp.eq.f32.partialorder %v1208_v50, 8.507059e+37  ;;  %v669_v4 = vmul.f32 %v3979_v48, %v3979_v48  ;;  %v727_v56 = vmax.f32 %v695_v29, 0.0 }
 0x1c7   : > { %v1187_v61 = vsub.f32 1.0, %v1186_v41  ;;  %v729_v30 = vmax.f32 %v697_v16, 0.0  ;;  %v1212_v26 = vsel %vm1209_vm7, %v1211_v1, %v1207_v24  ;;  %v1196_v39 = vand.u32 2147483648, %v3933_v38  ;;  %v5029_v24 = vld [vmem:[#allocation12_spill] sm:$0xff] }
 0x1c8   : > { %2400 = vmatpush.lsf.msrb.mxu1 %v1737_v44  ;;  %v5028_v20 = vsub.f32 %v5026_v45, %v5027_v60  ;;  %vm1191_vm1 = vweird.f32 %v2598_v17  ;;  %v1194_v11 = vand.u32 2147483647, %v3933_v38  ;;  %v726_v50 = vmax.f32 %v694_v55, 0.0  ;;  %v632_v1 = vpop.f32.mrf.mxu2 }
 0x1c9   : > { %v1188_v6 = vmul.f32 %v2598_v17, %v1187_v61  ;;  %v3993_v53 = vpop.eup %2601  ;;  %v728_v10 = vmax.f32 %v696_v49, 0.0  ;;  %v730_v18 = vmax.f32 %v698_v62, 0.0  ;;  %vm1190_vm4 = vweird.f32 %v3933_v38  ;;  %v4011_v62 = vpop.f32.mrf.mxu0  ;;  %v5030_v61 = vld [vmem:[#allocation14_spill] sm:$0xff] }
 0x1ca   : > { %v1666_v3 = vmul.f32 %v5028_v20, %v1212_v26  ;;  %v701_v8 = vsub.f32 %v629_v12, %v669_v4  ;;  %v3998_v5 = vmul.f32 1.0666667, %v727_v56  ;;  %v4000_v23 = vmul.f32 1.0666667, %v729_v30  ;;  %vm1192_vm10 = vmor %vm1190_vm4, %vm1191_vm1 }
 0x1cb   : > { %v1189_v16 = vadd.f32 %v2598_v17, %v1188_v6  ;;  %v1197_v29 = vor.u32 1.1754944e-38, %v1196_v39  ;;  %v667_v15 = vmul.f32 %v3906_v59, %v3906_v59  ;;  %vm1195_vm11 = vcmp.eq.f32.partialorder %v1194_v11, 8.507059e+37 }
 0x1cc   : > { %v1771_v27 = vmul.f32 %v3610_v40, %v1666_v3  ;;  %v1701_v52 = vmul.f32 %v3615_v63, %v1666_v3  ;;  %v668_v38 = vmul.f32 %v3941_v51, %v3941_v51  ;;  %2603 = vrsqrt.f32 %v3969_v0 }
 0x1cd   : > { %v1193_v54 = vsel %vm1192_vm10, %v2598_v17, %v1189_v16  ;;  %v4008_v41 = vmul.f32 1.0666667, %v728_v10  ;;  %v4013_v12 = vmul.f32 1.0666667, %v730_v18  ;;  %v5031_v17 = vsub.f32 %v5029_v24, %v5030_v61 }
 0x1ce   : > { %v1806_v55 = vadd.f32 %v3653_v19, %v1771_v27  ;;  %v1736_v49 = vadd.f32 %v3659_v33, %v1701_v52  ;;  %v1198_v44 = vsel %vm1195_vm11, %v1197_v29, %v1193_v54  ;;  %v733_v56 = vmax.f32 %v701_v8, 0.0 }
 0x1cf   : > { %v1665_v4 = vmul.f32 %v5031_v17, %v1198_v44  ;;  %v670_v30 = vmul.f32 %v4011_v62, %v4011_v62  ;;  %v963_v26 = vmul.f32 %v3893_v25, %v3928_v21  ;;  %v4022_v39 = vmul.f32 1.0666667, %v726_v50 }
 0x1d0   : > { %1915 = vmatpush.msra.mxu1 %v1806_v55  ;;  %2605 = vrsqrt.f32 %v4000_v23  ;;  %v699_v45 = vsub.f32 %v3908_v34, %v667_v15  ;;  %v700_v3 = vsub.f32 %v3943_v47, %v668_v38  ;;  %v975_v6 = vmul.f32 %v3900_v43, %v3954_v36  ;;  %v635_v29 = vpop.f32.mrf.mxu2 }
 0x1d1   : > { %2607 = vrsqrt.f32 %v3998_v5  ;;  %v1770_v60 = vmul.f32 %v3610_v40, %v1665_v4  ;;  %v1700_v20 = vmul.f32 %v3615_v63, %v1665_v4  ;;  %v986_v21 = vmul.f32 %v3981_v46, %v3930_v2  ;;  %v4048_v8 = vpop.f32.mrf.mxu0 }
 0x1d2   : > { %2401 = vmatpush.lsf.msrb.mxu1 %v1736_v49  ;;  %2609 = vrsqrt.f32 %v4008_v41  ;;  %v702_v11 = vsub.f32 %v632_v1, %v670_v30  ;;  %v4037_v50 = vmul.f32 1.0666667, %v733_v56  ;;  %v4039_v40 = vpop.eup %2603  ;;  %v731_v47 = vmax.f32 %v699_v45, 0.0 }
 0x1d3   : > { %2611 = vrsqrt.f32 %v4013_v12  ;;  %v1805_v34 = vadd.f32 %v3653_v19, %v1770_v60  ;;  %v1735_v63 = vadd.f32 %v3659_v33, %v1700_v20  ;;  %v732_v10 = vmax.f32 %v700_v3, 0.0 }
 0x1d4   : > { %2613 = vrsqrt.f32 %v4022_v39  ;;  %v734_v36 = vmax.f32 %v702_v11, 0.0  ;;  %v964_v27 = vmul.f32 0.5, %v963_v26  ;;  %v976_v52 = vmul.f32 0.5, %v975_v6 }
 0x1d5   : > { %1916 = vmatpush.msra.mxu1 %v1805_v34  ;;  %v987_v16 = vmul.f32 %v3981_v46, %v986_v21  ;;  %2615 = vrsqrt.f32 %v4037_v50  ;;  %v671_v33 = vmul.f32 %v4048_v8, %v4048_v8  ;;  %v998_v54 = vmul.f32 %v3993_v53, %v3938_v9 }
 0x1d6   : > { %v4043_v18 = vpop.eup %2605  ;;  %v4046_v19 = vmul.f32 1.0666667, %v734_v36  ;;  %v4059_v38 = vmul.f32 1.0666667, %v731_v47  ;;  %v4066_v1 = vmul.f32 1.0666667, %v732_v10  ;;  %v1010_v30 = vmul.f32 %v4039_v40, %v3969_v0 }
 0x1d7   : > { %2402 = vmatpush.lsf.msrb.mxu1 %v1735_v63  ;;  %v4050_v15 = vpop.eup %2607  ;;  %v1058_v44 = vmul.f32 %v4043_v18, %v4000_v23  ;;  %v703_v24 = vsub.f32 %v635_v29, %v671_v33  ;;  %v965_v17 = vsub.f32 1.5, %v964_v27  ;;  %v977_v4 = vsub.f32 1.5, %v976_v52 }
 0x1d8   : > { %2403 = vllmr.16.mxu1  ;;  %v4055_v55 = vpop.eup %2609  ;;  %2617 = vrsqrt.f32 %v4046_v19  ;;  %v988_v56 = vmul.f32 0.5, %v987_v16  ;;  %v1034_v26 = vmul.f32 %v4050_v15, %v3998_v5  ;;  %v999_v3 = vmul.f32 %v3993_v53, %v998_v54 }
 0x1d9   : > { %v4062_v49 = vpop.eup %2611  ;;  %v1046_v45 = vmul.f32 %v4055_v55, %v4008_v41  ;;  %v735_v60 = vmax.f32 %v703_v24, 0.0  ;;  %2619 = vrsqrt.f32 %v4059_v38  ;;  %v1059_v34 = vmul.f32 %v4043_v18, %v1058_v44  ;;  %v4096_v16 = vpop.f32.mrf.mxu0 }
 0x1da   : > { %v4068_v61 = vpop.eup %2613  ;;  %v1070_v6 = vmul.f32 %v4062_v49, %v4013_v12  ;;  %2621 = vrsqrt.f32 %v4066_v1  ;;  %v4092_v36 = vmul.f32 %v3893_v25, %v965_v17  ;;  %v978_v10 = vmul.f32 %v3900_v43, %v977_v4  ;;  %v638_v44 = vpop.f32.mrf.mxu2 }
 0x1db   : > { %v4081_v21 = vpop.eup %2615  ;;  %v1022_v11 = vmul.f32 %v4068_v61, %v4022_v39  ;;  %v4087_v63 = vmul.f32 1.0666667, %v735_v60  ;;  %v989_v27 = vsub.f32 1.5, %v988_v56  ;;  %v1011_v52 = vmul.f32 %v4039_v40, %v1010_v30  ;;  %v4110_v56 = vld [vmem:[%s3033_s13 + $0xa0] sm:$0xff] }
 0x1dc   : > { %5032 = vst [vmem:[#allocation27_spill] sm:$0xff] %v4092_v36  ;;  %v1035_v29 = vmul.f32 %v4050_v15, %v1034_v26  ;;  %v1047_v33 = vmul.f32 %v4055_v55, %v1046_v45  ;;  %v1071_v24 = vmul.f32 %v4062_v49, %v1070_v6  ;;  %v1106_v43 = vmul.f32 %v4081_v21, %v4037_v50 }
 0x1dd   : > { %2623 = vrsqrt.f32 %v4087_v63  ;;  %v672_v17 = vmul.f32 %v4096_v16, %v4096_v16  ;;  %v1000_v4 = vmul.f32 0.5, %v999_v3  ;;  %5033 = vst [vmem:[#allocation16_spill] sm:$0xff] %v4110_v56  ;;  %v1023_v26 = vmul.f32 %v4068_v61, %v1022_v11  ;;  %v4154_v11 = vld [vmem:[%s3033_s13 + $0xb0] sm:$0xff] }
 0x1de   : > { %v4089_v47 = vpop.eup %2617  ;;  %v1060_v45 = vmul.f32 0.5, %v1059_v34  ;;  %v4118_v20 = vmul.f32 %v978_v10, %v3853_v28  ;;  %v990_v3 = vmul.f32 %v3981_v46, %v989_v27  ;;  %v1012_v22 = vmul.f32 0.5, %v1011_v52 }
 0x1df   : > { %v1118_v54 = vmul.f32 %v4089_v47, %v4046_v19  ;;  %v4115_v60 = vpop.eup %2619  ;;  %v704_v57 = vsub.f32 %v638_v44, %v672_v17  ;;  %v1036_v37 = vmul.f32 0.5, %v1035_v29  ;;  %v1048_v30 = vmul.f32 0.5, %v1047_v33 }
 0x1e0   : > { %5034 = vst [vmem:[#allocation25_spill] sm:$0xff] %v4118_v20  ;;  %v4122_v42 = vpop.eup %2621  ;;  %v1072_v34 = vmul.f32 0.5, %v1071_v24  ;;  %v1107_v36 = vmul.f32 %v4081_v21, %v1106_v43  ;;  %v1001_v7 = vsub.f32 1.5, %v1000_v4  ;;  %v1024_v6 = vmul.f32 0.5, %v1023_v26  ;;  %v4139_v26 = vld [vmem:[%s3033_s13 + $0xa8] sm:$0xff] }
 0x1e1   : > { %v1119_v25 = vmul.f32 %v4089_v47, %v1118_v54  ;;  %v736_v58 = vmax.f32 %v704_v57, 0.0  ;;  %v1061_v56 = vsub.f32 1.5, %v1060_v45  ;;  %v1082_v54 = vmul.f32 %v4115_v60, %v4059_v38  ;;  %5035 = vst [vmem:[#allocation28_spill] sm:$0xff] %v4139_v26 }
 0x1e2   : > { %v1094_v46 = vmul.f32 %v4122_v42, %v4066_v1  ;;  %v4135_v33 = vmul.f32 %v990_v3, %v3930_v2  ;;  %v1013_v57 = vsub.f32 1.5, %v1012_v22  ;;  %v1037_v44 = vsub.f32 1.5, %v1036_v37 }
 0x1e3   : > { %v2624_v10 = vpop.eup %2623  ;;  %v1120_v27 = vmul.f32 0.5, %v1119_v25  ;;  %v4132_v29 = vmul.f32 1.0666667, %v736_v58  ;;  %v1049_v24 = vsub.f32 1.5, %v1048_v30  ;;  %v1073_v43 = vsub.f32 1.5, %v1072_v34 }
 0x1e4   : > { %v1130_v52 = vmul.f32 %v2624_v10, %v4087_v63  ;;  %v1108_v17 = vmul.f32 0.5, %v1107_v36  ;;  %v1025_v45 = vsub.f32 1.5, %v1024_v6  ;;  %v1062_v58 = vmul.f32 %v4043_v18, %v1061_v56 }
 0x1e5   : > { %2625 = vrsqrt.f32 %v4132_v29  ;;  %v1083_v3 = vmul.f32 %v4115_v60, %v1082_v54  ;;  %v4146_v22 = vmul.f32 %v3993_v53, %v1001_v7  ;;  %v1095_v37 = vmul.f32 %v4122_v42, %v1094_v46 }
 0x1e6   : > { %v1131_v4 = vmul.f32 %v2624_v10, %v1130_v52  ;;  %v1121_v30 = vsub.f32 1.5, %v1120_v27  ;;  %v4150_v34 = vmul.f32 %v4039_v40, %v1013_v57  ;;  %v1038_v18 = vmul.f32 %v4050_v15, %v1037_v44 }
 0x1e7   : > { %v1050_v56 = vmul.f32 %v4055_v55, %v1049_v24  ;;  %v1074_v7 = vmul.f32 %v4062_v49, %v1073_v43  ;;  %v1109_v53 = vsub.f32 1.5, %v1108_v17  ;;  %v4162_v46 = vmul.f32 %v4068_v61, %v1025_v45  ;;  %v4184_v45 = vld [vmem:[%s3033_s13 + $0xc8] sm:$0xff] }
 0x1e8   : > { %v1132_v36 = vmul.f32 0.5, %v1131_v4  ;;  %v1063_v27 = vmul.f32 %v1062_v58, %v4000_v23  ;;  %v1084_v57 = vmul.f32 0.5, %v1083_v3  ;;  %v1096_v6 = vmul.f32 0.5, %v1095_v37 }
 0x1e9   : > { %v1122_v15 = vmul.f32 %v4089_v47, %v1121_v30  ;;  %v4169_v49 = vmul.f32 %v1038_v18, %v3998_v5  ;;  %vm1064_vm5 = vcmp.eq.f32.partialorder %v4000_v23, inf  ;;  %v4175_v24 = vmul.f32 %v1050_v56, %v4008_v41  ;;  %v4192_v18 = vld [vmem:[%s3033_s13 + $0xd0] sm:$0xff] }
 0x1ea   : > { %v1133_v54 = vsub.f32 1.5, %v1132_v36  ;;  %v1075_v43 = vmul.f32 %v1074_v7, %v4013_v12  ;;  %v1110_v17 = vmul.f32 %v4081_v21, %v1109_v53  ;;  %v1085_v3 = vsub.f32 1.5, %v1084_v57  ;;  %v4197_v7 = vld [vmem:[%s3033_s13 + $0xd8] sm:$0xff]  ;;  %v4206_v57 = vld [vmem:[%s3033_s13 + $0xe0] sm:$0xff] }
 0x1eb   : > { %v2626_v4 = vpop.eup %2625  ;;  %vm1076_vm6 = vcmp.eq.f32.partialorder %v4013_v12, inf  ;;  %v1097_v36 = vsub.f32 1.5, %v1096_v6  ;;  %v1123_v21 = vmul.f32 %v1122_v15, %v4046_v19  ;;  %vm1136_vm8 = vcmp.eq.f32.partialorder %v4087_v63, inf }
 0x1ec   : > { %v1134_v55 = vmul.f32 %v2624_v10, %v1133_v54  ;;  %v1142_v44 = vmul.f32 %v2626_v4, %v4132_v29  ;;  %v4181_v10 = vsel %vm1064_vm5, %v4000_v23, %v1063_v27  ;;  %v4203_v27 = vsel %vm1076_vm6, %v4013_v12, %v1075_v43 }
 0x1ed   : > { %v1111_v15 = vmul.f32 %v1110_v17, %v4037_v50  ;;  %vm1124_vm12 = vcmp.eq.f32.partialorder %v4046_v19, inf  ;;  %v1139_v52 = vand.u32 2147483648, %v4087_v63  ;;  %vm1088_vm15 = vcmp.eq.f32.partialorder %v4059_v38, inf }
 0x1ee   : > { %v1135_v47 = vmul.f32 %v1134_v55, %v4087_v63  ;;  %v1143_v37 = vmul.f32 %v2626_v4, %v1142_v44  ;;  %v1086_v44 = vmul.f32 %v4115_v60, %v1085_v3  ;;  %v1098_v43 = vmul.f32 %v4122_v42, %v1097_v36 }
 0x1ef   : > { %vm1138_vm9 = vcmp.eq.f32.partialorder %v4087_v63, 0.0  ;;  %vm1112_vm13 = vcmp.eq.f32.partialorder %v4037_v50, inf  ;;  %v1127_v17 = vand.u32 2147483648, %v4046_v19  ;;  %vm1114_vm0 = vcmp.eq.f32.partialorder %v4037_v50, 0.0 }
 0x1f0   : > { %v1144_v54 = vmul.f32 0.5, %v1143_v37  ;;  %v1137_v55 = vsel %vm1136_vm8, %v4087_v63, %v1135_v47  ;;  %v1125_v37 = vsel %vm1124_vm12, %v4046_v19, %v1123_v21  ;;  %v1113_v60 = vsel %vm1112_vm13, %v4037_v50, %v1111_v15 }
 0x1f1   : > { %v1140_v58 = vsel %vm1138_vm9, %v1139_v52, %v1137_v55  ;;  %vm1126_vm3 = vcmp.eq.f32.partialorder %v4046_v19, 0.0  ;;  %v1087_v42 = vmul.f32 %v1086_v44, %v4059_v38  ;;  %vm1090_vm14 = vcmp.eq.f32.partialorder %v4059_v38, 0.0 }
 0x1f2   : > { %v1145_v40 = vsub.f32 1.5, %v1144_v54  ;;  %v4224_v3 = vadd.f32 1e-05, %v1140_v58  ;;  %v1115_v63 = vand.u32 2147483648, %v4037_v50  ;;  %v1128_v21 = vsel %vm1126_vm3, %v1127_v17, %v1125_v37  ;;  %v4253_v37 = vld [vmem:[%s3033_s13 + $0xe8] sm:$0xff] }
 0x1f3   : > { %v1099_v52 = vmul.f32 %v1098_v43, %v4066_v1  ;;  %vm1148_vm2 = vcmp.eq.f32.partialorder %v4132_v29, inf  ;;  %vm1078_vm7 = vcmp.eq.f32.partialorder %v4013_v12, 0.0  ;;  %vm1150_vm1 = vcmp.eq.f32.partialorder %v4132_v29, 0.0 }
 0x1f4   : > { %v1146_v47 = vmul.f32 %v2626_v4, %v1145_v40  ;;  %v1151_v40 = vand.u32 2147483648, %v4132_v29  ;;  %2627 = vrcp.f32 %v4224_v3  ;;  %v4237_v4 = vadd.f32 1e-05, %v1128_v21  ;;  %v2674_v21 = vld [vmem:[%s3033_s13 + $0xf0] sm:$0xff] }
 0x1f5   : > { %v1116_v58 = vsel %vm1114_vm0, %v1115_v63, %v1113_v60  ;;  %v1091_v54 = vand.u32 2147483648, %v4059_v38  ;;  %vm1100_vm4 = vcmp.eq.f32.partialorder %v4066_v1, inf  ;;  %v1614_v43 = vand.u32 2147483647, %v4224_v3 }
 0x1f6   : > { %v1147_v36 = vmul.f32 %v1146_v47, %v4132_v29  ;;  %v4243_v55 = vadd.f32 1e-05, %v1116_v58  ;;  %2629 = vrcp.f32 %v4237_v4  ;;  %vm1102_vm10 = vcmp.eq.f32.partialorder %v4066_v1, 0.0 }
 0x1f7   : > { %v1103_v50 = vand.u32 2147483648, %v4066_v1  ;;  %v1089_v47 = vsel %vm1088_vm15, %v4059_v38, %v1087_v42  ;;  %v1101_v60 = vsel %vm1100_vm4, %v4066_v1, %v1099_v52  ;;  %v1602_v63 = vand.u32 2147483648, %v4237_v4 }
 0x1f8   : > { %v1149_v19 = vsel %vm1148_vm2, %v4132_v29, %v1147_v36  ;;  %v1616_v29 = vand.u32 2147483648, %v4224_v3  ;;  %2631 = vrcp.f32 %v4243_v55  ;;  %vm1610_vm11 = vweird.f32 %v4224_v3 }
 0x1f9   : > { %2404 = vmatmul.lmr.bf16.vlgmr.msra.gmra.16.mxu1  ;;  %v1152_v15 = vsel %vm1150_vm1, %v1151_v40, %v1149_v19  ;;  %v1663_v40 = vsub.f32 %v2674_v21, %v4048_v8  ;;  %v4267_v19 = vld [vmem:[%s3033_s13 + $0xf8] sm:$0xff]  ;;  %vm4274_vm5 = vcmp.eq.f32.partialorder %v1614_v43, 8.507059e+37  ;;  %v1586_v56 = vand.u32 2147483647, %v4243_v55 }
 0x1fa   : > { %v4245_v44 = vadd.f32 1e-05, %v1152_v15  ;;  %v2628_v36 = vpop.eup %2627  ;;  %v1600_v15 = vand.u32 2147483647, %v4237_v4  ;;  %v1617_v25 = vor.u32 1.1754944e-38, %v1616_v29  ;;  %vm1596_vm6 = vweird.f32 %v4237_v4 }
 0x1fb   : > { %v1606_v42 = vmul.f32 %v2628_v36, %v4224_v3  ;;  %v1104_v61 = vsel %vm1102_vm10, %v1103_v50, %v1101_v60  ;;  %v1092_v53 = vsel %vm1090_vm14, %v1091_v54, %v1089_v47  ;;  %v1603_v6 = vor.u32 1.1754944e-38, %v1602_v63 }
 0x1fc   : > { %2633 = vrcp.f32 %v4245_v44  ;;  %v1628_v8 = vand.u32 2147483647, %v4245_v44  ;;  %v1630_v21 = vand.u32 2147483648, %v4245_v44  ;;  %v2630_v58 = vpop.eup %2629  ;;  %vm1582_vm8 = vweird.f32 %v4243_v55 }
 0x1fd   : > { %v1607_v43 = vsub.f32 1.0, %v1606_v42  ;;  %v4287_v29 = vadd.f32 1e-05, %v1104_v61  ;;  %vm1624_vm12 = vweird.f32 %v4245_v44  ;;  %v1592_v30 = vmul.f32 %v2630_v58, %v4237_v4 }
 0x1fe   : > { %v2632_v17 = vpop.eup %2631  ;;  %vm4291_vm15 = vcmp.eq.f32.partialorder %v1600_v15, 8.507059e+37  ;;  %v1588_v1 = vand.u32 2147483648, %v4243_v55  ;;  %v4296_v38 = vadd.f32 1e-05, %v1092_v53  ;;  %v5040_v54 = vand.u32 2147483648, %v4013_v12 }
 0x1ff   : > { %v1608_v47 = vmul.f32 %v2628_v36, %v1607_v43  ;;  %vm1611_vm9 = vweird.f32 %v2628_v36  ;;  %v1578_v60 = vmul.f32 %v2632_v17, %v4243_v55  ;;  %vm4304_vm13 = vcmp.eq.f32.partialorder %v1586_v56, 8.507059e+37 }
 0x200   : > { %v1080_v61 = vsel %vm1078_vm7, %v5040_v54, %v4203_v27  ;;  %2635 = vrcp.f32 %v4287_v29  ;;  %vm4310_vm0 = vcmp.eq.f32.partialorder %v1628_v8, 8.507059e+37  ;;  %v1631_v42 = vor.u32 1.1754944e-38, %v1630_v21  ;;  %vm1612_vm14 = vmor %vm1610_vm11, %vm1611_vm9 }
 0x201   : > { %2405 = vmatmul.lmr.bf16.gmra.16.mxu1  ;;  %v1593_v12 = vsub.f32 1.0, %v1592_v30  ;;  %v1609_v27 = vadd.f32 %v2628_v36, %v1608_v47  ;;  %vm1597_vm3 = vweird.f32 %v2630_v58  ;;  %v1579_v43 = vsub.f32 1.0, %v1578_v60 }
 0x202   : > { %v2634_v50 = vpop.eup %2633  ;;  %v4314_v54 = vadd.f32 1e-05, %v1080_v61  ;;  %vm1583_vm2 = vweird.f32 %v2632_v17  ;;  %2637 = vrcp.f32 %v4296_v38  ;;  %v1572_v14 = vand.u32 2147483647, %v4287_v29  ;;  %vm1598_vm1 = vmor %vm1596_vm6, %vm1597_vm3 }
 0x203   : > { %v1620_v53 = vmul.f32 %v2634_v50, %v4245_v44  ;;  %v1594_v56 = vmul.f32 %v2630_v58, %v1593_v12  ;;  %v1613_v8 = vsel %vm1612_vm14, %v2628_v36, %v1609_v27  ;;  %v1580_v20 = vmul.f32 %v2632_v17, %v1579_v43  ;;  %vm1584_vm10 = vmor %vm1582_vm8, %vm1583_vm2 }
 0x204   : > { %v1574_v30 = vand.u32 2147483648, %v4287_v29  ;;  %vm1625_vm7 = vweird.f32 %v2634_v50  ;;  %v1618_v61 = vsel %vm4274_vm5, %v1617_v25, %v1613_v8  ;;  %v1589_v36 = vor.u32 1.1754944e-38, %v1588_v1 }
 0x205   : > { %v1621_v26 = vsub.f32 1.0, %v1620_v53  ;;  %v1595_v47 = vadd.f32 %v2630_v58, %v1594_v56  ;;  %v1695_v3 = vmul.f32 %v1663_v40, %v1618_v61  ;;  %v1581_v53 = vadd.f32 %v2632_v17, %v1580_v20  ;;  %vm1626_vm11 = vmor %vm1624_vm12, %vm1625_vm7  ;;  %v4340_v20 = vld [vmem:[%s4882_s5] ss:$0 sm:$0xff] }
 0x206   : > { %v4323_v60 = vpop.eup %2635  ;;  %vm1568_vm4 = vweird.f32 %v4287_v29  ;;  %2639 = vrcp.f32 %v4314_v54  ;;  %vm4345_vm5 = vcmp.eq.f32.partialorder %v1572_v14, 8.507059e+37  ;;  %vm1066_vm6 = vcmp.eq.f32.partialorder %v4000_v23, 0.0 }
 0x207   : > { %v1622_v21 = vmul.f32 %v2634_v50, %v1621_v26  ;;  %v1599_v27 = vsel %vm1598_vm1, %v2630_v58, %v1595_v47  ;;  %v1564_v26 = vmul.f32 %v4323_v60, %v4287_v29  ;;  %v1800_v25 = vmul.f32 %v4340_v20, %v1695_v3  ;;  %v4389_v47 = vld [vmem:[%s4883_s6] ss:$0 sm:$0xff] }
 0x208   : > { %v1604_v4 = vsel %vm4291_vm15, %v1603_v6, %v1599_v27  ;;  %v1585_v55 = vsel %vm1584_vm10, %v2632_v17, %v1581_v53  ;;  %v1575_v58 = vor.u32 1.1754944e-38, %v1574_v30  ;;  %v4349_v52 = vpop.eup %2637  ;;  %v5047_v1 = vsub.f32 %v4253_v37, %v4011_v62  ;;  %v4362_v6 = vld [vmem:[%s4880_s3] ss:$0 sm:$0xff] }
 0x209   : > { %2406 = vmatmul.lmr.bf16.gmra.16.mxu1  ;;  %v1623_v12 = vadd.f32 %v2634_v50, %v1622_v21  ;;  %v1590_v56 = vsel %vm4304_vm13, %v1589_v36, %v1585_v55  ;;  %v1565_v13 = vsub.f32 1.0, %v1564_v26  ;;  %v1730_v17 = vmul.f32 %v4362_v6, %v1695_v3  ;;  %v4397_v36 = vld [vmem:[%s4881_s4] ss:$0 sm:$0xff] }
 0x20a   : > { %v1694_v43 = vmul.f32 %v5047_v1, %v1604_v4  ;;  %vm1554_vm8 = vweird.f32 %v4296_v38  ;;  %v1558_v62 = vand.u32 2147483647, %v4296_v38  ;;  %v5049_v37 = vsub.f32 %v4267_v19, %v4096_v16 }
 0x20b   : > { %v1627_v44 = vsel %vm1626_vm11, %v2634_v50, %v1623_v12  ;;  %v5048_v50 = vsub.f32 %v4206_v57, %v3979_v48  ;;  %v1566_v30 = vmul.f32 %v4323_v60, %v1565_v13  ;;  %vm1052_vm12 = vcmp.eq.f32.partialorder %v4008_v41, inf }
 0x20c   : > { %v1632_v14 = vsel %vm4310_vm0, %v1631_v42, %v1627_v44  ;;  %v1799_v15 = vmul.f32 %v4340_v20, %v1694_v43  ;;  %v1729_v42 = vmul.f32 %v4362_v6, %v1694_v43  ;;  %vm1569_vm15 = vweird.f32 %v4323_v60  ;;  %v4382_v16 = vpop.eup %2639 }
 0x20d   : > { %v1693_v8 = vmul.f32 %v5048_v50, %v1590_v56  ;;  %v1696_v63 = vmul.f32 %v5049_v37, %v1632_v14  ;;  %v1550_v57 = vmul.f32 %v4349_v52, %v4296_v38  ;;  %v1560_v21 = vand.u32 2147483648, %v4296_v38  ;;  %vm1570_vm0 = vmor %vm1568_vm4, %vm1569_vm15 }
 0x20e   : > { %v1835_v3 = vadd.f32 %v4389_v47, %v1800_v25  ;;  %vm1040_vm9 = vcmp.eq.f32.partialorder %v3998_v5, inf  ;;  %v1765_v12 = vadd.f32 %v4397_v36, %v1730_v17  ;;  %v1567_v27 = vadd.f32 %v4323_v60, %v1566_v30 }
 0x20f   : > { %v1798_v48 = vmul.f32 %v4340_v20, %v1693_v8  ;;  %v1801_v19 = vmul.f32 %v4340_v20, %v1696_v63  ;;  %v1731_v61 = vmul.f32 %v4362_v6, %v1696_v63  ;;  %v1728_v53 = vmul.f32 %v4362_v6, %v1693_v8 }
 0x210   : > { %v1551_v26 = vsub.f32 1.0, %v1550_v57  ;;  %vm1555_vm13 = vweird.f32 %v4349_v52  ;;  %v1834_v55 = vadd.f32 %v4389_v47, %v1799_v15  ;;  %v1764_v44 = vadd.f32 %v4397_v36, %v1729_v42 }
 0x211   : > { %2407 = vmatmul.lmr.bf16.gmra.16.mxu1  ;;  %v1836_v4 = vadd.f32 %v4389_v47, %v1801_v19  ;;  %v1766_v25 = vadd.f32 %v4397_v36, %v1731_v61  ;;  %v1833_v1 = vadd.f32 %v4389_v47, %v1798_v48  ;;  %v1571_v43 = vsel %vm1570_vm0, %v4323_v60, %v1567_v27  ;;  %vm1556_vm3 = vmor %vm1554_vm8, %vm1555_vm13 }
 0x212   : > { %v1552_v56 = vmul.f32 %v4349_v52, %v1551_v26  ;;  %v1536_v13 = vmul.f32 %v4382_v16, %v4314_v54  ;;  %v1763_v14 = vadd.f32 %v4397_v36, %v1728_v53  ;;  %v1576_v17 = vsel %vm4345_vm5, %v1575_v58, %v1571_v43 }
 0x213   : > { %1966 = vmatpush.msra.mxu2 %v1836_v4  ;;  %v1544_v50 = vand.u32 2147483647, %v4314_v54  ;;  %v1546_v29 = vand.u32 2147483648, %v4314_v54  ;;  %v5050_v8 = vsub.f32 %v4197_v7, %v3941_v51  ;;  %v5051_v15 = vand.u32 2147483648, %v4000_v23 }
 0x214   : > { %v1553_v37 = vadd.f32 %v4349_v52, %v1552_v56  ;;  %v1537_v63 = vsub.f32 1.0, %v1536_v13  ;;  %vm1559_vm14 = vcmp.eq.f32.partialorder %v1558_v62, 8.507059e+37  ;;  %v1561_v40 = vor.u32 1.1754944e-38, %v1560_v21  ;;  %v4497_v56 = vld [vmem:[%s3033_s13 + $0xc0] sm:$0xff] }
 0x215   : > { %2423 = vmatpush.lsf.msrb.mxu2 %v1766_v25  ;;  %v1692_v60 = vmul.f32 %v5050_v8, %v1576_v17  ;;  %v1068_v42 = vsel %vm1066_vm6, %v5051_v15, %v4181_v10  ;;  %vm1541_vm2 = vweird.f32 %v4382_v16  ;;  %vm1028_vm7 = vcmp.eq.f32.partialorder %v4022_v39, inf }
 0x216   : > { %v4434_v51 = vadd.f32 1e-05, %v1068_v42  ;;  %v1557_v10 = vsel %vm1556_vm3, %v4349_v52, %v1553_v37  ;;  %v1538_v58 = vmul.f32 %v4382_v16, %v1537_v63  ;;  %vm1540_vm1 = vweird.f32 %v4314_v54 }
 0x217   : > { %1967 = vmatpush.msra.mxu2 %v1835_v3  ;;  %v1797_v7 = vmul.f32 %v4340_v20, %v1692_v60  ;;  %v1727_v23 = vmul.f32 %v4362_v6, %v1692_v60  ;;  %v1562_v38 = vsel %vm1559_vm14, %v1561_v40, %v1557_v10  ;;  %v1053_v62 = vsel %vm1052_vm12, %v4008_v41, %v4175_v24  ;;  %vm1542_vm11 = vmor %vm1540_vm1, %vm1541_vm2 }
 0x218   : > { %2641 = vrcp.f32 %v4434_v51  ;;  %v5052_v30 = vsub.f32 %v4192_v18, %v3906_v59  ;;  %v1539_v52 = vadd.f32 %v4382_v16, %v1538_v58  ;;  %vm4451_vm4 = vcmp.eq.f32.partialorder %v1544_v50, 8.507059e+37 }
 0x219   : > { %2408 = vmatmul.lmr.bf16.gmra.16.mxu1  ;;  %2424 = vmatpush.lsf.msrb.mxu2 %v1765_v12  ;;  %v1547_v21 = vor.u32 1.1754944e-38, %v1546_v29  ;;  %vm1016_vm10 = vcmp.eq.f32.partialorder %v3969_v0, inf  ;;  %v1832_v54 = vadd.f32 %v4389_v47, %v1797_v7  ;;  %v1762_v19 = vadd.f32 %v4397_v36, %v1727_v23 }
 0x21a   : > { %v1691_v48 = vmul.f32 %v5052_v30, %v1562_v38  ;;  %vm1054_vm5 = vcmp.eq.f32.partialorder %v4008_v41, 0.0  ;;  %v1041_v59 = vsel %vm1040_vm9, %v3998_v5, %v4169_v49  ;;  %v1543_v61 = vsel %vm1542_vm11, %v4382_v16, %v1539_v52 }
 0x21b   : > { %1968 = vmatpush.msra.mxu2 %v1834_v55  ;;  %v5055_v3 = vand.u32 2147483648, %v4008_v41  ;;  %v1027_v12 = vmul.f32 %v4162_v46, %v4022_v39  ;;  %v1548_v27 = vsel %vm4451_vm4, %v1547_v21, %v1543_v61  ;;  %vm1042_vm6 = vcmp.eq.f32.partialorder %v3998_v5, 0.0 }
 0x21c   : > { %v1796_v24 = vmul.f32 %v4340_v20, %v1691_v48  ;;  %v1726_v18 = vmul.f32 %v4362_v6, %v1691_v48  ;;  %v4479_v26 = vmul.f32 %v4146_v22, %v3938_v9  ;;  %v5056_v16 = vsub.f32 %v4184_v45, %v3863_v31 }
 0x21d   : > { %2425 = vmatpush.lsf.msrb.mxu2 %v1764_v44  ;;  %v1056_v53 = vsel %vm1054_vm5, %v5055_v3, %v1053_v62  ;;  %v5057_v4 = vand.u32 2147483648, %v3998_v5  ;;  %v1015_v44 = vmul.f32 %v4150_v34, %v3969_v0  ;;  %v1657_v31 = vsub.f32 %v4497_v56, %v3761_v35 }
 0x21e   : > { %v4474_v49 = vadd.f32 1e-05, %v1056_v53  ;;  %v1831_v41 = vadd.f32 %v4389_v47, %v1796_v24  ;;  %v1690_v46 = vmul.f32 %v5056_v16, %v1548_v27  ;;  %v2642_v55 = vpop.eup %2641  ;;  %v1761_v43 = vadd.f32 %v4397_v36, %v1726_v18 }
 0x21f   : > { %1969 = vmatpush.msra.mxu2 %v1833_v1  ;;  %v1044_v25 = vsel %vm1042_vm6, %v5057_v4, %v1041_v59  ;;  %v4490_v1 = vld [vmem:[%s3033_s13 + $0xb8] sm:$0xff]  ;;  %v1522_v45 = vmul.f32 %v2642_v55, %v4434_v51  ;;  %vm1526_vm8 = vweird.f32 %v4434_v51  ;;  %v1530_v13 = vand.u32 2147483647, %v4434_v51 }
 0x220   : > { %v1656_v22 = vsub.f32 %v4490_v1, %v3715_v32  ;;  %2643 = vrcp.f32 %v4474_v49  ;;  %v1795_v5 = vmul.f32 %v4340_v20, %v1690_v46  ;;  %v1725_v34 = vmul.f32 %v4362_v6, %v1690_v46 }
 0x221   : > { %2426 = vmatpush.lsf.msrb.mxu2 %v1763_v14  ;;  %2409 = vmatmul.lmr.bf16.gmra.16.mxu1  ;;  %v4506_v14 = vadd.f32 1e-05, %v1044_v25  ;;  %v1029_v17 = vsel %vm1028_vm7, %v4022_v39, %v1027_v12  ;;  %vm1004_vm12 = vcmp.eq.f32.partialorder %v3938_v9, inf  ;;  %v1523_v50 = vsub.f32 1.0, %v1522_v45 }
 0x222   : > { %v1830_v35 = vadd.f32 %v4389_v47, %v1795_v5  ;;  %v1532_v29 = vand.u32 2147483648, %v4434_v51  ;;  %v1516_v8 = vand.u32 2147483647, %v4474_v49  ;;  %v1760_v60 = vadd.f32 %v4397_v36, %v1725_v34 }
 0x223   : > { %1970 = vmatpush.msra.mxu2 %v1832_v54  ;;  %vm1527_vm15 = vweird.f32 %v2642_v55  ;;  %2645 = vrcp.f32 %v4506_v14  ;;  %vm1030_vm9 = vcmp.eq.f32.partialorder %v4022_v39, 0.0  ;;  %v1524_v37 = vmul.f32 %v2642_v55, %v1523_v50 }
 0x224   : > { %v5058_v63 = vand.u32 2147483648, %v4022_v39  ;;  %v1017_v42 = vsel %vm1016_vm10, %v3969_v0, %v1015_v44  ;;  %vm1018_vm13 = vcmp.eq.f32.partialorder %v3969_v0, 0.0  ;;  %vm992_vm0 = vcmp.eq.f32.partialorder %v3930_v2, inf  ;;  %vm1528_vm3 = vmor %vm1526_vm8, %vm1527_vm15 }
 0x225   : > { %2427 = vmatpush.lsf.msrb.mxu2 %v1762_v19  ;;  %v1518_v7 = vand.u32 2147483648, %v4474_v49  ;;  %v1504_v23 = vand.u32 2147483648, %v4506_v14  ;;  %v5059_v58 = vand.u32 2147483648, %v3969_v0  ;;  %v1525_v38 = vadd.f32 %v2642_v55, %v1524_v37 }
 0x226   : > { %v1032_v15 = vsel %vm1030_vm9, %v5058_v63, %v1029_v17  ;;  %v2644_v40 = vpop.eup %2643  ;;  %v1502_v30 = vand.u32 2147483647, %v4506_v14  ;;  %vm1531_vm14 = vcmp.eq.f32.partialorder %v1530_v13, 8.507059e+37  ;;  %v1533_v52 = vor.u32 1.1754944e-38, %v1532_v29 }
 0x227   : > { %1971 = vmatpush.msra.mxu2 %v1831_v41  ;;  %v4527_v10 = vadd.f32 1e-05, %v1032_v15  ;;  %v1020_v39 = vsel %vm1018_vm13, %v5059_v58, %v1017_v42  ;;  %v1508_v62 = vmul.f32 %v2644_v40, %v4474_v49  ;;  %vm1512_vm2 = vweird.f32 %v4474_v49 }
 0x228   : > { %v4533_v48 = vadd.f32 1e-05, %v1020_v39  ;;  %v1529_v0 = vsel %vm1528_vm3, %v2642_v55, %v1525_v38  ;;  %vm4540_vm7 = vcmp.eq.f32.partialorder %v1516_v8, 8.507059e+37  ;;  %v1519_v59 = vor.u32 1.1754944e-38, %v1518_v7 }
 0x229   : > { %2428 = vmatpush.lsf.msrb.mxu2 %v1761_v43  ;;  %2647 = vrcp.f32 %v4527_v10  ;;  %2410 = vmatmul.lmr.bf16.gmra.16.mxu1  ;;  %v1509_v57 = vsub.f32 1.0, %v1508_v62  ;;  %v2646_v54 = vpop.eup %2645  ;;  %v1534_v19 = vsel %vm1531_vm14, %v1533_v52, %v1529_v0  ;;  %vm1498_vm1 = vweird.f32 %v4506_v14 }
 0x22a   : > { %2649 = vrcp.f32 %v4533_v48  ;;  %v1505_v51 = vor.u32 1.1754944e-38, %v1504_v23  ;;  %v1689_v24 = vmul.f32 %v1657_v31, %v1534_v19  ;;  %vm1513_vm4 = vweird.f32 %v2644_v40  ;;  %v5066_v23 = vld [vmem:[#allocation45_spill] sm:$0xff] }
 0x22b   : > { %1972 = vmatpush.msra.mxu2 %v1830_v35  ;;  %v1510_v18 = vmul.f32 %v2644_v40, %v1509_v57  ;;  %v1494_v61 = vmul.f32 %v2646_v54, %v4506_v14  ;;  %vm4547_vm10 = vcmp.eq.f32.partialorder %v1502_v30, 8.507059e+37  ;;  %v1488_v53 = vand.u32 2147483647, %v4527_v10  ;;  %vm1514_vm6 = vmor %vm1512_vm2, %vm1513_vm4 }
 0x22c   : > { %v1490_v12 = vand.u32 2147483648, %v4527_v10  ;;  %v1005_v27 = vsel %vm1004_vm12, %v3938_v9, %v4479_v26  ;;  %vm1006_vm11 = vcmp.eq.f32.partialorder %v3938_v9, 0.0  ;;  %v1794_v41 = vmul.f32 %v4340_v20, %v1689_v24 }
 0x22d   : > { %2429 = vmatpush.lsf.msrb.mxu2 %v1760_v60  ;;  %v1724_v16 = vmul.f32 %v4362_v6, %v1689_v24  ;;  %v1511_v46 = vadd.f32 %v2644_v40, %v1510_v18  ;;  %v1495_v4 = vsub.f32 1.0, %v1494_v61  ;;  %vm1484_vm5 = vweird.f32 %v4527_v10 }
 0x22e   : > { %vm1499_vm8 = vweird.f32 %v2646_v54  ;;  %vm1470_vm15 = vweird.f32 %v4533_v48  ;;  %v1474_v55 = vand.u32 2147483647, %v4533_v48  ;;  %v1476_v26 = vand.u32 2147483648, %v4533_v48 }
 0x22f   : > { %v2648_v25 = vpop.eup %2647  ;;  %v5064_v44 = vand.u32 2147483648, %v3938_v9  ;;  %vm980_vm12 = vcmp.eq.f32.partialorder %v3853_v28, inf  ;;  %v1829_v5 = vadd.f32 %v4389_v47, %v1794_v41  ;;  %v1515_v34 = vsel %vm1514_vm6, %v2644_v40, %v1511_v46  ;;  %vm1500_vm13 = vmor %vm1498_vm1, %vm1499_vm8  ;;  %v5077_v46 = vld [vmem:[#allocation42_spill] sm:$0xff] }
 0x230   : > { %v2650_v31 = vpop.eup %2649  ;;  %v1496_v45 = vmul.f32 %v2646_v54, %v1495_v4  ;;  %v993_v49 = vsel %vm992_vm0, %v3930_v2, %v4135_v33  ;;  %v1759_v13 = vadd.f32 %v4397_v36, %v1724_v16  ;;  %v1520_v17 = vsel %vm4540_vm7, %v1519_v59, %v1515_v34  ;;  %v5072_v59 = vld [vmem:[#allocation25_spill] sm:$0xff]  ;;  %v5076_v16 = vld [vmem:[#allocation16_spill] sm:$0xff] }
 0x231   : > { %v1008_v43 = vsel %vm1006_vm11, %v5064_v44, %v1005_v27  ;;  %v1480_v9 = vmul.f32 %v2648_v25, %v4527_v10  ;;  %v1466_v35 = vmul.f32 %v2650_v31, %v4533_v48  ;;  %2411 = vmatmul.lmr.bf16.gmra.16.mxu1  ;;  %1973 = vmatpush.msra.mxu2 %v1829_v5  ;;  %v1688_v50 = vmul.f32 %v1656_v22, %v1520_v17  ;;  %v5080_v44 = vld [vmem:[#allocation27_spill] sm:$0xff] }
 0x232   : > { %v1497_v29 = vadd.f32 %v2646_v54, %v1496_v45  ;;  %v4582_v8 = vadd.f32 1e-05, %v1008_v43  ;;  %vm994_vm9 = vcmp.eq.f32.partialorder %v3930_v2, 0.0  ;;  %vm1485_vm0 = vweird.f32 %v2648_v25 }
 0x233   : > { %2430 = vmatpush.lsf.msrb.mxu2 %v1759_v13  ;;  %v1481_v33 = vsub.f32 1.0, %v1480_v9  ;;  %v1467_v60 = vsub.f32 1.0, %v1466_v35  ;;  %v5065_v37 = vand.u32 2147483648, %v3930_v2  ;;  %v1793_v15 = vmul.f32 %v4340_v20, %v1688_v50  ;;  %vm4607_vm2 = vmor %vm1484_vm5, %vm1485_vm0 }
 0x234   : > { %v1723_v32 = vmul.f32 %v4362_v6, %v1688_v50  ;;  %v1501_v22 = vsel %vm1500_vm13, %v2646_v54, %v1497_v29  ;;  %2651 = vrcp.f32 %v4582_v8  ;;  %vm1471_vm3 = vweird.f32 %v2650_v31 }
 0x235   : > { %v996_v63 = vsel %vm994_vm9, %v5065_v37, %v993_v49  ;;  %v1506_v42 = vsel %vm4547_vm10, %v1505_v51, %v1501_v22  ;;  %v1482_v40 = vmul.f32 %v2648_v25, %v1481_v33  ;;  %v1468_v7 = vmul.f32 %v2650_v31, %v1467_v60  ;;  %vm1472_vm7 = vmor %vm1470_vm15, %vm1471_vm3  ;;  %v4650_v33 = vld [vmem:[%s3033_s13 + $0x98] sm:$0xff] }
 0x236   : > { %v1828_v14 = vadd.f32 %v4389_v47, %v1793_v15  ;;  %v5067_v58 = vsub.f32 %v4154_v11, %v5066_v23  ;;  %vm4599_vm14 = vcmp.eq.f32.partialorder %v1488_v53, 8.507059e+37  ;;  %v1491_v38 = vor.u32 1.1754944e-38, %v1490_v12  ;;  %v5073_v53 = vld [vmem:[#allocation28_spill] sm:$0xff] }
 0x237   : > { %v1758_v62 = vadd.f32 %v4397_v36, %v1723_v32  ;;  %v1483_v30 = vadd.f32 %v2648_v25, %v1482_v40  ;;  %v1469_v0 = vadd.f32 %v2650_v31, %v1468_v7  ;;  %v4611_v57 = vadd.f32 1e-05, %v996_v63  ;;  %v5074_v12 = vld [vmem:[#allocation44_spill] sm:$0xff] }
 0x238   : > { %v1687_v2 = vmul.f32 %v5067_v58, %v1506_v42  ;;  %1974 = vmatpush.msra.mxu2 %v1828_v14  ;;  %vm1475_vm1 = vcmp.eq.f32.partialorder %v1474_v55, 8.507059e+37  ;;  %v1477_v54 = vor.u32 1.1754944e-38, %v1476_v26  ;;  %v981_v51 = vsel %vm980_vm12, %v3853_v28, %v5072_v59  ;;  %v5079_v26 = vld [vmem:[#allocation31_spill] sm:$0xff] }
 0x239   : > { %v1487_v10 = vsel %vm4607_vm2, %v2648_v25, %v1483_v30  ;;  %v1473_v19 = vsel %vm1472_vm7, %v2650_v31, %v1469_v0  ;;  %2653 = vrcp.f32 %v4611_v57  ;;  %2412 = vmatmul.lmr.bf16.gmra.16.mxu1  ;;  %vm982_vm4 = vcmp.eq.f32.partialorder %v3853_v28, 0.0 }
 0x23a   : > { %v1792_v11 = vmul.f32 %v4340_v20, %v1687_v2  ;;  %v1722_v21 = vmul.f32 %v4362_v6, %v1687_v2  ;;  %2431 = vmatpush.lsf.msrb.mxu2 %v1758_v62  ;;  %v2652_v24 = vpop.eup %2651  ;;  %v1492_v48 = vsel %vm4599_vm14, %v1491_v38, %v1487_v10  ;;  %v1478_v61 = vsel %vm1475_vm1, %v1477_v54, %v1473_v19  ;;  %v4680_v10 = vld [vmem:[%s3033_s13 + $0x90] sm:$0xff] }
 0x23b   : > { %v5075_v27 = vsub.f32 %v5073_v53, %v5074_v12  ;;  %v5078_v4 = vsub.f32 %v5076_v16, %v5077_v46  ;;  %v1452_v55 = vmul.f32 %v2652_v24, %v4582_v8  ;;  %v967_v43 = vmul.f32 %v5080_v44, %v5079_v26  ;;  %v5085_v19 = vld [vmem:[#allocation38_spill] sm:$0xff] }
 0x23c   : > { %v1827_v18 = vadd.f32 %v4389_v47, %v1792_v11  ;;  %v1757_v3 = vadd.f32 %v4397_v36, %v1722_v21  ;;  %vm968_vm10 = vcmp.eq.f32.partialorder %v5079_v26, inf  ;;  %v5081_v31 = vand.u32 2147483648, %v3853_v28  ;;  %v5082_v28 = vld [vmem:[#allocation40_spill] sm:$0xff] }
 0x23d   : > { %v1686_v41 = vmul.f32 %v5075_v27, %v1492_v48  ;;  %v1685_v25 = vmul.f32 %v5078_v4, %v1478_v61  ;;  %v1460_v13 = vand.u32 2147483647, %v4582_v8  ;;  %v971_v17 = vand.u32 2147483648, %v5079_v26 }
 0x23e   : > { %1975 = vmatpush.msra.mxu2 %v1827_v18  ;;  %v984_v5 = vsel %vm982_vm4, %v5081_v31, %v981_v51  ;;  %v1453_v35 = vsub.f32 1.0, %v1452_v55  ;;  %v1652_v60 = vsub.f32 %v4650_v33, %v5082_v28  ;;  %vm1457_vm11 = vweird.f32 %v2652_v24  ;;  %v5086_v31 = vld [vmem:[#allocation37_spill] sm:$0xff] }
 0x23f   : > { %v1791_v34 = vmul.f32 %v4340_v20, %v1686_v41  ;;  %v1721_v45 = vmul.f32 %v4362_v6, %v1686_v41  ;;  %v1790_v49 = vmul.f32 %v4340_v20, %v1685_v25  ;;  %v1720_v9 = vmul.f32 %v4362_v6, %v1685_v25  ;;  %v2654_v29 = vpop.eup %2653 }
 0x240   : > { %2432 = vmatpush.lsf.msrb.mxu2 %v1757_v3  ;;  %v4647_v50 = vadd.f32 1e-05, %v984_v5  ;;  %v1462_v63 = vand.u32 2147483648, %v4582_v8  ;;  %v1454_v32 = vmul.f32 %v2652_v24, %v1453_v35  ;;  %v1438_v22 = vmul.f32 %v2654_v29, %v4611_v57 }
 0x241   : > { %v1826_v37 = vadd.f32 %v4389_v47, %v1791_v34  ;;  %v1756_v15 = vadd.f32 %v4397_v36, %v1721_v45  ;;  %v1825_v42 = vadd.f32 %v4389_v47, %v1790_v49  ;;  %vm1456_vm5 = vweird.f32 %v4582_v8  ;;  %2413 = vmatmul.lmr.bf16.gmra.16.mxu1 }
 0x242   : > { %2655 = vrcp.f32 %v4647_v50  ;;  %vm4661_vm6 = vcmp.eq.f32.partialorder %v1460_v13, 8.507059e+37  ;;  %v969_v7 = vsel %vm968_vm10, %v5079_v26, %v967_v43  ;;  %v1755_v14 = vadd.f32 %v4397_v36, %v1720_v9  ;;  %vm1458_vm15 = vmor %vm1456_vm5, %vm1457_vm11  ;;  %v4696_v43 = vld [vmem:[%s3033_s13 + $0x88] sm:$0xff] }
 0x243   : > { %1976 = vmatpush.msra.mxu2 %v1826_v37  ;;  %v1455_v23 = vadd.f32 %v2652_v24, %v1454_v32  ;;  %v1439_v58 = vsub.f32 1.0, %v1438_v22  ;;  %vm970_vm8 = vcmp.eq.f32.partialorder %v5079_v26, 0.0  ;;  %v1463_v8 = vor.u32 1.1754944e-38, %v1462_v63  ;;  %v4708_v32 = vld [vmem:[%s3033_s13 + $0x80] sm:$0xff]  ;;  %v5087_v22 = vld [vmem:[#allocation34_spill] sm:$0xff] }
 0x244   : > { %v1446_v2 = vand.u32 2147483647, %v4611_v57  ;;  %v1448_v39 = vand.u32 2147483648, %v4611_v57  ;;  %v972_v38 = vsel %vm970_vm8, %v971_v17, %v969_v7  ;;  %vm1443_vm12 = vweird.f32 %v2654_v29 }
 0x245   : > { %2433 = vmatpush.lsf.msrb.mxu2 %v1756_v15  ;;  %v1459_v62 = vsel %vm1458_vm15, %v2652_v24, %v1455_v23  ;;  %v1440_v30 = vmul.f32 %v2654_v29, %v1439_v58  ;;  %v4673_v52 = vadd.f32 1e-05, %v972_v38  ;;  %vm1442_vm9 = vweird.f32 %v4611_v57 }
 0x246   : > { %v1464_v0 = vsel %vm4661_vm6, %v1463_v8, %v1459_v62  ;;  %v1651_v59 = vsub.f32 %v4680_v10, %v5085_v19  ;;  %vm1444_vm13 = vmor %vm1442_vm9, %vm1443_vm12  ;;  %v1449_v51 = vor.u32 1.1754944e-38, %v1448_v39  ;;  %vm1447_vm0 = vcmp.eq.f32.partialorder %v1446_v2, 8.507059e+37 }
 0x247   : > { %1977 = vmatpush.msra.mxu2 %v1825_v42  ;;  %v1684_v21 = vmul.f32 %v1652_v60, %v1464_v0  ;;  %v1441_v54 = vadd.f32 %v2654_v29, %v1440_v30  ;;  %2657 = vrcp.f32 %v4673_v52  ;;  %v1434_v27 = vand.u32 2147483648, %v4647_v50 }
 0x248   : > { %v2656_v11 = vpop.eup %2655  ;;  %v1432_v46 = vand.u32 2147483647, %v4647_v50  ;;  %vm1428_vm14 = vweird.f32 %v4647_v50  ;;  %v1650_v5 = vsub.f32 %v4696_v43, %v5086_v31  ;;  %v1420_v35 = vand.u32 2147483648, %v4673_v52 }
 0x249   : > { %2434 = vmatpush.lsf.msrb.mxu2 %v1755_v14  ;;  %v1424_v24 = vmul.f32 %v2656_v11, %v4647_v50  ;;  %v1789_v18 = vmul.f32 %v4340_v20, %v1684_v21  ;;  %v1719_v48 = vmul.f32 %v4362_v6, %v1684_v21  ;;  %v1445_v61 = vsel %vm1444_vm13, %v2654_v29, %v1441_v54  ;;  %2414 = vmatmul.lmr.bf16.gmra.16.mxu1 }
 0x24a   : > { %v1450_v3 = vsel %vm1447_vm0, %v1449_v51, %v1445_v61  ;;  %vm1429_vm3 = vweird.f32 %v2656_v11  ;;  %v1435_v45 = vor.u32 1.1754944e-38, %v1434_v27  ;;  %vm1433_vm7 = vcmp.eq.f32.partialorder %v1432_v46, 8.507059e+37 }
 0x24b   : > { %v1425_v53 = vsub.f32 1.0, %v1424_v24  ;;  %v1824_v57 = vadd.f32 %v4389_v47, %v1789_v18  ;;  %v1683_v12 = vmul.f32 %v1651_v59, %v1450_v3  ;;  %v1754_v41 = vadd.f32 %v4397_v36, %v1719_v48  ;;  %vm1430_vm2 = vmor %vm1428_vm14, %vm1429_vm3 }
 0x24c   : > { %v1418_v28 = vand.u32 2147483647, %v4673_v52  ;;  %vm1414_vm4 = vweird.f32 %v4673_v52  ;;  %v1421_v15 = vor.u32 1.1754944e-38, %v1420_v35  ;;  %v1649_v42 = vsub.f32 %v4708_v32, %v5087_v22  ;;  %v361_v22 = vld [vmem:[#allocation7 + $0x68] sm:$0xff] }
 0x24d   : > { %v1426_v16 = vmul.f32 %v2656_v11, %v1425_v53  ;;  %v2658_v4 = vpop.eup %2657  ;;  %1978 = vmatpush.msra.mxu2 %v1824_v57  ;;  %v1788_v25 = vmul.f32 %v4340_v20, %v1683_v12  ;;  %v1718_v55 = vmul.f32 %v4362_v6, %v1683_v12 }
 0x24e   : > { %v1410_v44 = vmul.f32 %v2658_v4, %v4673_v52  ;;  %vm1415_vm1 = vweird.f32 %v2658_v4  ;;  %vm1419_vm11 = vcmp.eq.f32.partialorder %v1418_v28, 8.507059e+37 }
 0x24f   : > { %2435 = vmatpush.lsf.msrb.mxu2 %v1754_v41  ;;  %v1427_v26 = vadd.f32 %v2656_v11, %v1426_v16  ;;  %v1823_v34 = vadd.f32 %v4389_v47, %v1788_v25  ;;  %v1753_v49 = vadd.f32 %v4397_v36, %v1718_v55  ;;  %vm1416_vm10 = vmor %vm1414_vm4, %vm1415_vm1 }
 0x250   : > { %v1411_v17 = vsub.f32 1.0, %v1410_v44 }
 0x251   : > { %v1431_v13 = vsel %vm1430_vm2, %v2656_v11, %v1427_v26  ;;  %1979 = vmatpush.msra.mxu2 %v1823_v34  ;;  %2415 = vmatmul.lmr.bf16.gmra.16.mxu1 }
 0x252   : > { %v1436_v9 = vsel %vm1433_vm7, %v1435_v45, %v1431_v13  ;;  %v1412_v29 = vmul.f32 %v2658_v4, %v1411_v17 }
 0x253   : > { %2436 = vmatpush.lsf.msrb.mxu2 %v1753_v49  ;;  %v1682_v50 = vmul.f32 %v1650_v5, %v1436_v9 }
 0x254   : > { %v1413_v63 = vadd.f32 %v2658_v4, %v1412_v29  ;;  %v363_v29 = vld [vmem:[#allocation7 + $0x78] sm:$0xff] }
 0x255   : > { %v1787_v60 = vmul.f32 %v4340_v20, %v1682_v50  ;;  %v1717_v37 = vmul.f32 %v4362_v6, %v1682_v50 }
 0x256   : > { %v1417_v7 = vsel %vm1416_vm10, %v2658_v4, %v1413_v63 }
 0x257   : > { %v1822_v40 = vadd.f32 %v4389_v47, %v1787_v60  ;;  %v1752_v14 = vadd.f32 %v4397_v36, %v1717_v37  ;;  %v1422_v23 = vsel %vm1419_vm11, %v1421_v15, %v1417_v7  ;;  %v362_v37 = vld [vmem:[#allocation7 + $0x70] sm:$0xff]  ;;  %v360_v7 = vld [vmem:[#allocation7 + $0x60] sm:$0xff] }
 0x258   : > { %v1681_v58 = vmul.f32 %v1649_v42, %v1422_v23 }
 0x259   : > { %1980 = vmatpush.msra.mxu2 %v1822_v40  ;;  %2416 = vmatmul.lmr.bf16.gmra.16.mxu1 }
 0x25a   : > { %v1786_v8 = vmul.f32 %v4340_v20, %v1681_v58  ;;  %v1716_v2 = vmul.f32 %v4362_v6, %v1681_v58  ;;  %v359_v58 = vld [vmem:[#allocation7 + $0x58] sm:$0xff] }
 0x25b   : > { %2437 = vmatpush.lsf.msrb.mxu2 %v1752_v14 }
 0x25c   : > { %v1821_v39 = vadd.f32 %v4389_v47, %v1786_v8  ;;  %v1751_v38 = vadd.f32 %v4397_v36, %v1716_v2 }
 0x25e   : > { %1981 = vmatpush.msra.mxu2 %v1821_v39  ;;  %v358_v39 = vld [vmem:[#allocation7 + $0x50] sm:$0xff] }
 0x260   : > { %2438 = vmatpush.lsf.msrb.mxu2 %v1751_v38 }
 0x261   : > { %2439 = vllmr.16.mxu2  ;;  %2417 = vmatmul.lmr.bf16.gmra.16.mxu1 }
 0x269   : > { %2418 = vmatmul.lmr.bf16.gmra.16.mxu1 }
 0x271   : > { %2419 = vmatmul.lmr.bf16.gmra.16.mxu1 }
 0x276   : > { %v1918_v20 = vpop.f32.mrf.mxu1 }
 0x27e   : > { %v1921_v6 = vpop.f32.mrf.mxu1 }
 0x282   : > { %2440 = vmatmul.lmr.bf16.vlgmr.msra.gmra.16.mxu2 }
 0x286   : > { %v1924_v47 = vpop.f32.mrf.mxu1 }
 0x28a   : > { %2441 = vmatmul.lmr.bf16.gmra.16.mxu2 }
 0x28e   : > { %v1927_v36 = vpop.f32.mrf.mxu1 }
 0x292   : > { %2442 = vmatmul.lmr.bf16.gmra.16.mxu2 }
 0x296   : > { %v1930_v0 = vpop.f32.mrf.mxu1 }
 0x29a   : > { %2443 = vmatmul.lmr.bf16.gmra.16.mxu2 }
 0x29e   : > { %v1933_v19 = vpop.f32.mrf.mxu1 }
 0x2a2   : > { %2444 = vmatmul.lmr.bf16.gmra.16.mxu2 }
 0x2a6   : > { %v1936_v24 = vpop.f32.mrf.mxu1 }
 0x2aa   : > { %2445 = vmatmul.lmr.bf16.gmra.16.mxu2 }
 0x2ae   : > { %v1939_v61 = vpop.f32.mrf.mxu1 }
 0x2b2   : > { %2446 = vmatmul.lmr.bf16.gmra.16.mxu2 }
 0x2b6   : > { %v1942_v12 = vpop.f32.mrf.mxu1 }
 0x2ba   : > { %2447 = vmatmul.lmr.bf16.gmra.16.mxu2 }
 0x2be   : > { %v1945_v46 = vpop.f32.mrf.mxu1 }
 0x2c2   : > { %2448 = vmatmul.lmr.bf16.gmra.16.mxu2 }
 0x2c6   : > { %v1948_v55 = vpop.f32.mrf.mxu1 }
 0x2ca   : > { %2449 = vmatmul.lmr.bf16.gmra.16.mxu2 }
 0x2ce   : > { %v1951_v44 = vpop.f32.mrf.mxu1 }
 0x2d2   : > { %2450 = vmatmul.lmr.bf16.gmra.16.mxu2 }
 0x2d6   : > { %v1954_v34 = vpop.f32.mrf.mxu1 }
 0x2da   : > { %2451 = vmatmul.lmr.bf16.gmra.16.mxu2 }
 0x2de   : > { %v1957_v49 = vpop.f32.mrf.mxu1 }
 0x2e2   : > { %2452 = vmatmul.lmr.bf16.gmra.16.mxu2 }
 0x2e6   : > { %v1960_v17 = vpop.f32.mrf.mxu1 }
 0x2ea   : > { %2453 = vmatmul.lmr.bf16.gmra.16.mxu2 }
 0x2ee   : > { %v1963_v35 = vpop.f32.mrf.mxu1 }
 0x2f2   : > { %2454 = vmatmul.lmr.bf16.gmra.16.mxu2 }
 0x2fa   : > { %2455 = vmatmul.lmr.bf16.gmra.16.mxu2 }
 0x305   : > { %v1983_v62 = vpop.f32.mrf.mxu2 }
 0x306   : > { %v4718_v30 = vadd.f32 %v1983_v62, %v1918_v20 }
 0x30d   : > { %v1986_v52 = vpop.f32.mrf.mxu2 }
 0x30e   : > { %v4720_v11 = vadd.f32 %v1986_v52, %v1921_v6  ;;  %v357_v6 = vld [vmem:[#allocation7 + $0x48] sm:$0xff]  ;;  %v355_v52 = vld [vmem:[#allocation7 + $0x38] sm:$0xff] }
 0x315   : > { %v1989_v21 = vpop.f32.mrf.mxu2 }
 0x316   : > { %v4722_v54 = vadd.f32 %v1989_v21, %v1924_v47  ;;  %v354_v21 = vld [vmem:[#allocation7 + $0x30] sm:$0xff] }
 0x31d   : > { %v1992_v59 = vpop.f32.mrf.mxu2 }
 0x31e   : > { %v4724_v51 = vadd.f32 %v1992_v59, %v1927_v36  ;;  %v356_v36 = vld [vmem:[#allocation7 + $0x40] sm:$0xff]  ;;  %v353_v59 = vld [vmem:[#allocation7 + $0x28] sm:$0xff] }
 0x325   : > { %v1995_v18 = vpop.f32.mrf.mxu2 }
 0x326   : > { %v4726_v48 = vadd.f32 %v1995_v18, %v1930_v0  ;;  %v352_v18 = vld [vmem:[#allocation7 + $0x20] sm:$0xff] }
 0x32d   : > { %v1998_v3 = vpop.f32.mrf.mxu2 }
 0x32e   : > { %v1999_v53 = vadd.f32 %v1998_v3, %v1933_v19  ;;  %v351_v3 = vld [vmem:[#allocation7 + $0x18] sm:$0xff] }
 0x335   : > { %v2001_v57 = vpop.f32.mrf.mxu2 }
 0x336   : > { %v2002_v27 = vadd.f32 %v2001_v57, %v1936_v24  ;;  %v2035_v57 = vmul.f32 %v4726_v48, %v352_v18 }
 0x338   : > { %v2037_v24 = vmul.f32 %v2002_v27, %v354_v21  ;;  %v2707_v21 = vld [vmem:[%s3033_s13 + $0xd8] sm:$0xff] }
 0x33d   : > { %v2004_v41 = vpop.f32.mrf.mxu2 }
 0x33e   : > { %v2005_v16 = vadd.f32 %v2004_v41, %v1939_v61  ;;  %v2036_v61 = vmul.f32 %v1999_v53, %v353_v59  ;;  %v2034_v41 = vmul.f32 %v4724_v51, %v351_v3  ;;  %v2687_v51 = vld [vmem:[%s3033_s13 + $0x8] sm:$0xff] }
 0x33f   : > { %v2709_v3 = vld [vmem:[%s3033_s13 + $0xe8] sm:$0xff] }
 0x340   : > { %v2038_v19 = vmul.f32 %v2005_v16, %v355_v52  ;;  %v348_v16 = vld [vmem:[#allocation7] sm:$0xff] }
 0x341   : > { %v2031_v48 = vmul.f32 %v4718_v30, %v348_v16  ;;  %v2692_v30 = vld [vmem:[%s3033_s13 + $0x30] sm:$0xff]  ;;  %v2711_v16 = vld [vmem:[%s3033_s13 + $0xf8] sm:$0xff] }
 0x345   : > { %v2007_v4 = vpop.f32.mrf.mxu2 }
 0x346   : > { %v2008_v25 = vadd.f32 %v2007_v4, %v1942_v12  ;;  %v350_v12 = vld [vmem:[#allocation7 + $0x10] sm:$0xff]  ;;  %v2686_v4 = vld [vmem:[%s3033_s13] sm:$0xff] }
 0x347   : > { %v2033_v27 = vmul.f32 %v4722_v54, %v350_v12  ;;  %v2689_v54 = vld [vmem:[%s3033_s13 + $0x18] sm:$0xff] }
 0x348   : > { %v2039_v0 = vmul.f32 %v2008_v25, %v356_v36  ;;  %v2688_v25 = vld [vmem:[%s3033_s13 + $0x10] sm:$0xff] }
 0x34d   : > { %v2010_v26 = vpop.f32.mrf.mxu2 }
 0x34e   : > { %v2011_v38 = vadd.f32 %v2010_v26, %v1945_v46  ;;  %v349_v46 = vld [vmem:[#allocation7 + $0x8] sm:$0xff]  ;;  %v2693_v26 = vld [vmem:[%s3033_s13 + $0x38] sm:$0xff] }
 0x34f   : > { %v2032_v53 = vmul.f32 %v4720_v11, %v349_v46  ;;  %v2691_v11 = vld [vmem:[%s3033_s13 + $0x28] sm:$0xff] }
 0x350   : > { %v2040_v62 = vmul.f32 %v2011_v38, %v357_v6  ;;  %v4796_v6 = vld [vmem:[%s3033_s13 + $0xc8] sm:$0xff] }
 0x355   : > { %v2013_v31 = vpop.f32.mrf.mxu2 }
 0x356   : > { %v2014_v8 = vadd.f32 %v2013_v31, %v1948_v55  ;;  %v2690_v55 = vld [vmem:[%s3033_s13 + $0x20] sm:$0xff]  ;;  %v2695_v31 = vld [vmem:[%s3033_s13 + $0x48] sm:$0xff] }
 0x358   : > { %v2041_v47 = vmul.f32 %v2014_v8, %v358_v39 }
 0x35d   : > { %v2016_v5 = vpop.f32.mrf.mxu2 }
 0x35e   : > { %v2017_v14 = vadd.f32 %v2016_v5, %v1951_v44  ;;  %v2694_v44 = vld [vmem:[%s3033_s13 + $0x40] sm:$0xff]  ;;  %v2696_v5 = vld [vmem:[%s3033_s13 + $0x50] sm:$0xff] }
 0x360   : > { %v2042_v20 = vmul.f32 %v2017_v14, %v359_v58 }
 0x365   : > { %v2019_v45 = vpop.f32.mrf.mxu2 }
 0x366   : > { %v2020_v42 = vadd.f32 %v2019_v45, %v1954_v34  ;;  %v4745_v34 = vld [vmem:[%s3033_s13 + $0x58] sm:$0xff]  ;;  %v4749_v45 = vld [vmem:[%s3033_s13 + $0x60] sm:$0xff] }
 0x368   : > { %v2043_v2 = vmul.f32 %v2020_v42, %v360_v7 }
 0x36d   : > { %v2022_v13 = vpop.f32.mrf.mxu2 }
 0x36e   : > { %v2023_v63 = vadd.f32 %v2022_v13, %v1957_v49  ;;  %v4753_v49 = vld [vmem:[%s3033_s13 + $0x68] sm:$0xff]  ;;  %v4757_v13 = vld [vmem:[%s3033_s13 + $0x70] sm:$0xff] }
 0x370   : > { %v2044_v23 = vmul.f32 %v2023_v63, %v361_v22 }
 0x375   : > { %v2025_v9 = vpop.f32.mrf.mxu2 }
 0x376   : > { %v2026_v28 = vadd.f32 %v2025_v9, %v1960_v17  ;;  %v4761_v17 = vld [vmem:[%s3033_s13 + $0x78] sm:$0xff] }
 0x378   : > { %v2045_v40 = vmul.f32 %v2026_v28, %v362_v37 }
 0x37d   : > { %v2028_v50 = vpop.f32.mrf.mxu2 }
 0x37e   : > { %v2029_v60 = vadd.f32 %v2028_v50, %v1963_v35 }
 0x380   : > { %v2046_v15 = vmul.f32 %v2029_v60, %v363_v29 }
 0x382   : > { %2047 = vmatpush.msra.mxu3 %v2046_v15  ;;  %v4777_v15 = vld [vmem:[%s3033_s13 + $0xa0] sm:$0xff] }
 0x384   : > { %2048 = vmatpush.msra.mxu3 %v2045_v40  ;;  %v4782_v40 = vld [vmem:[%s3033_s13 + $0xa8] sm:$0xff] }
 0x386   : > { %2049 = vmatpush.msra.mxu3 %v2044_v23  ;;  %v4787_v23 = vld [vmem:[%s3033_s13 + $0xb0] sm:$0xff] }
 0x388   : > { %2050 = vmatpush.msra.mxu3 %v2043_v2 }
 0x38a   : > { %2051 = vmatpush.msra.mxu3 %v2042_v20 }
 0x38c   : > { %2052 = vmatpush.msra.mxu3 %v2041_v47 }
 0x38e   : > { %2053 = vmatpush.msra.mxu3 %v2040_v62  ;;  %v2706_v62 = vld [vmem:[%s3033_s13 + $0xd0] sm:$0xff] }
 0x390   : > { %2054 = vmatpush.msra.mxu3 %v2039_v0 }
 0x392   : > { %2055 = vmatpush.msra.mxu3 %v2038_v19 }
 0x394   : > { %2056 = vmatpush.msra.mxu3 %v2037_v24  ;;  %v2708_v24 = vld [vmem:[%s3033_s13 + $0xe0] sm:$0xff] }
 0x396   : > { %2057 = vmatpush.msra.mxu3 %v2036_v61 }
 0x398   : > { %2058 = vmatpush.msra.mxu3 %v2035_v57 }
 0x39a   : > { %2059 = vmatpush.msra.mxu3 %v2034_v41  ;;  %v2710_v41 = vld [vmem:[%s3033_s13 + $0xf0] sm:$0xff] }
 0x39c   : > { %2060 = vmatpush.msra.mxu3 %v2033_v27 }
 0x39e   : > { %2061 = vmatpush.msra.mxu3 %v2032_v53 }
 0x3a0   : > { %2062 = vmatpush.msra.mxu3 %v2031_v48 }
 0x3a1   : > { %2063 = vmatmul.f32.vlgmr.msra.gmra.mxu3 %v2686_v4 }
 0x3a9   : > { %2066 = vmatmul.f32.gmra.mxu3 %v2687_v51 }
 0x3b1   : > { %2069 = vmatmul.f32.gmra.mxu3 %v2688_v25 }
 0x3b9   : > { %2072 = vmatmul.f32.gmra.mxu3 %v2689_v54 }
 0x3c1   : > { %2075 = vmatmul.f32.gmra.mxu3 %v2690_v55 }
 0x3c9   : > { %2078 = vmatmul.f32.gmra.mxu3 %v2691_v11 }
 0x3d1   : > { %2081 = vmatmul.f32.gmra.mxu3 %v2692_v30 }
 0x3d9   : > { %2084 = vmatmul.f32.gmra.mxu3 %v2693_v26 }
 0x3e1   : > { %2087 = vmatmul.f32.gmra.mxu3 %v2694_v44 }
 0x3e9   : > { %2090 = vmatmul.f32.gmra.mxu3 %v2695_v31 }
 0x3f1   : > { %2093 = vmatmul.f32.gmra.mxu3 %v2696_v5 }
 0x3f9   : > { %2096 = vmatmul.f32.gmra.mxu3 %v4745_v34 }
 0x401   : > { %2099 = vmatmul.f32.gmra.mxu3 %v4749_v45 }
 0x409   : > { %2102 = vmatmul.f32.gmra.mxu3 %v4753_v49 }
 0x411   : > { %2105 = vmatmul.f32.gmra.mxu3 %v4757_v13 }
 0x419   : > { %2108 = vmatmul.f32.gmra.mxu3 %v4761_v17 }
 0x421   : > { %2111 = vmatmul.f32.gmra.mxu3 %v4708_v32 }
 0x424   : > { %v2064_v9 = vpop.f32.mrf.mxu3 }
 0x425   : > { %v2160_v35 = vadd.f32 %v2686_v4, %v2064_v9 }
 0x427   : > { %2192 = vst [vmem:[%s4767_s29] sm:$0xff] %v2160_v35 }
 0x429   : > { %2114 = vmatmul.f32.gmra.mxu3 %v4696_v43 }
 0x42c   : > { %v2067_v50 = vpop.f32.mrf.mxu3 }
 0x42d   : > { %v2161_v29 = vadd.f32 %v2687_v51, %v2067_v50 }
 0x42f   : > { %2193 = vst [vmem:[%s4767_s29 + $0x8] sm:$0xff] %v2161_v29 }
 0x431   : > { %2117 = vmatmul.f32.gmra.mxu3 %v4680_v10 }
 0x434   : > { %v2070_v28 = vpop.f32.mrf.mxu3 }
 0x435   : > { %v2162_v60 = vadd.f32 %v2688_v25, %v2070_v28 }
 0x437   : > { %2194 = vst [vmem:[%s4767_s29 + $0x10] sm:$0xff] %v2162_v60 }
 0x439   : > { %2120 = vmatmul.f32.gmra.mxu3 %v4650_v33 }
 0x43c   : > { %v2073_v37 = vpop.f32.mrf.mxu3 }
 0x43d   : > { %v2163_v63 = vadd.f32 %v2689_v54, %v2073_v37 }
 0x43f   : > { %2195 = vst [vmem:[%s4767_s29 + $0x18] sm:$0xff] %v2163_v63 }
 0x441   : > { %2123 = vmatmul.f32.gmra.mxu3 %v4777_v15 }
 0x444   : > { %v2076_v22 = vpop.f32.mrf.mxu3 }
 0x445   : > { %v2164_v42 = vadd.f32 %v2690_v55, %v2076_v22 }
 0x447   : > { %2196 = vst [vmem:[%s4767_s29 + $0x20] sm:$0xff] %v2164_v42 }
 0x449   : > { %2126 = vmatmul.f32.gmra.mxu3 %v4782_v40 }
 0x44c   : > { %v2079_v7 = vpop.f32.mrf.mxu3 }
 0x44d   : > { %v2165_v14 = vadd.f32 %v2691_v11, %v2079_v7 }
 0x44f   : > { %2197 = vst [vmem:[%s4767_s29 + $0x28] sm:$0xff] %v2165_v14 }
 0x451   : > { %2129 = vmatmul.f32.gmra.mxu3 %v4787_v23 }
 0x454   : > { %v2082_v58 = vpop.f32.mrf.mxu3 }
 0x455   : > { %v2166_v8 = vadd.f32 %v2692_v30, %v2082_v58 }
 0x457   : > { %2198 = vst [vmem:[%s4767_s29 + $0x30] sm:$0xff] %v2166_v8 }
 0x459   : > { %2132 = vmatmul.f32.gmra.mxu3 %v4490_v1 }
 0x45c   : > { %v2085_v2 = vpop.f32.mrf.mxu3 }
 0x45d   : > { %v2167_v39 = vadd.f32 %v2693_v26, %v2085_v2 }
 0x45f   : > { %2199 = vst [vmem:[%s4767_s29 + $0x38] sm:$0xff] %v2167_v39 }
 0x461   : > { %2135 = vmatmul.f32.gmra.mxu3 %v4497_v56 }
 0x464   : > { %v2088_v38 = vpop.f32.mrf.mxu3 }
 0x465   : > { %v2168_v20 = vadd.f32 %v2694_v44, %v2088_v38 }
 0x467   : > { %2200 = vst [vmem:[%s4767_s29 + $0x40] sm:$0xff] %v2168_v20 }
 0x469   : > { %2138 = vmatmul.f32.gmra.mxu3 %v4796_v6 }
 0x46c   : > { %v2091_v47 = vpop.f32.mrf.mxu3 }
 0x46d   : > { %v2169_v36 = vadd.f32 %v2695_v31, %v2091_v47 }
 0x46f   : > { %2201 = vst [vmem:[%s4767_s29 + $0x48] sm:$0xff] %v2169_v36 }
 0x471   : > { %2141 = vmatmul.f32.gmra.mxu3 %v2706_v62 }
 0x474   : > { %v2094_v52 = vpop.f32.mrf.mxu3 }
 0x475   : > { %v2170_v0 = vadd.f32 %v2696_v5, %v2094_v52 }
 0x477   : > { %2202 = vst [vmem:[%s4767_s29 + $0x50] sm:$0xff] %v2170_v0 }
 0x479   : > { %2144 = vmatmul.f32.gmra.mxu3 %v2707_v21 }
 0x47c   : > { %v2097_v19 = vpop.f32.mrf.mxu3 }
 0x47d   : > { %v2171_v59 = vadd.f32 %v4745_v34, %v2097_v19 }
 0x47f   : > { %2203 = vst [vmem:[%s4767_s29 + $0x58] sm:$0xff] %v2171_v59 }
 0x481   : > { %2147 = vmatmul.f32.gmra.mxu3 %v2708_v24 }
 0x484   : > { %v2100_v18 = vpop.f32.mrf.mxu3 }
 0x485   : > { %v2172_v61 = vadd.f32 %v4749_v45, %v2100_v18 }
 0x487   : > { %2204 = vst [vmem:[%s4767_s29 + $0x60] sm:$0xff] %v2172_v61 }
 0x489   : > { %2150 = vmatmul.f32.gmra.mxu3 %v2709_v3 }
 0x48c   : > { %v2103_v57 = vpop.f32.mrf.mxu3 }
 0x48d   : > { %v2173_v12 = vadd.f32 %v4753_v49, %v2103_v57 }
 0x48f   : > { %2205 = vst [vmem:[%s4767_s29 + $0x68] sm:$0xff] %v2173_v12 }
 0x491   : > { %2153 = vmatmul.f32.gmra.mxu3 %v2710_v41 }
 0x494   : > { %v2106_v46 = vpop.f32.mrf.mxu3 }
 0x495   : > { %v2174_v27 = vadd.f32 %v4757_v13, %v2106_v46 }
 0x497   : > { %2206 = vst [vmem:[%s4767_s29 + $0x70] sm:$0xff] %v2174_v27 }
 0x499   : > { %2156 = vmatmul.f32.gmra.mxu3 %v2711_v16 }
 0x49c   : > { %v2109_v53 = vpop.f32.mrf.mxu3 }
 0x49d   : > { %v2175_v48 = vadd.f32 %v4761_v17, %v2109_v53 }
 0x49f   : > { %2207 = vst [vmem:[%s4767_s29 + $0x78] sm:$0xff] %v2175_v48 }
 0x4a4   : > { %v2112_v4 = vpop.f32.mrf.mxu3 }
 0x4a5   : > { %v2176_v51 = vadd.f32 %v4708_v32, %v2112_v4 }
 0x4a7   : > { %2208 = vst [vmem:[%s4767_s29 + $0x80] sm:$0xff] %v2176_v51 }
 0x4ac   : > { %v2115_v25 = vpop.f32.mrf.mxu3 }
 0x4ad   : > { %v2177_v54 = vadd.f32 %v4696_v43, %v2115_v25 }
 0x4af   : > { %2209 = vst [vmem:[%s4767_s29 + $0x88] sm:$0xff] %v2177_v54 }
 0x4b4   : > { %v2118_v55 = vpop.f32.mrf.mxu3 }
 0x4b5   : > { %v2178_v11 = vadd.f32 %v4680_v10, %v2118_v55 }
 0x4b7   : > { %2210 = vst [vmem:[%s4767_s29 + $0x90] sm:$0xff] %v2178_v11 }
 0x4bc   : > { %v2121_v30 = vpop.f32.mrf.mxu3 }
 0x4bd   : > { %v2179_v26 = vadd.f32 %v4650_v33, %v2121_v30 }
 0x4bf   : > { %2211 = vst [vmem:[%s4767_s29 + $0x98] sm:$0xff] %v2179_v26 }
 0x4c4   : > { %v2124_v44 = vpop.f32.mrf.mxu3 }
 0x4c5   : > { %v2180_v32 = vadd.f32 %v4777_v15, %v2124_v44 }
 0x4c7   : > { %2212 = vst [vmem:[%s4767_s29 + $0xa0] sm:$0xff] %v2180_v32 }
 0x4cc   : > { %v2127_v31 = vpop.f32.mrf.mxu3 }
 0x4cd   : > { %v2181_v43 = vadd.f32 %v4782_v40, %v2127_v31 }
 0x4cf   : > { %2213 = vst [vmem:[%s4767_s29 + $0xa8] sm:$0xff] %v2181_v43 }
 0x4d4   : > { %v2130_v5 = vpop.f32.mrf.mxu3 }
 0x4d5   : > { %v2182_v10 = vadd.f32 %v4787_v23, %v2130_v5 }
 0x4d7   : > { %2214 = vst [vmem:[%s4767_s29 + $0xb0] sm:$0xff] %v2182_v10 }
 0x4dc   : > { %v2133_v34 = vpop.f32.mrf.mxu3 }
 0x4dd   : > { %v2183_v33 = vadd.f32 %v4490_v1, %v2133_v34 }
 0x4df   : > { %2215 = vst [vmem:[%s4767_s29 + $0xb8] sm:$0xff] %v2183_v33 }
 0x4e4   : > { %v2136_v45 = vpop.f32.mrf.mxu3 }
 0x4e5   : > { %v2184_v49 = vadd.f32 %v4497_v56, %v2136_v45 }
 0x4e7   : > { %2216 = vst [vmem:[%s4767_s29 + $0xc0] sm:$0xff] %v2184_v49 }
 0x4ec   : > { %v2139_v13 = vpop.f32.mrf.mxu3 }
 0x4ed   : > { %v2185_v17 = vadd.f32 %v4796_v6, %v2139_v13 }
 0x4ef   : > { %2217 = vst [vmem:[%s4767_s29 + $0xc8] sm:$0xff] %v2185_v17 }
 0x4f4   : > { %v2142_v9 = vpop.f32.mrf.mxu3 }
 0x4f5   : > { %v2186_v35 = vadd.f32 %v2706_v62, %v2142_v9 }
 0x4f7   : > { %2218 = vst [vmem:[%s4767_s29 + $0xd0] sm:$0xff] %v2186_v35 }
 0x4fc   : > { %v2145_v50 = vpop.f32.mrf.mxu3 }
 0x4fd   : > { %v2187_v29 = vadd.f32 %v2707_v21, %v2145_v50 }
 0x4ff   : > { %2219 = vst [vmem:[%s4767_s29 + $0xd8] sm:$0xff] %v2187_v29 }
 0x504   : > { %v2148_v1 = vpop.f32.mrf.mxu3 }
 0x505   : > { %v2188_v28 = vadd.f32 %v2708_v24, %v2148_v1 }
 0x507   : > { %2220 = vst [vmem:[%s4767_s29 + $0xe0] sm:$0xff] %v2188_v28 }
 0x50c   : > { %v2151_v56 = vpop.f32.mrf.mxu3 }
 0x50d   : > { %v2189_v60 = vadd.f32 %v2709_v3, %v2151_v56 }
 0x50f   : > { %2221 = vst [vmem:[%s4767_s29 + $0xe8] sm:$0xff] %v2189_v60 }
 0x514   : > { %v2154_v37 = vpop.f32.mrf.mxu3 }
 0x515   : > { %v2190_v63 = vadd.f32 %v2710_v41, %v2154_v37 }
 0x517   : > { %2222 = vst [vmem:[%s4767_s29 + $0xf0] sm:$0xff] %v2190_v63 }
 0x51c   : > { %v2157_v15 = vpop.f32.mrf.mxu3 }
 0x51d   : > { %v2191_v22 = vadd.f32 %v2711_v16, %v2157_v15 }
 0x51f   : > { %2223 = vst [vmem:[%s4767_s29 + $0xf8] sm:$0xff] %v2191_v22 }
 0x520   : > { %2829 = shalt.err (!%p2826_p10)
}
 0x521   : > { %s2878_s14 = smov 128   ;;  %s2879_s29 = smov 8  }
 0x522   : > { %2466 = dma.vmem_to_hbm [thread:$0]  (%p2994_p3), %s2238_s16, 4096, %s2240_s17, %s2225_s11, %s2878_s14, %s2878_s14, %s2879_s29  }
 0x523 PF: > { %s2254_s1 = sand.u32 1, %s2860_s24   ;;  %p5088_p12 = scmp.ge.s32.totalorder %s2872_s27, 2 }
 0x524   : > { %s2255_s13 = scalar_lea.sflag [#allocation4], %s2254_s1 }
 0x525   : > { %p2480_p13 = pnand %p5088_p12, %p2957_p6 }
 0x527   : > { %p2481_p0 = pneg %p2480_p13 }
 0x529   : > { %2855 = dma.done.wait (%p2481_p0), %s2255_s13, 4096  }
 0x52a   : > { %2857 = vsyncadd (%p2481_p0), %s2255_s13, 4294963200  ;;  %p21_p5 = scmp.ge.s32.totalorder %s2984_s22, 4   ;;  %s5089_s24 = smov %s2864_s25 }
 0x52b   : > { %s5090_s25 = smov %s2868_s26  ;;  %s5091_s26 = smov %s3000_s10 }
 0x52c   : > { %s5092_s27 = smov %s2984_s22  ;;  %23 = sbr.rel (!%p21_p5) target bundleno = 8 (0x8), region = 101 }
 0x531   :  { %2261 = vsyncpa [#allocation3], 1 }
 0x532   :  { %2263 = vsyncpa [#allocation3 + $0x1], 1 }
 0x533   :  { %2264 = vsyncpa [#allocation6], 1 }
 0x534   :  { %2265 = vsyncpa [#allocation4], 1 }
 0x535   :  { %2267 = vsyncpa [#allocation4 + $0x1], 1 }

</bundles_post_ra>
